<compile_context>
chip_gen: v7x
topology: tpu7x:2x2x1
jax: 0.10.0
libtpu: 0.0.40
codegen_flags: <defaults>
</compile_context>

<pallas_src>
import math
import functools
import numpy as np

import jax
import jax.numpy as jnp
from jax import lax
from jax.experimental import pallas as pl
from jax.experimental.pallas import tpu as pltpu

# ----------------------------------------------------------------------------
# static model configuration
# ----------------------------------------------------------------------------
NUM_BASIS = 10
RADIAL_HIDDEN = 16
CUTOFF = 4.0
MAX_Z = 9

# irreps are lists of (mul, l); parity convention: l==0 -> 0e, l==1 -> 1o
IRREPS_IN = [(4, 0)]
IRREPS_HIDDEN = [(8, 0), (4, 1)]
IRREPS_EDGE = [(1, 0), (1, 1)]
IRREPS_OUT = [(4, 0)]


def irreps_dim(irreps):
    return sum(m * (2 * l + 1) for m, l in irreps)


# e3nn normalize2mom constants (second moment of activation under N(0,1)); dense quadrature.
def _second_moment_norm(f):
    z = np.linspace(-12.0, 12.0, 480001)
    dz = z[1] - z[0]
    pdf = np.exp(-0.5 * z * z) / np.sqrt(2.0 * np.pi)
    v = f(z)
    return float(1.0 / np.sqrt(np.sum(v * v * pdf) * dz))


_np_sigmoid = lambda z: 1.0 / (1.0 + np.exp(-z))
SILU_NORM = _second_moment_norm(lambda z: z * _np_sigmoid(z))  # ~1.679
SIG_NORM = _second_moment_norm(_np_sigmoid)                    # ~1.847


def compute_gate_irreps(irreps_out):
    irreps_scalars = [(m, l) for (m, l) in irreps_out if l == 0]
    irreps_gated = [(m, l) for (m, l) in irreps_out if l > 0]
    irreps_gates = [(sum(m for m, _ in irreps_gated), 0)] if irreps_gated else []
    return irreps_scalars, irreps_gated, irreps_gates


def build_layer_cfg(irreps_node, irreps_layer_out, activation):
    """Static config for one ConvLayerSE3. The FullyConnectedTensorProduct is expressed
    with a structure tensor so that (after folding the radial layer-2 weights into it at
    trace time) the per-edge TP is: wq = h @ W2T3 + B2T3, oq = (xj@XREP)*(sh@SHREP),
    msg = (wq*oq) @ SUM."""
    irreps_scalars, irreps_gated, irreps_gates = compute_gate_irreps(irreps_layer_out)
    conv_out = irreps_gates + irreps_layer_out  # Irreps concatenation (gates + out)

    def blocks(irreps):
        out, s = [], 0
        for (m, l) in irreps:
            out.append((s, m, l))
            s += m * (2 * l + 1)
        return out, s

    in_blocks, in_dim = blocks(irreps_node)
    out_blocks, conv_out_dim = blocks(conv_out)

    # FullyConnectedTensorProduct instructions ('uvw', per-edge weights, mul_edge = 1)
    instrs = []
    for i1, (m1, l1) in enumerate(irreps_node):
        for i2, (m2, l2) in enumerate(IRREPS_EDGE):
            for io, (mo, lo) in enumerate(conv_out):
                p1 = 1 if l1 == 0 else -1
                p2 = 1 if l2 == 0 else -1
                po = 1 if lo == 0 else -1
                if abs(l1 - l2) <= lo <= l1 + l2 and p1 * p2 == po:
                    instrs.append((i1, i2, io))

    offs, nw = [], 0
    for (i1, i2, io) in instrs:
        offs.append(nw)
        nw += irreps_node[i1][0] * conv_out[io][0]

    # path_normalization='element': per-output x = sum over incoming paths of mul1*mul2
    xs = [0.0] * len(conv_out)
    for (i1, i2, io) in instrs:
        xs[io] += float(irreps_node[i1][0])

    # irrep_normalization='component': alpha=(2*lo+1)/x; w3j = 1 for (0,0,0), 1/sqrt(3) otherwise
    paths = []
    for (i1, i2, io), off in zip(instrs, offs):
        lo = conv_out[io][1]
        pw = math.sqrt((2 * lo + 1) / xs[io])
        w3j = 1.0 if (irreps_node[i1][1] == 0 and IRREPS_EDGE[i2][1] == 0) else 1.0 / math.sqrt(3.0)
        paths.append((i1, IRREPS_EDGE[i2][1], io, off, pw * w3j))

    # static structure tensor: msg[e,k] = sum_{j,q} wts[e,j] * Outer[e,q] * T3[j,q,k]
    # with Outer[e, c*in_dim + a] = xj[e,a] * sh[e,c]  (c=0: Y0, c=1..3: Y1 (y,z,x))
    Q = 4 * in_dim
    K = conv_out_dim
    T3 = np.zeros((nw, Q, K), np.float32)
    for (ib, l2, ob, off, coef) in paths:
        s1, m1, l1 = in_blocks[ib]
        so, mo, lo = out_blocks[ob]
        for u in range(m1):
            for o in range(mo):
                j = off + u * mo + o
                if l1 == 0 and l2 == 0:                               # 0e x 0e -> 0e
                    T3[j, s1 + u, so + o] += coef
                elif l1 == 0 and l2 == 1:                             # 0e x 1o -> 1o
                    for d in range(3):
                        T3[j, (1 + d) * in_dim + s1 + u, so + 3 * o + d] += coef
                elif l1 == 1 and l2 == 0:                             # 1o x 0e -> 1o
                    for d in range(3):
                        T3[j, s1 + 3 * u + d, so + 3 * o + d] += coef
                else:                                                 # 1o x 1o -> 0e
                    for d in range(3):
                        T3[j, (1 + d) * in_dim + s1 + 3 * u + d, so + o] += coef

    # replication matmuls (review item 2): oq[e,(c*in_dim+a)*K+k] = xj[e,a]*sh[e,c]
    xrep = np.zeros((in_dim, Q * K), np.float32)
    shrep = np.zeros((4, Q * K), np.float32)
    for c in range(4):
        for a in range(in_dim):
            q = c * in_dim + a
            xrep[a, q * K:(q + 1) * K] = 1.0
            shrep[c, q * K:(q + 1) * K] = 1.0
    summat = np.zeros((Q * K, K), np.float32)                         # sum over q per output slot
    for q in range(Q):
        for k in range(K):
            summat[q * K + k, k] = 1.0

    if activation:
        n_scalars = sum(m for m, _ in irreps_scalars)
        n_gates = sum(m for m, _ in irreps_gates)
        layer_out_dim = n_scalars + sum(m * (2 * l + 1) for m, l in irreps_gated)
    else:
        n_scalars = n_gates = 0
        layer_out_dim = conv_out_dim

    return dict(in_dim=in_dim, conv_out_dim=conv_out_dim, nw=nw, qk=Q * K,
                gate=bool(activation), n_scalars=n_scalars, n_gates=n_gates,
                layer_out_dim=layer_out_dim,
                t3flat=T3.reshape(nw, Q * K), xrep=xrep, shrep=shrep, summat=summat)


LAYER_CFGS = [
    build_layer_cfg(IRREPS_IN, IRREPS_HIDDEN, activation=True),
    build_layer_cfg(IRREPS_HIDDEN, IRREPS_HIDDEN, activation=True),   # depth - 2 = 1 middle layer
    build_layer_cfg(IRREPS_HIDDEN, IRREPS_OUT, activation=False),
]

GATE_NG = next((c["n_gates"] for c in LAYER_CFGS if c["gate"] and c["n_gates"] > 0), 1)
for _c in LAYER_CFGS:
    if _c["gate"] and _c["n_gates"] > 0:
        assert _c["n_gates"] == GATE_NG

# ----------------------------------------------------------------------------
# packed-slab layouts (all small constants -> 2 pre-padded VMEM slabs)
# ----------------------------------------------------------------------------
# narrow slab [128, 128] f32: embed, gate_rep, per-layer w1/b1, dense head
NARROW_ROWS, NARROW_W = 128, 128
ROW_EMBED = 0      # rows 0..8   (reserve 0..15)
ROW_GATEREP = 16   # rows 16..19 (reserve 16..23)
ROW_W1 = [24, 48, 72]   # each 10 rows (reserve 16)
ROW_B1 = [40, 64, 88]   # each 1 row  (reserve 8)
ROW_DW1, ROW_DB1, ROW_DW2, ROW_DB2 = 96, 104, 112, 120

# wide slab [56, 2688] f32: per-layer W2T3 / B2T3 / XREP / SHREP in per-layer lane blocks
_QKS = [c["qk"] for c in LAYER_CFGS]                       # [384, 1920, 320]
_QK_ALLOC = [((q + 127) // 128) * 128 for q in _QKS]       # [384, 1920, 384]
WIDE_LANE_OFF = [sum(_QK_ALLOC[:i]) for i in range(len(_QKS))]   # [0, 384, 2304]
WIDE_W = sum(_QK_ALLOC)                                    # 2688 = 21 * 128
WIDE_ROWS = 56
ROW_W2T3, ROW_B2T3, ROW_XREP, ROW_SHREP = 0, 16, 24, 48

VMEM_SPEC = pl.BlockSpec(memory_space=pltpu.MemorySpace.VMEM)


def build_tp_consts():
    """Static (non-trainable) data: slab templates with the 0/1 replication matrices
    pre-placed, the raw structure tensors (folded with w2/b2 at trace time), and the
    bf16 per-q summation matrices (exact 0/1)."""
    narrow_t = np.zeros((NARROW_ROWS, NARROW_W), np.float32)
    gr = np.zeros((GATE_NG, 3 * GATE_NG), np.float32)
    for i in range(GATE_NG):
        gr[i, 3 * i:3 * i + 3] = 1.0
    narrow_t[ROW_GATEREP:ROW_GATEREP + GATE_NG, 0:3 * GATE_NG] = gr

    wide_t = np.zeros((WIDE_ROWS, WIDE_W), np.float32)
    for l, cfg in enumerate(LAYER_CFGS):
        lo, qk = WIDE_LANE_OFF[l], cfg["qk"]
        wide_t[ROW_XREP:ROW_XREP + cfg["in_dim"], lo:lo + qk] = cfg["xrep"]
        wide_t[ROW_SHREP:ROW_SHREP + 4, lo:lo + qk] = cfg["shrep"]

    return dict(
        narrow_template=jnp.asarray(narrow_t),
        wide_template=jnp.asarray(wide_t),
        t3flat=[jnp.asarray(c["t3flat"]) for c in LAYER_CFGS],
        # 0/1 summation matrices are exact in bf16 -> half the DMA bytes
        summats=[jnp.asarray(c["summat"], jnp.bfloat16) for c in LAYER_CFGS],
    )


# ----------------------------------------------------------------------------
# the single fused Pallas kernel
# ----------------------------------------------------------------------------
def make_fused_kernel(cfgs, V, E, B, max_z, num_basis, cutoff):
    def kernel(pos_ref, zc_ref, srcc_ref, tgtc_ref, tgtr_ref, batchr_ref,
               nar_ref, wide_ref, sum0_ref, sum1_ref, sum2_ref, o_ref):
        f32 = jnp.float32
        bf16 = jnp.bfloat16
        sum_refs = [sum0_ref, sum1_ref, sum2_ref]

        pos = pos_ref[...]                                            # [V, 3]

        # --- one-hot gather / scatter matrices built once, reused by every layer ---
        # bf16 one-hots: 0/1 exact, half the resident VMEM footprint.
        # TODO(synk): O(E*V) one-hot gather/scatter is fine for toy graphs but should
        # become a PrefetchScalarGridSpec index_map gather + segment-sorted scatter
        # (tiled over E, 'parallel' grid axis for v7x's 2 TCs) before scaling V/E up.
        iota_ev = lax.broadcasted_iota(jnp.int32, (E, V), 1)
        onehot_src = (iota_ev == srcc_ref[...]).astype(bf16)          # [E, V] gather x[src]
        onehot_tgt_g = (iota_ev == tgtc_ref[...]).astype(bf16)        # [E, V] gather pos[tgt]
        iota_ve = lax.broadcasted_iota(jnp.int32, (V, E), 0)
        onehot_tgt_s = (iota_ve == tgtr_ref[...]).astype(bf16)        # [V, E] scatter-add

        # --- edge geometry: rel_pos, spherical harmonics, Bessel basis (in-kernel) ---
        pos_src = jnp.dot(onehot_src, pos, preferred_element_type=f32)
        pos_tgt = jnp.dot(onehot_tgt_g, pos, preferred_element_type=f32)
        rel = pos_tgt - pos_src                                       # pos[tgt] - pos[src]
        # epsilon guard against zero-length edges (would NaN in the reference)
        d2 = jnp.maximum(jnp.sum(rel * rel, axis=-1, keepdims=True), 1e-24)
        dist = jnp.sqrt(d2)                                           # [E, 1]
        inv_dist = lax.rsqrt(d2)                                      # EUP
        unit = rel * inv_dist

        c1 = math.sqrt(3.0 / (4.0 * math.pi))
        y0 = jnp.full((E, 1), 1.0 / (2.0 * math.sqrt(math.pi)), f32)
        # e3nn 1o order (y, z, x); normalization='integral', normalize=True
        sh = jnp.concatenate(
            [y0, c1 * unit[:, 1:2], c1 * unit[:, 2:3], c1 * unit[:, 0:1]], axis=-1)  # [E, 4]

        # BesselBasisLayer(num_basis, cutoff), Envelope(exponent=5 -> p=6)
        d = dist * (1.0 / cutoff)
        inv_d = cutoff * inv_dist                                     # 1/d, no extra division
        dd = d * d
        d5 = dd * dd * d
        env = (inv_d - 28.0 * d5 + 48.0 * d5 * d - 21.0 * d5 * dd) * (d < 1.0).astype(f32)
        kfreq = (lax.broadcasted_iota(jnp.int32, (1, num_basis), 1) + 1).astype(f32) * math.pi
        basis = env * jnp.sin(kfreq * d)                              # [E, num_basis]

        # --- node embedding (nn.Embedding) via one-hot matmul ---
        iota_vz = lax.broadcasted_iota(jnp.int32, (V, max_z), 1)
        onehot_z = (iota_vz == zc_ref[...]).astype(bf16)
        emb = nar_ref[ROW_EMBED:ROW_EMBED + max_z, 0:cfgs[0]["in_dim"]]
        x = jnp.dot(onehot_z, emb, preferred_element_type=f32)        # [V, irreps_in.dim]

        gate_rep = nar_ref[ROW_GATEREP:ROW_GATEREP + GATE_NG, 0:3 * GATE_NG]

        # --- depth x ConvLayerSE3, node features stay VMEM-resident ---
        for l, cfg in enumerate(cfgs):
            qk, in_dim = cfg["qk"], cfg["in_dim"]
            lo = WIDE_LANE_OFF[l]

            xj = jnp.dot(onehot_src, x, preferred_element_type=f32)   # [E, in_dim] = x[src]

            # RadialNet: Linear(10,16) + SiLU (layer-2 folded into the structure tensor)
            w1 = nar_ref[ROW_W1[l]:ROW_W1[l] + num_basis, 0:RADIAL_HIDDEN]
            b1 = nar_ref[ROW_B1[l]:ROW_B1[l] + 1, 0:RADIAL_HIDDEN]
            h = jnp.dot(basis, w1, preferred_element_type=f32) + b1
            h = h * jax.nn.sigmoid(h)

            # FullyConnectedTensorProduct: 3 wide static matmuls + 1 elementwise multiply
            w2t3 = wide_ref[ROW_W2T3:ROW_W2T3 + RADIAL_HIDDEN, lo:lo + qk]
            b2t3 = wide_ref[ROW_B2T3:ROW_B2T3 + 1, lo:lo + qk]
            wq = jnp.dot(h, w2t3, preferred_element_type=f32) + b2t3           # [E, Q*K]
            xrep = wide_ref[ROW_XREP:ROW_XREP + in_dim, lo:lo + qk]
            shrep = wide_ref[ROW_SHREP:ROW_SHREP + 4, lo:lo + qk]
            oq = (jnp.dot(xj, xrep, preferred_element_type=f32)
                  * jnp.dot(sh, shrep, preferred_element_type=f32))            # [E, Q*K]
            msg = jnp.dot(wq * oq, sum_refs[l][...], preferred_element_type=f32)  # [E, K]

            # message passing aggregation (aggr='add')
            agg = jnp.dot(onehot_tgt_s, msg, preferred_element_type=f32)       # [V, K]

            if cfg["gate"]:
                ns, ng = cfg["n_scalars"], cfg["n_gates"]
                sc = agg[:, :ns]
                gt = agg[:, ns:ns + ng]
                gd = agg[:, ns + ng:]
                sc = SILU_NORM * sc * jax.nn.sigmoid(sc)              # normalize2mom(SiLU)
                gt = SIG_NORM * jax.nn.sigmoid(gt)                    # normalize2mom(Sigmoid)
                gtrep = jnp.dot(gt, gate_rep, preferred_element_type=f32)   # [V, 3*ng]
                x = jnp.concatenate([sc, gd * gtrep], axis=-1)        # [V, ns + 3*ng]
            else:
                x = agg                                               # Identity gate

        # --- dense head fused with global_mean_pool (exact: pooling commutes with the
        #     final Linear) ---
        dout = cfgs[-1]["layer_out_dim"]
        dw1 = nar_ref[ROW_DW1:ROW_DW1 + dout, 0:2 * dout]
        db1 = nar_ref[ROW_DB1:ROW_DB1 + 1, 0:2 * dout]
        dw2 = nar_ref[ROW_DW2:ROW_DW2 + 2 * dout, 0:1]
        db2 = nar_ref[ROW_DB2:ROW_DB2 + 1, 0:1]
        hfeat = jnp.maximum(jnp.dot(x, dw1, preferred_element_type=f32) + db1, 0.0)  # ReLU
        # TODO(synk): nn.Dropout(p=0.1) treated as identity (eval-mode forward).

        iota_bv = lax.broadcasted_iota(jnp.int32, (B, V), 0)
        onehot_b = (iota_bv == batchr_ref[...]).astype(f32)           # [B, V]
        counts = jnp.maximum(jnp.sum(onehot_b, axis=-1, keepdims=True), 1.0)  # empty-graph guard
        pooled = jnp.dot(onehot_b, hfeat, preferred_element_type=f32) / counts  # exact divide
        o_ref[...] = jnp.dot(pooled, dw2, preferred_element_type=f32) + db2     # [B, 1]

    return kernel


def _fused_call(args, V, E, B):
    kernel = make_fused_kernel(LAYER_CFGS, V, E, B, MAX_Z, NUM_BASIS, CUTOFF)
    # No grid: whole graph fits VMEM (tiny V/E). TODO(synk): when batching many graphs,
    # add a leading 'parallel' grid axis so v7x's 2nd TensorCore is used.
    return pl.pallas_call(
        kernel,
        out_shape=jax.ShapeDtypeStruct((B, 1), jnp.float32),
        in_specs=[VMEM_SPEC] * len(args),
        out_specs=VMEM_SPEC,
        compiler_params=pltpu.CompilerParams(vmem_limit_bytes=32 * 1024 * 1024),
    )(*args)


# ----------------------------------------------------------------------------
# parameters (deterministic synthetic init; shapes follow the module __init__)
# ----------------------------------------------------------------------------
def init_params(key):
    keys = jax.random.split(key, 3 + 4 * len(LAYER_CFGS) + 4)
    ki = iter(keys)
    params = {}
    params["embed"] = jax.random.normal(next(ki), (MAX_Z, irreps_dim(IRREPS_IN)), jnp.float32)
    layers = []
    for cfg in LAYER_CFGS:
        layers.append(dict(
            w1=jax.random.normal(next(ki), (NUM_BASIS, RADIAL_HIDDEN), jnp.float32) / math.sqrt(NUM_BASIS),
            b1=jax.random.normal(next(ki), (1, RADIAL_HIDDEN), jnp.float32) * 0.1,
            w2=jax.random.normal(next(ki), (RADIAL_HIDDEN, cfg["nw"]), jnp.float32) / math.sqrt(RADIAL_HIDDEN),
            b2=jax.random.normal(next(ki), (1, cfg["nw"]), jnp.float32) * 0.1,
        ))
    params["layers"] = layers
    dout = irreps_dim(IRREPS_OUT)
    params["dense"] = dict(
        w1=jax.random.normal(next(ki), (dout, 2 * dout), jnp.float32) / math.sqrt(dout),
        b1=jax.random.normal(next(ki), (1, 2 * dout), jnp.float32) * 0.1,
        w2=jax.random.normal(next(ki), (2 * dout, 1), jnp.float32) / math.sqrt(2.0 * dout),
        b2=jax.random.normal(next(ki), (1, 1), jnp.float32) * 0.1,
    )
    return params


# ----------------------------------------------------------------------------
# ConvModel.forward (fully jitted; all real work inside the single Pallas kernel)
# ----------------------------------------------------------------------------
@functools.partial(jax.jit, static_argnames=("num_graphs",))
def conv_model_forward(params, tp_consts, z, pos, src, tgt, batch, num_graphs):
    V = pos.shape[0]
    E = src.shape[0]
    f32 = jnp.float32
    din = irreps_dim(IRREPS_IN)
    dout = irreps_dim(IRREPS_OUT)

    # --- pack all small params/constants into the two pre-padded VMEM slabs ---
    narrow = tp_consts["narrow_template"]
    narrow = narrow.at[ROW_EMBED:ROW_EMBED + MAX_Z, 0:din].set(params["embed"].astype(f32))
    for l, p in enumerate(params["layers"]):
        narrow = narrow.at[ROW_W1[l]:ROW_W1[l] + NUM_BASIS, 0:RADIAL_HIDDEN].set(p["w1"])
        narrow = narrow.at[ROW_B1[l]:ROW_B1[l] + 1, 0:RADIAL_HIDDEN].set(p["b1"])
    d = params["dense"]
    narrow = narrow.at[ROW_DW1:ROW_DW1 + dout, 0:2 * dout].set(d["w1"])
    narrow = narrow.at[ROW_DB1:ROW_DB1 + 1, 0:2 * dout].set(d["b1"])
    narrow = narrow.at[ROW_DW2:ROW_DW2 + 2 * dout, 0:1].set(d["w2"])
    narrow = narrow.at[ROW_DB2:ROW_DB2 + 1, 0:1].set(d["b2"])

    wide = tp_consts["wide_template"]
    for l, (p, cfg) in enumerate(zip(params["layers"], LAYER_CFGS)):
        t3 = tp_consts["t3flat"][l]
        w2t3 = jnp.dot(p["w2"], t3)   # trace-time fold of radial layer 2 into the structure tensor
        b2t3 = jnp.dot(p["b2"], t3)
        lo, qk = WIDE_LANE_OFF[l], cfg["qk"]
        wide = wide.at[ROW_W2T3:ROW_W2T3 + RADIAL_HIDDEN, lo:lo + qk].set(w2t3)
        wide = wide.at[ROW_B2T3:ROW_B2T3 + 1, lo:lo + qk].set(b2t3)

    args = [
        pos.astype(f32),                         # [V, 3]
        z[:, None].astype(jnp.int32),            # [V, 1]
        src[:, None].astype(jnp.int32),          # [E, 1]
        tgt[:, None].astype(jnp.int32),          # [E, 1]
        tgt[None, :].astype(jnp.int32),          # [1, E]
        batch[None, :].astype(jnp.int32),        # [1, V]
        narrow,                                  # [128, 128]  f32 packed slab
        wide,                                    # [56, 2688]  f32 packed slab
    ] + list(tp_consts["summats"])               # 3 x bf16 [Q*K, K]

    out = _fused_call(args, V, E, num_graphs)    # [B, 1]
    return out[:, 0]                             # squeeze -> [B]


# ----------------------------------------------------------------------------
if __name__ == "__main__":
    key = jax.random.PRNGKey(0)
    kp, kz, kparams = jax.random.split(key, 3)

    V, B = 8, 2
    pos = jax.random.normal(kp, (V, 3), jnp.float32)
    z = jax.random.randint(kz, (V,), 0, MAX_Z)
    # two graphs of 4 nodes each, bidirectional ring edges (E = 16)
    src = jnp.array([0, 1, 2, 3, 1, 2, 3, 0, 4, 5, 6, 7, 5, 6, 7, 4], jnp.int32)
    tgt = jnp.array([1, 2, 3, 0, 0, 1, 2, 3, 5, 6, 7, 4, 4, 5, 6, 7], jnp.int32)
    batch = jnp.array([0, 0, 0, 0, 1, 1, 1, 1], jnp.int32)

    params = init_params(kparams)
    tp_consts = build_tp_consts()
    out = conv_model_forward(params, tp_consts, z, pos, src, tgt, batch, B)
    out = jax.block_until_ready(out)

    assert out.shape == (B,)
    assert bool(jnp.all(jnp.isfinite(out)))
    print("KERNEL_OK")
</pallas_src>

<mosaic_0001>
module attributes {stable_mosaic.version = 11 : i64} {
  func.func @kernel(%arg0: memref<8x3xf32, #tpu.memory_space<vmem>>, %arg1: memref<8x1xi32, #tpu.memory_space<vmem>>, %arg2: memref<16x1xi32, #tpu.memory_space<vmem>>, %arg3: memref<16x1xi32, #tpu.memory_space<vmem>>, %arg4: memref<1x16xi32, #tpu.memory_space<vmem>>, %arg5: memref<1x8xi32, #tpu.memory_space<vmem>>, %arg6: memref<128x128xf32, #tpu.memory_space<vmem>>, %arg7: memref<56x2688xf32, #tpu.memory_space<vmem>>, %arg8: memref<384x24xbf16, #tpu.memory_space<vmem>>, %arg9: memref<1920x24xbf16, #tpu.memory_space<vmem>>, %arg10: memref<320x4xbf16, #tpu.memory_space<vmem>>, %arg11: memref<2x1xf32, #tpu.memory_space<vmem>>) attributes {dimension_semantics = [], scalar_prefetch = 0 : i64, scratch_operands = 0 : i64, tpu.core_type = #tpu.core_type<tc>} {
    %c0 = arith.constant 0 : index
    %c0_0 = arith.constant 0 : index
    %0 = vector.load %arg0[%c0, %c0_0] : memref<8x3xf32, #tpu.memory_space<vmem>>, vector<8x3xf32>
    %1 = tpu.iota {dimensions = array<i32: 1>} : vector<16x8xi32>
    %c0_1 = arith.constant 0 : index
    %c0_2 = arith.constant 0 : index
    %2 = vector.load %arg2[%c0_1, %c0_2] : memref<16x1xi32, #tpu.memory_space<vmem>>, vector<16x1xi32>
    %3 = vector.broadcast %2 : vector<16x1xi32> to vector<16x8xi32>
    %4 = arith.cmpi eq, %1, %3 : vector<16x8xi32>
    %5 = arith.extui %4 : vector<16x8xi1> to vector<16x8xi32>
    %6 = arith.sitofp %5 : vector<16x8xi32> to vector<16x8xf32>
    %7 = arith.truncf %6 : vector<16x8xf32> to vector<16x8xbf16>
    %c0_3 = arith.constant 0 : index
    %c0_4 = arith.constant 0 : index
    %8 = vector.load %arg3[%c0_3, %c0_4] : memref<16x1xi32, #tpu.memory_space<vmem>>, vector<16x1xi32>
    %9 = vector.broadcast %8 : vector<16x1xi32> to vector<16x8xi32>
    %10 = arith.cmpi eq, %1, %9 : vector<16x8xi32>
    %11 = arith.extui %10 : vector<16x8xi1> to vector<16x8xi32>
    %12 = arith.sitofp %11 : vector<16x8xi32> to vector<16x8xf32>
    %13 = arith.truncf %12 : vector<16x8xf32> to vector<16x8xbf16>
    %14 = tpu.iota {dimensions = array<i32: 0>} : vector<8x16xi32>
    %c0_5 = arith.constant 0 : index
    %c0_6 = arith.constant 0 : index
    %15 = vector.load %arg4[%c0_5, %c0_6] : memref<1x16xi32, #tpu.memory_space<vmem>>, vector<1x16xi32>
    %16 = vector.broadcast %15 : vector<1x16xi32> to vector<8x16xi32>
    %17 = arith.cmpi eq, %14, %16 : vector<8x16xi32>
    %18 = arith.extui %17 : vector<8x16xi1> to vector<8x16xi32>
    %19 = arith.sitofp %18 : vector<8x16xi32> to vector<8x16xf32>
    %20 = arith.truncf %19 : vector<8x16xf32> to vector<8x16xbf16>
    %cst = arith.constant dense<0.000000e+00> : vector<16x3xf32>
    %21 = tpu.matmul %7, %0, %cst {dimension_numbers = #tpu.dot_dimension_numbers<[1], [0], [0], [1], [0, 0, 1, 1], [], []>} : vector<16x8xbf16>, vector<8x3xf32>, vector<16x3xf32> -> vector<16x3xf32>
    %cst_7 = arith.constant dense<0.000000e+00> : vector<16x3xf32>
    %22 = tpu.matmul %13, %0, %cst_7 {dimension_numbers = #tpu.dot_dimension_numbers<[1], [0], [0], [1], [0, 0, 1, 1], [], []>} : vector<16x8xbf16>, vector<8x3xf32>, vector<16x3xf32> -> vector<16x3xf32>
    %23 = arith.subf %22, %21 : vector<16x3xf32>
    %24 = arith.mulf %23, %23 : vector<16x3xf32>
    %cst_8 = arith.constant dense<0.000000e+00> : vector<16xf32>
    %25 = vector.multi_reduction <add>, %24, %cst_8 [1] : vector<16x3xf32> to vector<16xf32>
    %26 = vector.shape_cast %25 : vector<16xf32> to vector<16x1xf32>
    %cst_9 = arith.constant 1.000000e-24 : f32
    %27 = vector.broadcast %cst_9 : f32 to vector<16x1xf32>
    %28 = arith.maximumf %26, %27 : vector<16x1xf32>
    %29 = math.sqrt %28 : vector<16x1xf32>
    %30 = math.rsqrt %28 : vector<16x1xf32>
    %31 = vector.broadcast %30 : vector<16x1xf32> to vector<16x3xf32>
    %32 = arith.mulf %23, %31 : vector<16x3xf32>
    %cst_10 = arith.constant 0.282094806 : f32
    %33 = vector.broadcast %cst_10 : f32 to vector<16x1xf32>
    %34 = vector.extract_strided_slice %32 {offsets = [0, 1], sizes = [16, 1], strides = [1, 1]} : vector<16x3xf32> to vector<16x1xf32>
    %cst_11 = arith.constant 0.488602519 : f32
    %35 = vector.broadcast %cst_11 : f32 to vector<16x1xf32>
    %36 = arith.mulf %35, %34 : vector<16x1xf32>
    %37 = vector.extract_strided_slice %32 {offsets = [0, 2], sizes = [16, 1], strides = [1, 1]} : vector<16x3xf32> to vector<16x1xf32>
    %cst_12 = arith.constant 0.488602519 : f32
    %38 = vector.broadcast %cst_12 : f32 to vector<16x1xf32>
    %39 = arith.mulf %38, %37 : vector<16x1xf32>
    %40 = vector.extract_strided_slice %32 {offsets = [0, 0], sizes = [16, 1], strides = [1, 1]} : vector<16x3xf32> to vector<16x1xf32>
    %cst_13 = arith.constant 0.488602519 : f32
    %41 = vector.broadcast %cst_13 : f32 to vector<16x1xf32>
    %42 = arith.mulf %41, %40 : vector<16x1xf32>
    %43 = tpu.concatenate %33, %36, %39, %42 in 1 : vector<16x1xf32>, vector<16x1xf32>, vector<16x1xf32>, vector<16x1xf32> -> vector<16x4xf32>
    %cst_14 = arith.constant 2.500000e-01 : f32
    %44 = vector.broadcast %cst_14 : f32 to vector<16x1xf32>
    %45 = arith.mulf %29, %44 : vector<16x1xf32>
    %cst_15 = arith.constant 4.000000e+00 : f32
    %46 = vector.broadcast %cst_15 : f32 to vector<16x1xf32>
    %47 = arith.mulf %46, %30 : vector<16x1xf32>
    %48 = arith.mulf %45, %45 : vector<16x1xf32>
    %49 = arith.mulf %48, %48 : vector<16x1xf32>
    %50 = arith.mulf %49, %45 : vector<16x1xf32>
    %cst_16 = arith.constant 2.800000e+01 : f32
    %51 = vector.broadcast %cst_16 : f32 to vector<16x1xf32>
    %52 = arith.mulf %51, %50 : vector<16x1xf32>
    %53 = arith.subf %47, %52 : vector<16x1xf32>
    %cst_17 = arith.constant 4.800000e+01 : f32
    %54 = vector.broadcast %cst_17 : f32 to vector<16x1xf32>
    %55 = arith.mulf %54, %50 : vector<16x1xf32>
    %56 = arith.mulf %55, %45 : vector<16x1xf32>
    %57 = arith.addf %53, %56 : vector<16x1xf32>
    %cst_18 = arith.constant 2.100000e+01 : f32
    %58 = vector.broadcast %cst_18 : f32 to vector<16x1xf32>
    %59 = arith.mulf %58, %50 : vector<16x1xf32>
    %60 = arith.mulf %59, %48 : vector<16x1xf32>
    %61 = arith.subf %57, %60 : vector<16x1xf32>
    %cst_19 = arith.constant 1.000000e+00 : f32
    %62 = vector.broadcast %cst_19 : f32 to vector<16x1xf32>
    %63 = arith.cmpf olt, %45, %62 : vector<16x1xf32>
    %64 = arith.extui %63 : vector<16x1xi1> to vector<16x1xi32>
    %65 = arith.sitofp %64 : vector<16x1xi32> to vector<16x1xf32>
    %66 = arith.mulf %61, %65 : vector<16x1xf32>
    %67 = tpu.iota {dimensions = array<i32: 1>} : vector<1x10xi32>
    %c1_i32 = arith.constant 1 : i32
    %68 = vector.broadcast %c1_i32 : i32 to vector<1x10xi32>
    %69 = arith.addi %67, %68 : vector<1x10xi32>
    %70 = arith.sitofp %69 : vector<1x10xi32> to vector<1x10xf32>
    %cst_20 = arith.constant 3.14159274 : f32
    %71 = vector.broadcast %cst_20 : f32 to vector<1x10xf32>
    %72 = arith.mulf %70, %71 : vector<1x10xf32>
    %73 = vector.broadcast %72 : vector<1x10xf32> to vector<16x10xf32>
    %74 = vector.broadcast %45 : vector<16x1xf32> to vector<16x10xf32>
    %75 = arith.mulf %73, %74 : vector<16x10xf32>
    %76 = math.sin %75 : vector<16x10xf32>
    %77 = vector.broadcast %66 : vector<16x1xf32> to vector<16x10xf32>
    %78 = arith.mulf %77, %76 : vector<16x10xf32>
    %79 = tpu.iota {dimensions = array<i32: 1>} : vector<8x9xi32>
    %c0_21 = arith.constant 0 : index
    %c0_22 = arith.constant 0 : index
    %80 = vector.load %arg1[%c0_21, %c0_22] : memref<8x1xi32, #tpu.memory_space<vmem>>, vector<8x1xi32>
    %81 = vector.broadcast %80 : vector<8x1xi32> to vector<8x9xi32>
    %82 = arith.cmpi eq, %79, %81 : vector<8x9xi32>
    %83 = arith.extui %82 : vector<8x9xi1> to vector<8x9xi32>
    %84 = arith.sitofp %83 : vector<8x9xi32> to vector<8x9xf32>
    %85 = arith.truncf %84 : vector<8x9xf32> to vector<8x9xbf16>
    %c0_23 = arith.constant 0 : index
    %c0_24 = arith.constant 0 : index
    %86 = vector.load %arg6[%c0_23, %c0_24] : memref<128x128xf32, #tpu.memory_space<vmem>>, vector<9x4xf32>
    %cst_25 = arith.constant dense<0.000000e+00> : vector<8x4xf32>
    %87 = tpu.matmul %85, %86, %cst_25 {dimension_numbers = #tpu.dot_dimension_numbers<[1], [0], [0], [1], [0, 0, 1, 1], [], []>} : vector<8x9xbf16>, vector<9x4xf32>, vector<8x4xf32> -> vector<8x4xf32>
    %c16 = arith.constant 16 : index
    %c0_26 = arith.constant 0 : index
    %88 = vector.load %arg6[%c16, %c0_26] : memref<128x128xf32, #tpu.memory_space<vmem>>, vector<4x12xf32>
    %cst_27 = arith.constant dense<0.000000e+00> : vector<16x4xf32>
    %89 = tpu.matmul %7, %87, %cst_27 {dimension_numbers = #tpu.dot_dimension_numbers<[1], [0], [0], [1], [0, 0, 1, 1], [], []>} : vector<16x8xbf16>, vector<8x4xf32>, vector<16x4xf32> -> vector<16x4xf32>
    %c24 = arith.constant 24 : index
    %c0_28 = arith.constant 0 : index
    %90 = vector.load %arg6[%c24, %c0_28] : memref<128x128xf32, #tpu.memory_space<vmem>>, vector<10x16xf32>
    %c40 = arith.constant 40 : index
    %c0_29 = arith.constant 0 : index
    %91 = vector.load %arg6[%c40, %c0_29] : memref<128x128xf32, #tpu.memory_space<vmem>>, vector<1x16xf32>
    %cst_30 = arith.constant dense<0.000000e+00> : vector<16x16xf32>
    %92 = tpu.matmul %78, %90, %cst_30 {dimension_numbers = #tpu.dot_dimension_numbers<[1], [0], [0], [1], [0, 0, 1, 1], [], []>} : vector<16x10xf32>, vector<10x16xf32>, vector<16x16xf32> -> vector<16x16xf32>
    %93 = vector.broadcast %91 : vector<1x16xf32> to vector<16x16xf32>
    %94 = arith.addf %92, %93 : vector<16x16xf32>
    %95 = arith.negf %94 : vector<16x16xf32>
    %96 = math.exp %95 : vector<16x16xf32>
    %cst_31 = arith.constant 1.000000e+00 : f32
    %97 = vector.broadcast %cst_31 : f32 to vector<16x16xf32>
    %98 = arith.addf %97, %96 : vector<16x16xf32>
    %99 = arith.divf %97, %98 : vector<16x16xf32>
    %100 = arith.mulf %94, %99 : vector<16x16xf32>
    %c0_32 = arith.constant 0 : index
    %c0_33 = arith.constant 0 : index
    %101 = vector.load %arg7[%c0_32, %c0_33] : memref<56x2688xf32, #tpu.memory_space<vmem>>, vector<16x384xf32>
    %c16_34 = arith.constant 16 : index
    %c0_35 = arith.constant 0 : index
    %102 = vector.load %arg7[%c16_34, %c0_35] : memref<56x2688xf32, #tpu.memory_space<vmem>>, vector<1x384xf32>
    %cst_36 = arith.constant dense<0.000000e+00> : vector<16x384xf32>
    %103 = tpu.matmul %100, %101, %cst_36 {dimension_numbers = #tpu.dot_dimension_numbers<[1], [0], [0], [1], [0, 0, 1, 1], [], []>} : vector<16x16xf32>, vector<16x384xf32>, vector<16x384xf32> -> vector<16x384xf32>
    %104 = vector.broadcast %102 : vector<1x384xf32> to vector<16x384xf32>
    %105 = arith.addf %103, %104 : vector<16x384xf32>
    %c24_37 = arith.constant 24 : index
    %c0_38 = arith.constant 0 : index
    %106 = vector.load %arg7[%c24_37, %c0_38] : memref<56x2688xf32, #tpu.memory_space<vmem>>, vector<4x384xf32>
    %c48 = arith.constant 48 : index
    %c0_39 = arith.constant 0 : index
    %107 = vector.load %arg7[%c48, %c0_39] : memref<56x2688xf32, #tpu.memory_space<vmem>>, vector<4x384xf32>
    %cst_40 = arith.constant dense<0.000000e+00> : vector<16x384xf32>
    %108 = tpu.matmul %89, %106, %cst_40 {dimension_numbers = #tpu.dot_dimension_numbers<[1], [0], [0], [1], [0, 0, 1, 1], [], []>} : vector<16x4xf32>, vector<4x384xf32>, vector<16x384xf32> -> vector<16x384xf32>
    %cst_41 = arith.constant dense<0.000000e+00> : vector<16x384xf32>
    %109 = tpu.matmul %43, %107, %cst_41 {dimension_numbers = #tpu.dot_dimension_numbers<[1], [0], [0], [1], [0, 0, 1, 1], [], []>} : vector<16x4xf32>, vector<4x384xf32>, vector<16x384xf32> -> vector<16x384xf32>
    %110 = arith.mulf %108, %109 : vector<16x384xf32>
    %111 = arith.mulf %105, %110 : vector<16x384xf32>
    %c0_42 = arith.constant 0 : index
    %c0_43 = arith.constant 0 : index
    %112 = vector.load %arg8[%c0_42, %c0_43] : memref<384x24xbf16, #tpu.memory_space<vmem>>, vector<384x24xbf16>
    %cst_44 = arith.constant dense<0.000000e+00> : vector<16x24xf32>
    %113 = tpu.matmul %111, %112, %cst_44 {dimension_numbers = #tpu.dot_dimension_numbers<[1], [0], [0], [1], [0, 0, 1, 1], [], []>} : vector<16x384xf32>, vector<384x24xbf16>, vector<16x24xf32> -> vector<16x24xf32>
    %cst_45 = arith.constant dense<0.000000e+00> : vector<8x24xf32>
    %114 = tpu.matmul %20, %113, %cst_45 {dimension_numbers = #tpu.dot_dimension_numbers<[1], [0], [0], [1], [0, 0, 1, 1], [], []>} : vector<8x16xbf16>, vector<16x24xf32>, vector<8x24xf32> -> vector<8x24xf32>
    %115 = vector.extract_strided_slice %114 {offsets = [0, 0], sizes = [8, 8], strides = [1, 1]} : vector<8x24xf32> to vector<8x8xf32>
    %116 = vector.extract_strided_slice %114 {offsets = [0, 8], sizes = [8, 4], strides = [1, 1]} : vector<8x24xf32> to vector<8x4xf32>
    %117 = vector.extract_strided_slice %114 {offsets = [0, 12], sizes = [8, 12], strides = [1, 1]} : vector<8x24xf32> to vector<8x12xf32>
    %cst_46 = arith.constant 1.67653251 : f32
    %118 = vector.broadcast %cst_46 : f32 to vector<8x8xf32>
    %119 = arith.mulf %118, %115 : vector<8x8xf32>
    %120 = arith.negf %115 : vector<8x8xf32>
    %121 = math.exp %120 : vector<8x8xf32>
    %cst_47 = arith.constant 1.000000e+00 : f32
    %122 = vector.broadcast %cst_47 : f32 to vector<8x8xf32>
    %123 = arith.addf %122, %121 : vector<8x8xf32>
    %124 = arith.divf %122, %123 : vector<8x8xf32>
    %125 = arith.mulf %119, %124 : vector<8x8xf32>
    %126 = arith.negf %116 : vector<8x4xf32>
    %127 = math.exp %126 : vector<8x4xf32>
    %cst_48 = arith.constant 1.000000e+00 : f32
    %128 = vector.broadcast %cst_48 : f32 to vector<8x4xf32>
    %129 = arith.addf %128, %127 : vector<8x4xf32>
    %130 = arith.divf %128, %129 : vector<8x4xf32>
    %cst_49 = arith.constant 1.8462286 : f32
    %131 = vector.broadcast %cst_49 : f32 to vector<8x4xf32>
    %132 = arith.mulf %131, %130 : vector<8x4xf32>
    %cst_50 = arith.constant dense<0.000000e+00> : vector<8x12xf32>
    %133 = tpu.matmul %132, %88, %cst_50 {dimension_numbers = #tpu.dot_dimension_numbers<[1], [0], [0], [1], [0, 0, 1, 1], [], []>} : vector<8x4xf32>, vector<4x12xf32>, vector<8x12xf32> -> vector<8x12xf32>
    %134 = arith.mulf %117, %133 : vector<8x12xf32>
    %135 = tpu.concatenate %125, %134 in 1 : vector<8x8xf32>, vector<8x12xf32> -> vector<8x20xf32>
    %cst_51 = arith.constant dense<0.000000e+00> : vector<16x20xf32>
    %136 = tpu.matmul %7, %135, %cst_51 {dimension_numbers = #tpu.dot_dimension_numbers<[1], [0], [0], [1], [0, 0, 1, 1], [], []>} : vector<16x8xbf16>, vector<8x20xf32>, vector<16x20xf32> -> vector<16x20xf32>
    %c48_52 = arith.constant 48 : index
    %c0_53 = arith.constant 0 : index
    %137 = vector.load %arg6[%c48_52, %c0_53] : memref<128x128xf32, #tpu.memory_space<vmem>>, vector<10x16xf32>
    %c64 = arith.constant 64 : index
    %c0_54 = arith.constant 0 : index
    %138 = vector.load %arg6[%c64, %c0_54] : memref<128x128xf32, #tpu.memory_space<vmem>>, vector<1x16xf32>
    %cst_55 = arith.constant dense<0.000000e+00> : vector<16x16xf32>
    %139 = tpu.matmul %78, %137, %cst_55 {dimension_numbers = #tpu.dot_dimension_numbers<[1], [0], [0], [1], [0, 0, 1, 1], [], []>} : vector<16x10xf32>, vector<10x16xf32>, vector<16x16xf32> -> vector<16x16xf32>
    %140 = vector.broadcast %138 : vector<1x16xf32> to vector<16x16xf32>
    %141 = arith.addf %139, %140 : vector<16x16xf32>
    %142 = arith.negf %141 : vector<16x16xf32>
    %143 = math.exp %142 : vector<16x16xf32>
    %cst_56 = arith.constant 1.000000e+00 : f32
    %144 = vector.broadcast %cst_56 : f32 to vector<16x16xf32>
    %145 = arith.addf %144, %143 : vector<16x16xf32>
    %146 = arith.divf %144, %145 : vector<16x16xf32>
    %147 = arith.mulf %141, %146 : vector<16x16xf32>
    %c0_57 = arith.constant 0 : index
    %c384 = arith.constant 384 : index
    %148 = vector.load %arg7[%c0_57, %c384] : memref<56x2688xf32, #tpu.memory_space<vmem>>, vector<16x1920xf32>
    %c16_58 = arith.constant 16 : index
    %c384_59 = arith.constant 384 : index
    %149 = vector.load %arg7[%c16_58, %c384_59] : memref<56x2688xf32, #tpu.memory_space<vmem>>, vector<1x1920xf32>
    %cst_60 = arith.constant dense<0.000000e+00> : vector<16x1920xf32>
    %150 = tpu.matmul %147, %148, %cst_60 {dimension_numbers = #tpu.dot_dimension_numbers<[1], [0], [0], [1], [0, 0, 1, 1], [], []>} : vector<16x16xf32>, vector<16x1920xf32>, vector<16x1920xf32> -> vector<16x1920xf32>
    %151 = vector.broadcast %149 : vector<1x1920xf32> to vector<16x1920xf32>
    %152 = arith.addf %150, %151 : vector<16x1920xf32>
    %c24_61 = arith.constant 24 : index
    %c384_62 = arith.constant 384 : index
    %153 = vector.load %arg7[%c24_61, %c384_62] : memref<56x2688xf32, #tpu.memory_space<vmem>>, vector<20x1920xf32>
    %c48_63 = arith.constant 48 : index
    %c384_64 = arith.constant 384 : index
    %154 = vector.load %arg7[%c48_63, %c384_64] : memref<56x2688xf32, #tpu.memory_space<vmem>>, vector<4x1920xf32>
    %cst_65 = arith.constant dense<0.000000e+00> : vector<16x1920xf32>
    %155 = tpu.matmul %136, %153, %cst_65 {dimension_numbers = #tpu.dot_dimension_numbers<[1], [0], [0], [1], [0, 0, 1, 1], [], []>} : vector<16x20xf32>, vector<20x1920xf32>, vector<16x1920xf32> -> vector<16x1920xf32>
    %cst_66 = arith.constant dense<0.000000e+00> : vector<16x1920xf32>
    %156 = tpu.matmul %43, %154, %cst_66 {dimension_numbers = #tpu.dot_dimension_numbers<[1], [0], [0], [1], [0, 0, 1, 1], [], []>} : vector<16x4xf32>, vector<4x1920xf32>, vector<16x1920xf32> -> vector<16x1920xf32>
    %157 = arith.mulf %155, %156 : vector<16x1920xf32>
    %158 = arith.mulf %152, %157 : vector<16x1920xf32>
    %c0_67 = arith.constant 0 : index
    %c0_68 = arith.constant 0 : index
    %159 = vector.load %arg9[%c0_67, %c0_68] : memref<1920x24xbf16, #tpu.memory_space<vmem>>, vector<1920x24xbf16>
    %cst_69 = arith.constant dense<0.000000e+00> : vector<16x24xf32>
    %160 = tpu.matmul %158, %159, %cst_69 {dimension_numbers = #tpu.dot_dimension_numbers<[1], [0], [0], [1], [0, 0, 1, 1], [], []>} : vector<16x1920xf32>, vector<1920x24xbf16>, vector<16x24xf32> -> vector<16x24xf32>
    %cst_70 = arith.constant dense<0.000000e+00> : vector<8x24xf32>
    %161 = tpu.matmul %20, %160, %cst_70 {dimension_numbers = #tpu.dot_dimension_numbers<[1], [0], [0], [1], [0, 0, 1, 1], [], []>} : vector<8x16xbf16>, vector<16x24xf32>, vector<8x24xf32> -> vector<8x24xf32>
    %162 = vector.extract_strided_slice %161 {offsets = [0, 0], sizes = [8, 8], strides = [1, 1]} : vector<8x24xf32> to vector<8x8xf32>
    %163 = vector.extract_strided_slice %161 {offsets = [0, 8], sizes = [8, 4], strides = [1, 1]} : vector<8x24xf32> to vector<8x4xf32>
    %164 = vector.extract_strided_slice %161 {offsets = [0, 12], sizes = [8, 12], strides = [1, 1]} : vector<8x24xf32> to vector<8x12xf32>
    %cst_71 = arith.constant 1.67653251 : f32
    %165 = vector.broadcast %cst_71 : f32 to vector<8x8xf32>
    %166 = arith.mulf %165, %162 : vector<8x8xf32>
    %167 = arith.negf %162 : vector<8x8xf32>
    %168 = math.exp %167 : vector<8x8xf32>
    %cst_72 = arith.constant 1.000000e+00 : f32
    %169 = vector.broadcast %cst_72 : f32 to vector<8x8xf32>
    %170 = arith.addf %169, %168 : vector<8x8xf32>
    %171 = arith.divf %169, %170 : vector<8x8xf32>
    %172 = arith.mulf %166, %171 : vector<8x8xf32>
    %173 = arith.negf %163 : vector<8x4xf32>
    %174 = math.exp %173 : vector<8x4xf32>
    %cst_73 = arith.constant 1.000000e+00 : f32
    %175 = vector.broadcast %cst_73 : f32 to vector<8x4xf32>
    %176 = arith.addf %175, %174 : vector<8x4xf32>
    %177 = arith.divf %175, %176 : vector<8x4xf32>
    %cst_74 = arith.constant 1.8462286 : f32
    %178 = vector.broadcast %cst_74 : f32 to vector<8x4xf32>
    %179 = arith.mulf %178, %177 : vector<8x4xf32>
    %cst_75 = arith.constant dense<0.000000e+00> : vector<8x12xf32>
    %180 = tpu.matmul %179, %88, %cst_75 {dimension_numbers = #tpu.dot_dimension_numbers<[1], [0], [0], [1], [0, 0, 1, 1], [], []>} : vector<8x4xf32>, vector<4x12xf32>, vector<8x12xf32> -> vector<8x12xf32>
    %181 = arith.mulf %164, %180 : vector<8x12xf32>
    %182 = tpu.concatenate %172, %181 in 1 : vector<8x8xf32>, vector<8x12xf32> -> vector<8x20xf32>
    %cst_76 = arith.constant dense<0.000000e+00> : vector<16x20xf32>
    %183 = tpu.matmul %7, %182, %cst_76 {dimension_numbers = #tpu.dot_dimension_numbers<[1], [0], [0], [1], [0, 0, 1, 1], [], []>} : vector<16x8xbf16>, vector<8x20xf32>, vector<16x20xf32> -> vector<16x20xf32>
    %c72 = arith.constant 72 : index
    %c0_77 = arith.constant 0 : index
    %184 = vector.load %arg6[%c72, %c0_77] : memref<128x128xf32, #tpu.memory_space<vmem>>, vector<10x16xf32>
    %c88 = arith.constant 88 : index
    %c0_78 = arith.constant 0 : index
    %185 = vector.load %arg6[%c88, %c0_78] : memref<128x128xf32, #tpu.memory_space<vmem>>, vector<1x16xf32>
    %cst_79 = arith.constant dense<0.000000e+00> : vector<16x16xf32>
    %186 = tpu.matmul %78, %184, %cst_79 {dimension_numbers = #tpu.dot_dimension_numbers<[1], [0], [0], [1], [0, 0, 1, 1], [], []>} : vector<16x10xf32>, vector<10x16xf32>, vector<16x16xf32> -> vector<16x16xf32>
    %187 = vector.broadcast %185 : vector<1x16xf32> to vector<16x16xf32>
    %188 = arith.addf %186, %187 : vector<16x16xf32>
    %189 = arith.negf %188 : vector<16x16xf32>
    %190 = math.exp %189 : vector<16x16xf32>
    %cst_80 = arith.constant 1.000000e+00 : f32
    %191 = vector.broadcast %cst_80 : f32 to vector<16x16xf32>
    %192 = arith.addf %191, %190 : vector<16x16xf32>
    %193 = arith.divf %191, %192 : vector<16x16xf32>
    %194 = arith.mulf %188, %193 : vector<16x16xf32>
    %c0_81 = arith.constant 0 : index
    %c2304 = arith.constant 2304 : index
    %195 = vector.load %arg7[%c0_81, %c2304] : memref<56x2688xf32, #tpu.memory_space<vmem>>, vector<16x320xf32>
    %c16_82 = arith.constant 16 : index
    %c2304_83 = arith.constant 2304 : index
    %196 = vector.load %arg7[%c16_82, %c2304_83] : memref<56x2688xf32, #tpu.memory_space<vmem>>, vector<1x320xf32>
    %cst_84 = arith.constant dense<0.000000e+00> : vector<16x320xf32>
    %197 = tpu.matmul %194, %195, %cst_84 {dimension_numbers = #tpu.dot_dimension_numbers<[1], [0], [0], [1], [0, 0, 1, 1], [], []>} : vector<16x16xf32>, vector<16x320xf32>, vector<16x320xf32> -> vector<16x320xf32>
    %198 = vector.broadcast %196 : vector<1x320xf32> to vector<16x320xf32>
    %199 = arith.addf %197, %198 : vector<16x320xf32>
    %c24_85 = arith.constant 24 : index
    %c2304_86 = arith.constant 2304 : index
    %200 = vector.load %arg7[%c24_85, %c2304_86] : memref<56x2688xf32, #tpu.memory_space<vmem>>, vector<20x320xf32>
    %c48_87 = arith.constant 48 : index
    %c2304_88 = arith.constant 2304 : index
    %201 = vector.load %arg7[%c48_87, %c2304_88] : memref<56x2688xf32, #tpu.memory_space<vmem>>, vector<4x320xf32>
    %cst_89 = arith.constant dense<0.000000e+00> : vector<16x320xf32>
    %202 = tpu.matmul %183, %200, %cst_89 {dimension_numbers = #tpu.dot_dimension_numbers<[1], [0], [0], [1], [0, 0, 1, 1], [], []>} : vector<16x20xf32>, vector<20x320xf32>, vector<16x320xf32> -> vector<16x320xf32>
    %cst_90 = arith.constant dense<0.000000e+00> : vector<16x320xf32>
    %203 = tpu.matmul %43, %201, %cst_90 {dimension_numbers = #tpu.dot_dimension_numbers<[1], [0], [0], [1], [0, 0, 1, 1], [], []>} : vector<16x4xf32>, vector<4x320xf32>, vector<16x320xf32> -> vector<16x320xf32>
    %204 = arith.mulf %202, %203 : vector<16x320xf32>
    %205 = arith.mulf %199, %204 : vector<16x320xf32>
    %c0_91 = arith.constant 0 : index
    %c0_92 = arith.constant 0 : index
    %206 = vector.load %arg10[%c0_91, %c0_92] : memref<320x4xbf16, #tpu.memory_space<vmem>>, vector<320x4xbf16>
    %cst_93 = arith.constant dense<0.000000e+00> : vector<16x4xf32>
    %207 = tpu.matmul %205, %206, %cst_93 {dimension_numbers = #tpu.dot_dimension_numbers<[1], [0], [0], [1], [0, 0, 1, 1], [], []>} : vector<16x320xf32>, vector<320x4xbf16>, vector<16x4xf32> -> vector<16x4xf32>
    %cst_94 = arith.constant dense<0.000000e+00> : vector<8x4xf32>
    %208 = tpu.matmul %20, %207, %cst_94 {dimension_numbers = #tpu.dot_dimension_numbers<[1], [0], [0], [1], [0, 0, 1, 1], [], []>} : vector<8x16xbf16>, vector<16x4xf32>, vector<8x4xf32> -> vector<8x4xf32>
    %c96 = arith.constant 96 : index
    %c0_95 = arith.constant 0 : index
    %209 = vector.load %arg6[%c96, %c0_95] : memref<128x128xf32, #tpu.memory_space<vmem>>, vector<4x8xf32>
    %c104 = arith.constant 104 : index
    %c0_96 = arith.constant 0 : index
    %210 = vector.load %arg6[%c104, %c0_96] : memref<128x128xf32, #tpu.memory_space<vmem>>, vector<1x8xf32>
    %c112 = arith.constant 112 : index
    %c0_97 = arith.constant 0 : index
    %211 = vector.load %arg6[%c112, %c0_97] : memref<128x128xf32, #tpu.memory_space<vmem>>, vector<8x1xf32>
    %c120 = arith.constant 120 : index
    %c0_98 = arith.constant 0 : index
    %212 = vector.load %arg6[%c120, %c0_98] : memref<128x128xf32, #tpu.memory_space<vmem>>, vector<1x1xf32>
    %cst_99 = arith.constant dense<0.000000e+00> : vector<8x8xf32>
    %213 = tpu.matmul %208, %209, %cst_99 {dimension_numbers = #tpu.dot_dimension_numbers<[1], [0], [0], [1], [0, 0, 1, 1], [], []>} : vector<8x4xf32>, vector<4x8xf32>, vector<8x8xf32> -> vector<8x8xf32>
    %214 = vector.broadcast %210 : vector<1x8xf32> to vector<8x8xf32>
    %215 = arith.addf %213, %214 : vector<8x8xf32>
    %cst_100 = arith.constant 0.000000e+00 : f32
    %216 = vector.broadcast %cst_100 : f32 to vector<8x8xf32>
    %217 = arith.maximumf %215, %216 : vector<8x8xf32>
    %218 = tpu.iota {dimensions = array<i32: 0>} : vector<2x8xi32>
    %c0_101 = arith.constant 0 : index
    %c0_102 = arith.constant 0 : index
    %219 = vector.load %arg5[%c0_101, %c0_102] : memref<1x8xi32, #tpu.memory_space<vmem>>, vector<1x8xi32>
    %220 = vector.broadcast %219 : vector<1x8xi32> to vector<2x8xi32>
    %221 = arith.cmpi eq, %218, %220 : vector<2x8xi32>
    %222 = arith.extui %221 : vector<2x8xi1> to vector<2x8xi32>
    %223 = arith.sitofp %222 : vector<2x8xi32> to vector<2x8xf32>
    %cst_103 = arith.constant dense<0.000000e+00> : vector<2xf32>
    %224 = vector.multi_reduction <add>, %223, %cst_103 [1] : vector<2x8xf32> to vector<2xf32>
    %225 = vector.shape_cast %224 : vector<2xf32> to vector<2x1xf32>
    %cst_104 = arith.constant 1.000000e+00 : f32
    %226 = vector.broadcast %cst_104 : f32 to vector<2x1xf32>
    %227 = arith.maximumf %225, %226 : vector<2x1xf32>
    %cst_105 = arith.constant dense<0.000000e+00> : vector<2x8xf32>
    %228 = tpu.matmul %223, %217, %cst_105 {dimension_numbers = #tpu.dot_dimension_numbers<[1], [0], [0], [1], [0, 0, 1, 1], [], []>} : vector<2x8xf32>, vector<8x8xf32>, vector<2x8xf32> -> vector<2x8xf32>
    %229 = vector.broadcast %227 : vector<2x1xf32> to vector<2x8xf32>
    %230 = arith.divf %228, %229 : vector<2x8xf32>
    %cst_106 = arith.constant dense<0.000000e+00> : vector<2x1xf32>
    %231 = tpu.matmul %230, %211, %cst_106 {dimension_numbers = #tpu.dot_dimension_numbers<[1], [0], [0], [1], [0, 0, 1, 1], [], []>} : vector<2x8xf32>, vector<8x1xf32>, vector<2x1xf32> -> vector<2x1xf32>
    %232 = vector.broadcast %212 : vector<1x1xf32> to vector<2x1xf32>
    %233 = arith.addf %231, %232 : vector<2x1xf32>
    %c0_107 = arith.constant 0 : index
    %c0_108 = arith.constant 0 : index
    %234 = vector.load %arg11[%c0_107, %c0_108] : memref<2x1xf32, #tpu.memory_space<vmem>>, vector<2x1xf32>
    tpu.vector_store %arg11[%c0_107, %c0_108], %233 {strides = array<i32>} : memref<2x1xf32, #tpu.memory_space<vmem>>, vector<2x1xf32>,
    return
  }
}

</mosaic_0001>

<bundles_post_ra>
// kernel: conv_model_forward.1
= control target key start
LH: loop header
LB: loop body
LE: loop exit
PB: predicated region body
PF: predicated region fallthrough
CT: control target
= control target key end

     0   :  { %v8119_v0 = vmov 0   ;;  %v9946_v5 = vmov 0.0   ;;  %vm8121_vm0 = vmmov 0   ;;  %v9944_v8 = vmov 0.0|0.0   ;;  %s8124_s14 = smov 3   ;;  %s8131_s19 = smov 120   ;;  %s9932_s3 = inlined_call_operand.vmem [shape: s32[16,1], index: 3, kind: input, shape index: {}]   ;;  %s9933_s2 = inlined_call_operand.vmem [shape: s32[16,1], index: 2, kind: input, shape index: {}]   ;;  %s9934_s1 = inlined_call_operand.vmem [shape: s32[8,1], index: 1, kind: input, shape index: {}]   ;;  %s9935_s0 = inlined_call_operand.vmem [shape: f32[8,3], index: 0, kind: input, shape index: {}]   ;;  %s9936_s6 = inlined_call_operand.vmem [shape: f32[128,128], index: 6, kind: input, shape index: {}]   ;;  %s9937_s7 = inlined_call_operand.vmem [shape: f32[56,2688], index: 7, kind: input, shape index: {}]   ;;  %s9938_s8 = inlined_call_operand.vmem [shape: bf16[384,24], index: 8, kind: input, shape index: {}]   ;;  %s9939_s4 = inlined_call_operand.vmem [shape: s32[1,16], index: 4, kind: input, shape index: {}]   ;;  %s9940_s9 = inlined_call_operand.vmem [shape: bf16[1920,24], index: 9, kind: input, shape index: {}]   ;;  %s9941_s10 = inlined_call_operand.vmem [shape: bf16[320,4], index: 10, kind: input, shape index: {}]   ;;  %s9942_s5 = inlined_call_operand.vmem [shape: s32[1,8], index: 5, kind: input, shape index: {}]   ;;  %s9943_s11 = inlined_call_operand.vmem [shape: f32[2,1], index: 11, kind: output, shape index: {}]  }
   0x1   :  { %7907 = vset.pattern.permute.xlu1 %v8119_v0  ;;  %7906 = vset.pattern.permute.xlu0 %v8119_v0  ;;  %v57_v1 = vld [vmem:[%s9932_s3] sm:$0xff]  ;;  %v58_v3 = vld [vmem:[%s9932_s3 + $0x8] sm:$0xff]  ;;  %v40_v9 = vlaneseq  ;;  %vm548_vm3 = vcmask 1040384   ;;  %vm83_vm6 = vcmask 64512   ;;  %vm8123_vm7 = vmmov 1   ;;  %v698_v46 = vld [vmem:[%s9936_s6 + $0x18] sm:$0xff] }
   0x2   :  { %v42_v2 = vld [vmem:[%s9933_s2] sm:$0xff]  ;;  %60 = vperm.xlu1 %7907, %v57_v1   ;;  %v43_v4 = vld [vmem:[%s9933_s2 + $0x8] sm:$0xff]  ;;  %7548 = vmatprep.subr.mxu0 %v9946_v5  ;;  %vm7766_vm8 = vmpackc.low %vm548_vm3, %vm8123_vm7  ;;  %vm544_vm10 = vcmask 72704   ;;  %vm240_vm11 = vcmask 23552   ;;  %vm712_vm12 = vcmask 1041408   ;;  %v9964_v45 = vmov 0 }
   0x3   :  { %45 = vperm.xlu0 %7906, %v42_v2   ;;  %7554 = vmatprep.subr.mxu1 %v9946_v5  ;;  %v534_v6 = vld [vmem:[%s9934_s1] sm:$0xff]  ;;  %v8221_v10 = vand.u32 127, %v40_v9  ;;  %v543_v14 = vld [vmem:[%s9936_s6 + $0x8] sm:$0x1]  ;;  %vm8255_vm13 = vmpackc.low %vm712_vm12, %vm8123_vm7  ;;  %s8133_s20 = smov 124  }
   0x4   :  { %v39_v7 = vld [vmem:[%s9935_s0] sm:$0xff]  ;;  %7550 = vmatprep.mubr.msk.bf16.mxu0 %vm8121_vm0, %v9946_v5  ;;  %7556 = vmatprep.mubr.msk.bf16.mxu1 %vm8121_vm0, %v9946_v5  ;;  %v9965_v45 = vsel %vm8255_vm13, 4294967295, %v9964_v45 }
   0x5   :  { %7549 = vmatpush3.msra.mxu0 %v39_v7  ;;  %7555 = vmatpush3.msra.mxu1 %v39_v7  ;;  %v542_v13 = vld [vmem:[%s9936_s6] sm:$0xff]  ;;  %9966 = vst [vmem:[#allocation3_spill] sm:$0xff] %v9965_v45  ;;  %v319_v53 = vadd.s32 1, %v8221_v10 }
   0x6   :  { %63 = vperm.xlu1 %7907, %v58_v3   ;;  %7568 = vmatprep.subr.mxu1 %v9946_v5  ;;  %v7765_v17 = vpack.c.bf16 %v543_v14, %v542_v13  ;;  %v699_v47 = vld [vmem:[%s9936_s6 + $0x20] sm:$0x3] }
   0x7   :  { %48 = vperm.xlu0 %7906, %v43_v4   ;;  %7764 = vmatprep.subr.bf16.mxu0 %v9944_v8  ;;  %v7768_v48 = vpack.c.bf16 %v699_v47, %v698_v46  ;;  %v320_v54 = vcvt.s32.f32 %v319_v53 }
   0x9   :  { %v321_v62 = vmul.f32 3.1415927, %v320_v54 }
   0xb   :  { %536 = vperm.xlu0 %7906, %v534_v6  }
  0x81   :  { %v61_v11 = vpop.permute.xlu1 %60 }
  0x82   :  { %v46_v12 = vpop.permute.xlu0 %45  ;;  %vm65_vm1 = vcmp.eq.s32.totalorder %v8221_v10, %v61_v11 }
  0x83   :  { %vm50_vm2 = vcmp.eq.s32.totalorder %v8221_v10, %v46_v12  ;;  %v6903_v18 = vsel %vm65_vm1, 1.0, %v9946_v5 }
  0x84   :  { %v6901_v19 = vsel %vm50_vm2, 1.0, %v9946_v5 }
  0x85   :  { %v64_v15 = vpop.permute.xlu1 %63 }
  0x86   :  { %v49_v16 = vpop.permute.xlu0 %48  ;;  %vm66_vm4 = vcmp.eq.s32.totalorder %v8221_v10, %v64_v15 }
  0x87   :  { %vm51_vm5 = vcmp.eq.s32.totalorder %v8221_v10, %v49_v16  ;;  %v6904_v20 = vsel %vm66_vm4, 1.0, %v9946_v5 }
  0x88   :  { %v6902_v21 = vsel %vm51_vm5, 1.0, %v9946_v5  ;;  %v71_v22 = vpack.c.bf16 %v6904_v20, %v6903_v18 }
  0x89   :  { %v8237_v23 = vpack.c.bf16 %v6902_v21, %v6901_v19 }
  0x8a   :  { %v537_v24 = vpop.permute.xlu0 %536  ;;  %7557 = vmatmul.mubr.msk.bf16.vlgmr.msra.gmra.mrb[0].mxu1 %vm83_vm6, %v71_v22 }
  0x8b   :  { %9963 = vst [vmem:[#allocation2_spill] sm:$0xff] %v8237_v23  ;;  %vm538_vm9 = vcmp.eq.s32.totalorder %v8221_v10, %v537_v24  ;;  %7551 = vmatmul.mubr.msk.bf16.vlgmr.msra.gmra.mrb[0].mxu0 %vm83_vm6, %v8237_v23  ;;  %7570 = vmatprep.mubr.msk.bf16.mxu1 %vm8121_vm0, %v9946_v5 }
  0x8c   :  { %7767 = vmatpush3.bf16.msk.msra.mxu0 %vm7766_vm8, %v7765_v17  ;;  %7564 = vmatprep.mubr.msk.bf16.mxu0 %vm8121_vm0, %v9946_v5  ;;  %v6919_v25 = vsel %vm538_vm9, 1.0, %v9946_v5 }
  0x8d   :  { %v541_v26 = vpack.c.bf16 %v6919_v25, %v6919_v25  ;;  %7770 = vmatprep.subr.msk.bf16.mxu0 %vm8255_vm13, %v7768_v48 }
  0x93   :  { %7565 = vmatmul.mubr.msk.bf16.vlgmr.msra.gmra.mrb[4].mxu0 %vm544_vm10, %v541_v26 }
  0x94   :  { %7773 = vmatpush3.bf16.msk.msra.mxu0 %vm8255_vm13, %v7768_v48 }
 0x15d   :  { %v229_v28 = vpop.f32.mrb[0].mxu1 }
 0x15e   :  { %v153_v27 = vpop.f32.mrb[0].mxu0  ;;  %v7558_v31 = vpop.f32.mrb[1].mxu1 }
 0x15f   :  { %v236_v29 = vsub.f32 %v229_v28, %v153_v27  ;;  %v7552_v30 = vpop.f32.mrb[1].mxu0  ;;  %v232_v33 = vpop.f32.mrb[2].mxu1 }
 0x160   :  { %v156_v32 = vpop.f32.mrb[2].mxu0  ;;  %v7559_v36 = vpop.f32.mrb[3].mxu1 }
 0x161   :  { %v237_v34 = vsub.f32 %v232_v33, %v156_v32  ;;  %v7553_v35 = vpop.f32.mrb[3].mxu0  ;;  %v238_v37 = vmul.f32 %v236_v29, %v236_v29 }
 0x163   :  { %v241_v38 = vsel %vm240_vm11, %v238_v37, 0.0  ;;  %v239_v39 = vmul.f32 %v237_v34, %v237_v34 }
 0x164   :  { %242 = vadd.xlane.f32.xlu1 %v241_v38 }
 0x165   :  { %v244_v40 = vsel %vm240_vm11, %v239_v39, 0.0 }
 0x166   :  { %245 = vadd.xlane.f32.xlu0 %v244_v40  ;;  %v618_v41 = vpop.f32.mrb[4].mxu0 }
 0x167   :  { %v7566_v42 = vpop.f32.mrb[5].mxu0  ;;  %7569 = vmatpush3.msra.mxu1 %v618_v41 }
 0x168   :  { %v621_v43 = vpop.f32.mrb[6].mxu0  ;;  %7571 = vmatmul.mubr.msk.bf16.vlgmr.msra.gmra.mrb[4].mxu1 %vm83_vm6, %v8237_v23 }
 0x169   :  { %v7567_v44 = vpop.f32.mrb[7].mxu0  ;;  %900 = vmatprep.mubr.f32.mxu1 %v9946_v5 }
 0x1f1   :  { %v243_v49 = vpop.xlane.xlu1 %242 }
 0x1f2   :  { %v247_v50 = vmax.f32 %v243_v49, 1e-24 }
 0x1f3   :  { %v246_v51 = vpop.xlane.xlu0 %245 }
 0x1f4   :  { %8072 = vrsqrt.f32 %v247_v50  ;;  %v248_v52 = vmax.f32 %v246_v51, 1e-24  ;;  %vm251_vm14 = vcmp.eq.f32.partialorder %v247_v50, inf  ;;  %v254_v58 = vand.u32 2147483648, %v247_v50 }
 0x1f5   :  { %vm253_vm15 = vcmp.eq.f32.partialorder %v247_v50, 0.0 }
 0x1f6   :  { %8074 = vrsqrt.f32 %v248_v52  ;;  %vm258_vm1 = vcmp.eq.f32.partialorder %v248_v52, inf  ;;  %v261_v3 = vand.u32 2147483648, %v248_v52  ;;  %vm260_vm2 = vcmp.eq.f32.partialorder %v248_v52, 0.0 }
 0x1fe   :  { %v8073_v55 = vpop.eup %8072 }
 0x1ff   :  { %v250_v56 = vmul.f32 %v8073_v55, %v247_v50  ;;  %v265_v57 = vmul.f32 %v8073_v55, %v236_v29  ;;  %v287_v20 = vmul.f32 4.0, %v8073_v55 }
 0x200   :  { %v8075_v59 = vpop.eup %8074 }
 0x201   :  { %v252_v60 = vsel %vm251_vm14, %v247_v50, %v250_v56  ;;  %v8270_v61 = vmul.f32 0.48860252, %v265_v57  ;;  %v257_v0 = vmul.f32 %v8075_v59, %v248_v52  ;;  %v266_v1 = vmul.f32 %v8075_v59, %v237_v34 }
 0x202   :  { %v255_v63 = vsel %vm253_vm15, %v254_v58, %v252_v60  ;;  %v288_v31 = vmul.f32 4.0, %v8075_v59  ;;  %v8125_v58 = vmov 683565275   ;;  %v8126_v60 = vmov 2475754826  }
 0x203   :  { %v285_v2 = vmul.f32 0.25, %v255_v63  ;;  %271 = vrot.lane.b32.xlu0 %v8270_v61, %s8124_s14  ;;  %v259_v4 = vsel %vm258_vm1, %v248_v52, %v257_v0  ;;  %v8273_v6 = vmul.f32 0.48860252, %v266_v1  ;;  %v8127_v63 = vmov 2131351028  }
 0x204   :  { %v262_v7 = vsel %vm260_vm2, %v261_v3, %v259_v4  ;;  %v8128_v1 = vmov 2102212464   ;;  %v8129_v3 = vmov 920167782  }
 0x205   :  { %v289_v10 = vmul.f32 %v285_v2, %v285_v2  ;;  %v8275_v11 = vmul.f32 %v321_v62, %v285_v2  ;;  %v286_v12 = vmul.f32 0.25, %v262_v7  ;;  %273 = vrot.lane.b32.xlu1 %v8273_v6, %s8124_s14  ;;  %vm311_vm3 = vcmp.lt.f32.partialorder %v285_v2, 1.0 }
 0x206   :  { %v6909_v29 = vsel %vm311_vm3, 1.0, %v9946_v5 }
 0x207   :  { %v291_v13 = vmul.f32 %v289_v10, %v289_v10  ;;  %v324_v14 = vand.u32 2147483647, %v8275_v11  ;;  %v327_v15 = vand.u32 2139095040, %v8275_v11  ;;  %v8280_v16 = vmul.f32 %v321_v62, %v286_v12 }
 0x208   :  { %v290_v17 = vmul.f32 %v286_v12, %v286_v12  ;;  %vm312_vm4 = vcmp.lt.f32.partialorder %v286_v12, 1.0 }
 0x209   :  { %v293_v18 = vmul.f32 %v291_v13, %v285_v2  ;;  %v328_v19 = vshrl.u32 %v327_v15, 23  ;;  %v331_v21 = vand.u32 8388607, %v324_v14  ;;  %v431_v22 = vand.u32 2139095040, %v8280_v16 }
 0x20a   :  { %v292_v24 = vmul.f32 %v290_v17, %v290_v17  ;;  %v6910_v51 = vsel %vm312_vm4, 1.0, %v9946_v5  ;;  %v428_v55 = vand.u32 2147483647, %v8280_v16 }
 0x20b   :  { %v295_v25 = vmul.f32 28.0, %v293_v18  ;;  %v299_v26 = vmul.f32 48.0, %v293_v18  ;;  %v305_v27 = vmul.f32 21.0, %v293_v18  ;;  %v6911_v28 = vadd.s32 4294967169, %v328_v19 }
 0x20c   :  { %v432_v30 = vshrl.u32 %v431_v22, 23  ;;  %v294_v32 = vmul.f32 %v292_v24, %v286_v12  ;;  %v332_v36 = vor.u32 8388608, %v331_v21 }
 0x20d   :  { %v297_v33 = vsub.f32 %v287_v20, %v295_v25  ;;  %v301_v34 = vmul.f32 %v299_v26, %v285_v2  ;;  %v334_v35 = vadd.s32 1, %v6911_v28  ;;  %v307_v41 = vmul.f32 %v305_v27, %v289_v10 }
 0x20e   :  { %v6915_v37 = vadd.s32 4294967169, %v432_v30  ;;  %v296_v38 = vmul.f32 28.0, %v294_v32  ;;  %v300_v39 = vmul.f32 48.0, %v294_v32  ;;  %v306_v42 = vmul.f32 21.0, %v294_v32 }
 0x20f   :  { %v303_v40 = vadd.f32 %v301_v34, %v297_v33  ;;  %vm335_vm5 = vcmp.gt.s32.totalorder %v334_v35, 0  ;;  %v8288_v52 = vshll.u32 %v332_v36, 8 }
 0x210   :  { %v336_v43 = vsel %vm335_vm5, %v334_v35, 0  ;;  %v438_v44 = vadd.s32 1, %v6915_v37  ;;  %v298_v46 = vsub.f32 %v288_v31, %v296_v38  ;;  %v302_v47 = vmul.f32 %v300_v39, %v286_v12 }
 0x211   :  { %v309_v48 = vsub.f32 %v303_v40, %v307_v41  ;;  %v337_v49 = vshrl.u32 %v336_v43, 5  ;;  %v338_v50 = vand.u32 31, %v336_v43  ;;  %v308_v54 = vmul.f32 %v306_v42, %v290_v17 }
 0x212   :  { %v304_v53 = vadd.f32 %v302_v47, %v298_v46  ;;  %vm439_vm7 = vcmp.gt.s32.totalorder %v438_v44, 0  ;;  %v8130_v17 = vmov 1326507024  }
 0x213   :  { %v8291_v56 = vmul.f32 %v6909_v29, %v309_v48  ;;  %v339_v57 = vsub.s32 32, %v338_v50  ;;  %v341_v59 = vshll.u32 %v8125_v58, %v338_v50  ;;  %v344_v62 = vshll.u32 %v8126_v60, %v338_v50 }
 0x214   :  { %v347_v0 = vshll.u32 %v8127_v63, %v338_v50  ;;  %v350_v2 = vshll.u32 %v8128_v1, %v338_v50  ;;  %v353_v4 = vshll.u32 %v8129_v3, %v338_v50  ;;  %vm356_vm8 = vcmp.lt.s32.totalorder %v337_v49, 1 }
 0x215   :  { %v342_v7 = vshrl.u32 %v8126_v60, %v339_v57  ;;  %v345_v10 = vshrl.u32 %v8127_v63, %v339_v57  ;;  %v348_v12 = vshrl.u32 %v8128_v1, %v339_v57  ;;  %v340_v13 = vshrl.u32 %v8125_v58, %v339_v57 }
 0x216   :  { %v351_v15 = vshrl.u32 %v8129_v3, %v339_v57  ;;  %v354_v18 = vshrl.u32 %v8130_v17, %v339_v57  ;;  %vm357_vm9 = vcmp.lt.s32.totalorder %v337_v49, 2  ;;  %vm359_vm10 = vcmp.lt.s32.totalorder %v337_v49, 4 }
 0x217   :  { %v343_v19 = vor.u32 %v342_v7, %v341_v59  ;;  %v346_v20 = vor.u32 %v345_v10, %v344_v62  ;;  %v349_v21 = vor.u32 %v348_v12, %v347_v0  ;;  %v440_v25 = vsel %vm439_vm7, %v438_v44, 0 }
 0x218   :  { %v352_v22 = vor.u32 %v351_v15, %v350_v2  ;;  %v355_v24 = vor.u32 %v354_v18, %v353_v4  ;;  %v310_v26 = vsub.f32 %v304_v53, %v308_v54  ;;  %vm358_vm12 = vcmp.lt.s32.totalorder %v337_v49, 3 }
 0x219   :  { %v361_v27 = vsel %vm359_vm10, %v349_v21, 2102212464  ;;  %v364_v28 = vsel %vm356_vm8, %v343_v19, %v346_v20  ;;  %v368_v29 = vsel %vm356_vm8, %v346_v20, %v349_v21  ;;  %v360_v30 = vsel %vm356_vm8, %v340_v13, %v343_v19 }
 0x21a   :  { %v365_v31 = vsel %vm359_vm10, %v352_v22, 920167782  ;;  %v369_v32 = vsel %vm359_vm10, %v355_v24, 1326507024  ;;  %v442_v33 = vand.u32 31, %v440_v25  ;;  %v362_v34 = vsel %vm358_vm12, %v346_v20, %v361_v27 }
 0x21b   :  { %v366_v35 = vsel %vm358_vm12, %v349_v21, %v365_v31  ;;  %v370_v36 = vsel %vm358_vm12, %v352_v22, %v369_v32  ;;  %v8299_v37 = vmul.f32 %v6910_v51, %v310_v26  ;;  %v363_v46 = vsel %vm357_vm9, %v360_v30, %v362_v34 }
 0x21c   :  { %v367_v38 = vsel %vm357_vm9, %v364_v28, %v366_v35  ;;  %v371_v39 = vsel %vm357_vm9, %v368_v29, %v370_v36  ;;  %v443_v40 = vsub.s32 32, %v442_v33  ;;  %v435_v48 = vand.u32 8388607, %v428_v55 }
 0x21d   :  { %v8304_v41 = vmul.u32.u64.low %v8288_v52, %v371_v39  ;;  %v8305_v42 = vmul.u32.u64.high %v8288_v52, %v371_v39, %v8304_v41  ;;  %v8308_v43 = vmul.u32.u64.low %v8288_v52, %v367_v38  ;;  %v8309_v44 = vmul.u32.u64.high %v8288_v52, %v367_v38, %v8308_v43 }
 0x21e   :  { %v458_v47 = vshrl.u32 %v8130_v17, %v443_v40  ;;  %v441_v50 = vshrl.u32 %v440_v25, 5  ;;  %v445_v51 = vshll.u32 %v8125_v58, %v442_v33  ;;  %v446_v53 = vshrl.u32 %v8126_v60, %v443_v40 }
 0x21f   :  { %v448_v54 = vshll.u32 %v8126_v60, %v442_v33  ;;  %v449_v57 = vshrl.u32 %v8127_v63, %v443_v40  ;;  %v451_v59 = vshll.u32 %v8127_v63, %v442_v33  ;;  %v452_v62 = vshrl.u32 %v8128_v1, %v443_v40 }
 0x220   :  { %v454_v0 = vshll.u32 %v8128_v1, %v442_v33  ;;  %v455_v2 = vshrl.u32 %v8129_v3, %v443_v40  ;;  %v379_v4 = vmul.u32 %v8288_v52, %v363_v46  ;;  %vm381_vm14 = vc.u32 %v8305_v42, %v8308_v43 }
 0x221   :  { %v382_v49 = vadd.s32 1, %v8309_v44  ;;  %v447_v7 = vor.u32 %v446_v53, %v445_v51  ;;  %v450_v10 = vor.u32 %v449_v57, %v448_v54  ;;  %v453_v12 = vor.u32 %v452_v62, %v451_v59 }
 0x222   :  { %v456_v13 = vor.u32 %v455_v2, %v454_v0  ;;  %v457_v15 = vshll.u32 %v8129_v3, %v442_v33  ;;  %v436_v60 = vor.u32 8388608, %v435_v48  ;;  %v444_v63 = vshrl.u32 %v8125_v58, %v443_v40 }
 0x223   :  { %v383_v17 = vsel %vm381_vm14, %v382_v49, %v8309_v44  ;;  %vm460_vm15 = vcmp.lt.s32.totalorder %v441_v50, 1  ;;  %vm462_vm1 = vcmp.lt.s32.totalorder %v441_v50, 3  ;;  %vm463_vm2 = vcmp.lt.s32.totalorder %v441_v50, 4 }
 0x224   :  { %v384_v1 = vadd.s32 %v383_v17, %v379_v4  ;;  %v459_v18 = vor.u32 %v458_v47, %v457_v15  ;;  %v465_v52 = vsel %vm463_vm2, %v453_v12, 2102212464  ;;  %v468_v19 = vsel %vm460_vm15, %v447_v7, %v450_v10 }
 0x225   :  { %v469_v20 = vsel %vm463_vm2, %v456_v13, 920167782  ;;  %v472_v21 = vsel %vm460_vm15, %v450_v10, %v453_v12  ;;  %vm461_vm3 = vcmp.lt.s32.totalorder %v441_v50, 2  ;;  %v476_v27 = vshll.u32 %v436_v60, 8 }
 0x226   :  { %v385_v22 = vadd.s32 536870912, %v384_v1  ;;  %v470_v24 = vsel %vm462_vm1, %v453_v12, %v469_v20  ;;  %v473_v3 = vsel %vm463_vm2, %v459_v18, 1326507024  ;;  %v464_v58 = vsel %vm460_vm15, %v444_v63, %v447_v7 }
 0x227   :  { %v471_v25 = vsel %vm461_vm3, %v468_v19, %v470_v24  ;;  %v474_v26 = vsel %vm462_vm1, %v456_v13, %v473_v3  ;;  %v466_v29 = vsel %vm462_vm1, %v450_v10, %v465_v52  ;;  %v380_v59 = vadd.s32 %v8308_v43, %v8305_v42 }
 0x228   :  { %v386_v28 = vshrl.u32 %v385_v22, 30  ;;  %v475_v30 = vsel %vm461_vm3, %v472_v21, %v474_v26  ;;  %v8328_v33 = vmul.u32.u64.low %v476_v27, %v471_v25  ;;  %v8329_v34 = vmul.u32.u64.high %v476_v27, %v471_v25, %v8328_v33 }
 0x229   :  { %v8325_v31 = vmul.u32.u64.low %v476_v27, %v475_v30  ;;  %v8326_v32 = vmul.u32.u64.high %v476_v27, %v475_v30, %v8325_v31  ;;  %v467_v36 = vsel %vm461_vm3, %v464_v58, %v466_v29  ;;  %vm326_vm8 = vcmp.lt.s32.totalorder %v8275_v11, 0 }
 0x22a   :  { %v387_v35 = vshll.u32 %v386_v28, 30  ;;  %v486_v39 = vadd.s32 1, %v8329_v34  ;;  %v483_v41 = vmul.u32 %v476_v27, %v467_v36  ;;  %v410_v21 = vsub.s32 4, %v386_v28 }
 0x22b   :  { %vm485_vm4 = vc.u32 %v8326_v32, %v8328_v33  ;;  %v484_v3 = vadd.s32 %v8328_v33, %v8326_v32  ;;  %vm325_vm9 = vcmp.le.f32.partialorder %v324_v14, 0.7853982  ;;  %vm430_vm10 = vcmp.lt.s32.totalorder %v8280_v16, 0 }
 0x22c   :  { %v388_v38 = vsub.s32 %v384_v1, %v387_v35  ;;  %v487_v44 = vsel %vm485_vm4, %v486_v39, %v8329_v34  ;;  %v411_v58 = vsel %vm326_vm8, %v410_v21, %v386_v28  ;;  %vm8348_vm12 = vcmp.le.f32.partialorder %v428_v55, 0.7853982 }
 0x22d   :  { %v488_v47 = vadd.s32 %v487_v44, %v483_v41  ;;  %v413_v35 = vsel %vm325_vm9, 0, %v411_v58  ;;  %vm416_vm2 = vweird.f32 %v8275_v11  ;;  %vm705_vm3 = vcmask 80896  }
 0x22e   :  { %v390_v40 = vsub.s32 0, %v388_v38 }
 0x22f   :  { %v489_v50 = vadd.s32 536870912, %v488_v47 }
 0x230   :  { %v6912_v46 = vmin.u32 %v390_v40, %v388_v38  ;;  %v417_v40 = vadd.s32 3, %v413_v35 }
 0x231   :  { %v490_v53 = vshrl.u32 %v489_v50, 30  ;;  %v7908_v50 = vld [vmem:[%s9938_s8 + $0x40] sm:$0xff]  }
 0x232   :  { %v392_v48 = vclz %v6912_v46  ;;  %v418_v46 = vand.u32 3, %v417_v40 }
 0x233   :  { %v491_v57 = vshll.u32 %v490_v53, 30  ;;  %v514_v44 = vsub.s32 4, %v490_v53 }
 0x234   :  { %v6913_v51 = vadd.s32 4294967294, %v392_v48  ;;  %vm423_vm14 = vcmp.eq.s32.totalorder %v418_v46, 2  ;;  %vm420_vm15 = vcmp.eq.s32.totalorder %v418_v46, 0  ;;  %vm419_vm1 = vcmp.lt.s32.totalorder %v418_v46, 2  ;;  %v993_v46 = vld [vmem:[%s9937_s7 + $0x400] sm:$0xf] }
 0x235   :  { %v492_v2 = vsub.s32 %v488_v47, %v491_v57 }
 0x236   :  { %vm6914_vm5 = vcmp.lt.s32.totalorder %v6913_v51, 0 }
 0x237   :  { %v395_v54 = vsel %vm6914_vm5, 0, %v6913_v51  ;;  %v494_v12 = vsub.s32 0, %v492_v2 }
 0x238   :  { %v396_v62 = vsub.s32 32, %v395_v54  ;;  %v400_v0 = vsub.s32 4294967266, %v395_v54  ;;  %v397_v4 = vshll.u32 %v388_v38, %v395_v54  ;;  %v515_v54 = vsel %vm430_vm10, %v514_v44, %v490_v53  ;;  %v992_v44 = vld [vmem:[%s9937_s7 + $0x3f8] sm:$0xf] }
 0x239   :  { %v6916_v63 = vmin.u32 %v494_v12, %v492_v2 }
 0x23a   :  { %v398_v49 = vshrl.u32 %v380_v59, %v396_v62  ;;  %v401_v7 = vadd.s32 127, %v400_v0 }
 0x23b   :  { %v8336_v10 = vpop.f32.mrb[4].mxu1  ;;  %v496_v52 = vclz %v6916_v63 }
 0x23c   :  { %v7572_v13 = vpop.f32.mrb[5].mxu1  ;;  %v399_v15 = vor.u32 %v398_v49, %v397_v4  ;;  %v402_v17 = vshll.u32 %v401_v7, 23 }
 0x23d   :  { %v8338_v60 = vpop.f32.mrb[6].mxu1  ;;  %v6917_v43 = vadd.s32 4294967294, %v496_v52  ;;  %v806_v52 = vld [vmem:[%s9937_s7 + $0x8] sm:$0xff] }
 0x23e   :  { %v7573_v1 = vpop.f32.mrb[7].mxu1  ;;  %v403_v18 = vor.u32 4788187, %v402_v17  ;;  %v406_v42 = vcvt.s32.f32 %v399_v15 }
 0x23f   :  { %vm6918_vm7 = vcmp.lt.s32.totalorder %v6917_v43, 0 }
 0x240   :  { %v404_v19 = vand.u32 2147483647, %v403_v18  ;;  %v499_v24 = vsel %vm6918_vm7, 0, %v6917_v43  ;;  %v807_v43 = vld [vmem:[%s9937_s7 + $0x10] sm:$0xff] }
 0x241   :  { %v500_v25 = vsub.s32 32, %v499_v24  ;;  %v504_v26 = vsub.s32 4294967266, %v499_v24  ;;  %v501_v30 = vshll.u32 %v492_v2, %v499_v24  ;;  %v517_v2 = vsel %vm8348_vm12, 0, %v515_v54  ;;  %v990_v24 = vld [vmem:[%s9937_s7 + $0x208] sm:$0xf] }
 0x242   :  { %v407_v20 = vmul.f32 %v406_v42, %v404_v19  ;;  %v521_v49 = vadd.s32 3, %v517_v2  ;;  %v809_v19 = vld [vmem:[%s9937_s7 + $0xb0] sm:$0xff] }
 0x243   :  { %v502_v31 = vshrl.u32 %v484_v3, %v500_v25  ;;  %v505_v34 = vadd.s32 127, %v504_v26  ;;  %v7774_v42 = vpack.c.bf16 %v809_v19, %v806_v52  ;;  %v989_v3 = vld [vmem:[%s9937_s7 + $0x200] sm:$0xf]  ;;  %v6923_v25 = vld [vmem:[%s9936_s6 + $0x28] ss:$0 sm:$0xff]  ;;  %v7914_v2 = vld [vmem:[%s9938_s8 + $0x50] sm:$0xff]  }
 0x244   :  { %v408_v22 = vxor.u32 2147483648, %v407_v20  ;;  %v522_v7 = vand.u32 3, %v521_v49  ;;  %v7917_v49 = vld [vmem:[%s9938_s8 + $0x58] sm:$0xff]   ;;  %v7927_v52 = vld [vmem:[%s9938_s8 + $0x30] sm:$0xff]  }
 0x245   :  { %v503_v36 = vor.u32 %v502_v31, %v501_v30  ;;  %v506_v38 = vshll.u32 %v505_v34, 23  ;;  %7775 = vmatprep.subr.bf16.mxu1 %v7774_v42  ;;  %v7928_v19 = vld [vmem:[%s9938_s8 + $0xb0] sm:$0xff]   ;;  %v7930_v42 = vld [vmem:[%s9938_s8 + $0x38] sm:$0xff]  }
 0x246   :  { %v409_v27 = vsel %vm326_vm8, %v408_v22, %v407_v20  ;;  %vm527_vm4 = vcmp.eq.s32.totalorder %v522_v7, 2  ;;  %vm524_vm5 = vcmp.eq.s32.totalorder %v522_v7, 0  ;;  %vm523_vm7 = vcmp.lt.s32.totalorder %v522_v7, 2  ;;  %v810_v20 = vld [vmem:[%s9937_s7 + $0xb8] sm:$0xff] }
 0x247   :  { %v412_v29 = vsel %vm325_vm9, %v8275_v11, %v409_v27  ;;  %v507_v39 = vor.u32 4788187, %v506_v38  ;;  %v510_v33 = vcvt.s32.f32 %v503_v36  ;;  %vm520_vm8 = vweird.f32 %v8280_v16  ;;  %v7918_v7 = vld [vmem:[%s9938_s8 + $0x18] sm:$0xff]  }
 0x248   :  { %8076 = vcosq.f32 %v412_v29  ;;  %v7778_v22 = vpack.c.bf16 %v810_v20, %v807_v43  ;;  %vm1001_vm9 = vcmask 1043456   ;;  %v8530_v20 = vshrl.u32 %v40_v9, 7 }
 0x249   :  { %8078 = vsinq.f32 %v412_v29  ;;  %v508_v32 = vand.u32 2147483647, %v507_v39 }
 0x24a   :  { %7779 = vmatprep.subr.bf16.mxu0 %v7778_v22 }
 0x24b   :  { %v511_v41 = vmul.f32 %v510_v33, %v508_v32 }
 0x24d   :  { %v512_v14 = vxor.u32 2147483648, %v511_v41 }
 0x24f   :  { %v513_v51 = vsel %vm430_vm10, %v512_v14, %v511_v41  ;;  %vm829_vm10 = vcmask 130048   ;;  %v988_v41 = vld [vmem:[%s9937_s7 + $0x1f8] sm:$0xf]  ;;  %v7910_v14 = vld [vmem:[%s9938_s8 + $0x80] sm:$0xff]  }
 0x250   :  { %v516_v59 = vsel %vm8348_vm12, %v8280_v16, %v513_v51  ;;  %v805_v16 = vld [vmem:[%s9937_s7] sm:$0xff]  ;;  %vm277_vm12 = vcmask 7168  }
 0x251   :  { %8080 = vcosq.f32 %v516_v59 }
 0x252   :  { %v8077_v47 = vpop.eup %8076  ;;  %8082 = vsinq.f32 %v516_v59 }
 0x253   :  { %v8079_v28 = vpop.eup %8078  ;;  %v424_v48 = vxor.u32 2147483648, %v8077_v47 }
 0x254   :  { %v421_v57 = vxor.u32 2147483648, %v8079_v28 }
 0x255   :  { %v425_v62 = vsel %vm423_vm14, %v424_v48, %v8079_v28  ;;  %vm994_vm14 = vcmask 31744   ;;  %v991_v48 = vld [vmem:[%s9937_s7 + $0x3f0] sm:$0xf] }
 0x256   :  { %v422_v0 = vsel %vm420_vm15, %v8077_v47, %v421_v57  ;;  %v278_v47 = vsel %vm277_vm12, 0.2820948, %v8270_v61  ;;  %vm280_vm15 = vcmask 15360  }
 0x257   :  { %v426_v55 = vsel %vm419_vm1, %v422_v0, %v425_v62  ;;  %v281_v51 = vsel %vm280_vm15, %v278_v47, %v8270_v61  ;;  %v7909_v61 = vld [vmem:[%s9938_s8] sm:$0xff]   ;;  %v7911_v62 = vld [vmem:[%s9938_s8 + $0x48] sm:$0xff]   ;;  %vm2759_vm1 = vcmask 162816  }
 0x258   :  { %v427_v4 = vsel %vm416_vm2, nan, %v426_v55  ;;  %v7916_v55 = vld [vmem:[%s9938_s8 + $0x90] sm:$0xff]   ;;  %vm6738_vm2 = vcmask 58368  }
 0x259   :  { %v8359_v53 = vmul.f32 %v427_v4, %v8291_v56  ;;  %v7915_v4 = vld [vmem:[%s9938_s8 + $0x10] sm:$0xff]  }
 0x25b   :  { %9969 = vst [vmem:[#allocation4_spill] sm:$0xff] %v8359_v53  ;;  %7578 = vmatprep.mubr.msk.f32.mxu0 %vm705_vm3, %v8359_v53  ;;  %v8081_v12 = vpop.eup %8080 }
 0x25c   :  { %v8083_v13 = vpop.eup %8082  ;;  %v528_v15 = vxor.u32 2147483648, %v8081_v12 }
 0x25d   :  { %v525_v17 = vxor.u32 2147483648, %v8083_v13 }
 0x25e   :  { %v529_v63 = vsel %vm527_vm4, %v528_v15, %v8083_v13  ;;  %v7920_v13 = vld [vmem:[%s9938_s8 + $0x60] sm:$0xff]  }
 0x25f   :  { %v526_v11 = vsel %vm524_vm5, %v8081_v12, %v525_v17  ;;  %v7919_v12 = vld [vmem:[%s9938_s8 + $0x98] sm:$0xff]   ;;  %v7921_v15 = vld [vmem:[%s9938_s8 + $0x20] sm:$0xff]  }
 0x260   :  { %v530_v1 = vsel %vm523_vm7, %v526_v11, %v529_v63  ;;  %v7922_v17 = vld [vmem:[%s9938_s8 + $0xa0] sm:$0xff]   ;;  %v7923_v63 = vld [vmem:[%s9938_s8 + $0x68] sm:$0xff]  }
 0x261   :  { %v531_v18 = vsel %vm520_vm8, nan, %v530_v1  ;;  %v7924_v11 = vld [vmem:[%s9938_s8 + $0x28] sm:$0xff]  }
 0x262   :  { %v8365_v56 = vmul.f32 %v531_v18, %v8299_v37  ;;  %v808_v37 = vld [vmem:[%s9937_s7 + $0xa8] sm:$0xff]  ;;  %v7926_v18 = vld [vmem:[%s9938_s8 + $0x70] sm:$0xff]  }
 0x263   :  { %v7776_v21 = vpack.c.bf16 %v808_v37, %v805_v16  ;;  %v7925_v1 = vld [vmem:[%s9938_s8 + $0xa8] sm:$0xff]   ;;  %v7929_v16 = vld [vmem:[%s9938_s8 + $0x78] sm:$0xff]  }
 0x264   :  { %9970 = vst [vmem:[#allocation5_spill] sm:$0xff] %v8365_v56  ;;  %7579 = vmatmul.mubr.msk.f32.vlgmr.msra.gmra.mrb[8].mxu0 %vm705_vm3, %v8365_v56  ;;  %v7931_v37 = vld [vmem:[%s9938_s8 + $0xb8] sm:$0xff]  }
 0x265   :  { %7777 = vmatpush1.bf16.msra.mxu1 %v7776_v21  ;;  %7781 = vmatpush3.bf16.msra.mxu0 %v7778_v22 }
 0x266   :  { %7588 = vmatprep.subr.msk.mxu1 %vm1001_vm9, %v990_v24  ;;  %6934 = vmatprep.subr.msk.mxu0 %vm1001_vm9, %v989_v3 }
 0x275   :  { %v272_v28 = vpop.permute.xlu0 %271 }
 0x276   :  { %v8441_v54 = vsel %vm240_vm11, %v281_v51, %v272_v28 }
 0x277   :  { %9971 = vst [vmem:[#allocation6_spill] sm:$0xff] %v8441_v54  ;;  %v274_v57 = vpop.permute.xlu1 %273 }
 0x337   :  { %v7580_v26 = vpop.f32.mrb[8].mxu0 }
 0x338   :  { %v788_v27 = vadd.f32 %v7580_v26, %v6923_v25  ;;  %v782_v58 = vpop.f32.mrb[9].mxu0 }
 0x339   :  { %v783_v29 = vadd.f32 %v6923_v25, %v782_v58  ;;  %v8533_v25 = vsub.s32 0, %v8530_v20  ;;  %v6929_v58 = vld [vmem:[%s9937_s7 + $0x150] ss:$8 sm:$0x7] }
 0x33a   :  { %v6928_v30 = vmul.f32 -1.442695, %v788_v27 }
 0x33b   :  { %v6927_v31 = vmul.f32 -1.442695, %v783_v29  ;;  %9973 = vst [vmem:[#allocation8_spill] sm:$0xff] %v8533_v25 }
 0x33c   :  { %8084 = vpow2.f32 %v6928_v30  ;;  %v8542_v30 = vsub.s32 2, %v8530_v20 }
 0x33d   :  { %8086 = vpow2.f32 %v6927_v31 }
 0x346   :  { %v8085_v34 = vpop.eup %8084 }
 0x347   :  { %v8087_v35 = vpop.eup %8086  ;;  %v798_v36 = vadd.f32 1.0, %v8085_v34  ;;  %v817_v34 = vrot.slane %v6929_v58, %v8533_v25 }
 0x348   :  { %v797_v38 = vadd.f32 1.0, %v8087_v35 }
 0x349   :  { %8088 = vrcp.f32 %v798_v36 }
 0x34a   :  { %8090 = vrcp.f32 %v797_v38 }
 0x353   :  { %v8089_v39 = vpop.eup %8088 }
 0x354   :  { %v8091_v40 = vpop.eup %8090  ;;  %v804_v33 = vmul.f32 %v8089_v39, %v788_v27  ;;  %v825_v39 = vrot.slane %v6929_v58, %v8542_v30 }
 0x355   :  { %v803_v32 = vmul.f32 %v8091_v40, %v783_v29  ;;  %v8539_v29 = vsub.s32 1, %v8530_v20 }
 0x357   :  { %6930 = vmatmul.mubr.msk.f32.vlgmr.msra.gmra.mrb[8].mxu1 %vm829_vm10, %v803_v32  ;;  %7585 = vmatprep.mubr.msk.f32.mxu0 %vm829_vm10, %v803_v32  ;;  %v821_v38 = vrot.slane %v6929_v58, %v8539_v29  ;;  %v1964_v58 = vld [vmem:[%s9937_s7 + $0x18] sm:$0xff] }
 0x358   :  { %7586 = vmatmul.mubr.msk.f32.vlgmr.msra.gmra.mrb[10].mxu0 %vm829_vm10, %v804_v33  ;;  %906 = vmatprep.mubr.f32.mxu1 %v9946_v5 }
 0x359   :  { %7589 = vmatpush3.msk.msra.mxu1 %vm1001_vm9, %v990_v24  ;;  %6935 = vmatpush1.msk.msra.mxu0 %vm1001_vm9, %v988_v41 }
 0x35a   :  { %1075 = vmatprep.mubr.f32.mxu0 %v9946_v5  ;;  %6941 = vmatprep.subr.msk.mxu1 %vm1001_vm9, %v992_v44 }
 0x35b   :  { %6931 = vmatmul.mubr.msk.f32.gmra.mrb[10].mxu1 %vm829_vm10, %v804_v33  ;;  %7593 = vmatprep.subr.msk.mxu0 %vm1001_vm9, %v993_v46 }
 0x35c   :  { %6936 = vmatmul.mubr.msk.f32.vlgmr.msra.gmra.mrb[12].mxu0 %vm994_vm14, %v8336_v10  ;;  %7590 = vmatprep.mubr.msk.f32.mxu1 %vm994_vm14, %v8336_v10  ;;  %v279_v10 = vsel %vm277_vm12, 0.2820948, %v8273_v6 }
 0x35d   :  { %1081 = vmatprep.mubr.f32.mxu0 %v9946_v5  ;;  %7594 = vmatpush3.msk.msra.mxu0 %vm1001_vm9, %v993_v46  ;;  %v282_v59 = vsel %vm280_vm15, %v279_v10, %v8273_v6  ;;  %v7912_v6 = vld [vmem:[%s9938_s8 + $0x8] sm:$0xff]  }
 0x35e   :  { %7598 = vmatprep.subr.bf16.mxu0 %v7910_v14  ;;  %v8461_v0 = vsel %vm240_vm11, %v282_v59, %v274_v57 }
 0x35f   :  { %7591 = vmatmul.mubr.msk.f32.vlgmr.msra.gmra.mrb[12].mxu1 %vm994_vm14, %v8338_v60  ;;  %9972 = vst [vmem:[#allocation7_spill] sm:$0xff] %v8461_v0 }
 0x360   :  { %6937 = vmatmul.mubr.msk.f32.gmra.mrb[14].mxu0 %vm994_vm14, %v8338_v60  ;;  %6942 = vmatpush1.msk.msra.mxu1 %vm1001_vm9, %v991_v48  ;;  %v7913_v60 = vld [vmem:[%s9938_s8 + $0x88] sm:$0xff]   ;;  %s8132_s8 = smov 12  }
 0x361   :  { %7595 = vmatprep.mubr.msk.f32.mxu0 %vm994_vm14, %v8441_v54  ;;  %1242 = vmatprep.mubr.f32.mxu1 %v9946_v5 }
 0x362   :  { %7269 = vmatprep.subr.bf16.mxu1 %v7908_v50 }
 0x363   :  { %6943 = vmatmul.mubr.msk.f32.vlgmr.msra.gmra.mrb[14].mxu1 %vm994_vm14, %v8441_v54 }
 0x364   :  { %7596 = vmatmul.mubr.msk.f32.vlgmr.msra.gmra.mrb[16].mxu0 %vm994_vm14, %v8461_v0  ;;  %1248 = vmatprep.mubr.f32.mxu1 %v9946_v5 }
 0x365   :  { %7270 = vmatpush3.bf16.msra.mxu1 %v7909_v61  ;;  %7599 = vmatpush3.bf16.msra.mxu0 %v7910_v14 }
 0x366   :  { %7271 = vmatprep.subr.bf16.mxu1 %v7911_v62  ;;  %7600 = vmatprep.subr.bf16.mxu0 %v7913_v60 }
 0x367   :  { %6944 = vmatmul.mubr.msk.f32.gmra.mrb[16].mxu1 %vm994_vm14, %v8461_v0 }
 0x369   :  { %7272 = vmatpush3.bf16.msra.mxu1 %v7912_v6  ;;  %7601 = vmatpush3.bf16.msra.mxu0 %v7913_v60 }
 0x36a   :  { %7273 = vmatprep.subr.bf16.mxu1 %v7914_v2  ;;  %7602 = vmatprep.subr.bf16.mxu0 %v7916_v55 }
 0x36d   :  { %7274 = vmatpush3.bf16.msra.mxu1 %v7915_v4  ;;  %7603 = vmatpush3.bf16.msra.mxu0 %v7916_v55 }
 0x36e   :  { %7275 = vmatprep.subr.bf16.mxu1 %v7917_v49  ;;  %7604 = vmatprep.subr.bf16.mxu0 %v7919_v12 }
 0x371   :  { %7276 = vmatpush3.bf16.msra.mxu1 %v7918_v7  ;;  %7605 = vmatpush3.bf16.msra.mxu0 %v7919_v12 }
 0x372   :  { %7277 = vmatprep.subr.bf16.mxu1 %v7920_v13  ;;  %7606 = vmatprep.subr.bf16.mxu0 %v7922_v17 }
 0x375   :  { %7278 = vmatpush3.bf16.msra.mxu1 %v7921_v15  ;;  %7607 = vmatpush3.bf16.msra.mxu0 %v7922_v17 }
 0x376   :  { %7279 = vmatprep.subr.bf16.mxu1 %v7923_v63  ;;  %7608 = vmatprep.subr.bf16.mxu0 %v7925_v1 }
 0x379   :  { %7280 = vmatpush3.bf16.msra.mxu1 %v7924_v11  ;;  %7609 = vmatpush3.bf16.msra.mxu0 %v7925_v1  ;;  %v6905_v1 = vld [vmem:[%s9939_s4] ss:$0 sm:$0xff] }
 0x37a   :  { %7281 = vmatprep.subr.bf16.mxu1 %v7926_v18  ;;  %7610 = vmatprep.subr.bf16.mxu0 %v7928_v19  ;;  %vm79_vm11 = vcmp.eq.s32.totalorder %v8530_v20, %v6905_v1 }
 0x37d   :  { %7282 = vmatpush3.bf16.msra.mxu1 %v7927_v52  ;;  %7611 = vmatpush3.bf16.msra.mxu0 %v7928_v19 }
 0x37e   :  { %7283 = vmatprep.subr.bf16.mxu1 %v7929_v16  ;;  %7612 = vmatprep.subr.bf16.mxu0 %v7931_v37 }
 0x381   :  { %7284 = vmatpush3.bf16.msra.mxu1 %v7930_v42  ;;  %7613 = vmatpush3.bf16.msra.mxu0 %v7931_v37  ;;  %v1865_v42 = vld [vmem:[%s9936_s6 + $0x30] sm:$0xff]  ;;  %v1866_v37 = vld [vmem:[%s9936_s6 + $0x38] sm:$0x3] }
 0x382   :  { %7625 = vmatprep.subr.mxu1 %v9946_v5  ;;  %7782 = vmatprep.subr.bf16.mxu0 %v9944_v8 }
 0x42a   :  { %v902_v43 = vpop.f32.mrb[8].mxu1 }
 0x42b   :  { %v904_v21 = vpop.f32.mrb[9].mxu1  ;;  %v7587_v22 = vpop.f32.mrb[10].mxu0  ;;  %v903_v33 = vadd.f32 %v902_v43, %v817_v34 }
 0x42c   :  { %v979_v24 = vpop.f32.mrb[11].mxu0  ;;  %v905_v14 = vadd.f32 %v904_v21, %v821_v38  ;;  %v985_v47 = vadd.f32 %v7587_v22, %v825_v39  ;;  %v6906_v21 = vsel %vm79_vm11, 1.0, %v9946_v5  ;;  %v7785_v22 = vpack.c.bf16 %v1866_v37, %v1865_v42  ;;  %v1992_v42 = vld [vmem:[%s9937_s7 + $0x128] sm:$0xff] }
 0x42d   :  { %v980_v51 = vadd.f32 %v979_v24, %v825_v39  ;;  %v624_v39 = vld [vmem:[%s9936_s6 + $0x10] sm:$0xf] }
 0x42e   :  { %v908_v3 = vpop.f32.mrb[10].mxu1 }
 0x42f   :  { %v910_v26 = vpop.f32.mrb[11].mxu1  ;;  %v1077_v27 = vpop.f32.mrb[12].mxu0  ;;  %v909_v60 = vadd.f32 %v908_v3, %v817_v34  ;;  %v8562_v3 = vpack.c.bf16 %v6906_v21, %v6906_v21  ;;  %v1976_v21 = vld [vmem:[%s9937_s7 + $0x78] sm:$0xff] }
 0x430   :  { %v1079_v9 = vpop.f32.mrb[13].mxu0  ;;  %v911_v4 = vadd.f32 %v910_v26, %v821_v38  ;;  %v1965_v26 = vld [vmem:[%s9937_s7 + $0x20] sm:$0xff] }
 0x431   :  { %9974 = vst [vmem:[#allocation9_spill] sm:$0xff] %v8562_v3 }
 0x432   :  { %v7592_v31 = vpop.f32.mrb[12].mxu1 }
 0x433   :  { %v1083_v35 = vpop.f32.mrb[14].mxu0  ;;  %v1154_v36 = vpop.f32.mrb[13].mxu1 }
 0x434   :  { %v1085_v40 = vpop.f32.mrb[15].mxu0 }
 0x436   :  { %v1244_v32 = vpop.f32.mrb[14].mxu1 }
 0x437   :  { %v1330_v41 = vmul.f32 %v1244_v32, %v1077_v27  ;;  %v1246_v44 = vpop.f32.mrb[15].mxu1  ;;  %v7597_v46 = vpop.f32.mrb[16].mxu0  ;;  %v1980_v27 = vld [vmem:[%s9937_s7 + $0xc8] sm:$0xff] }
 0x438   :  { %v1331_v28 = vmul.f32 %v1246_v44, %v1079_v9  ;;  %v1335_v48 = vmul.f32 %v7597_v46, %v7592_v31  ;;  %v1321_v50 = vpop.f32.mrb[17].mxu0  ;;  %v7791_v9 = vpack.c.bf16 %v1980_v27, %v1965_v26  ;;  %v1979_v31 = vld [vmem:[%s9937_s7 + $0xc0] sm:$0xff] }
 0x439   :  { %v1336_v10 = vmul.f32 %v1330_v41, %v903_v33  ;;  %v1332_v57 = vmul.f32 %v1321_v50, %v1154_v36  ;;  %v7793_v34 = vpack.c.bf16 %v1979_v31, %v1964_v58  ;;  %v1984_v36 = vld [vmem:[%s9937_s7 + $0xe8] sm:$0xff]  ;;  %v6977_v46 = vld [vmem:[%s9936_s6 + $0x40] ss:$0 sm:$0xff] }
 0x43a   :  { %v1337_v61 = vmul.f32 %v1331_v28, %v905_v14  ;;  %v1341_v59 = vmul.f32 %v1335_v48, %v985_v47  ;;  %v1250_v62 = vpop.f32.mrb[16].mxu1 }
 0x43b   :  { %v1338_v6 = vmul.f32 %v1332_v57, %v980_v51  ;;  %v1333_v2 = vmul.f32 %v1250_v62, %v1083_v35  ;;  %v1252_v55 = vpop.f32.mrb[17].mxu1  ;;  %v1969_v35 = vld [vmem:[%s9937_s7 + $0x40] sm:$0xff] }
 0x43c   :  { %v1334_v49 = vmul.f32 %v1252_v55, %v1085_v40  ;;  %1566 = vmatprep.mubr.f32.mxu1 %v1337_v61  ;;  %v7799_v38 = vpack.c.bf16 %v1984_v36, %v1969_v35 }
 0x43d   :  { %v1339_v7 = vmul.f32 %v1333_v2, %v909_v60  ;;  %1567 = vmatmul.mubr.f32.vlgmr.msra.gmra.mrb[18].mxu1 %v1336_v10  ;;  %7614 = vmatprep.mubr.f32.mxu0 %v1338_v6 }
 0x43e   :  { %v1340_v12 = vmul.f32 %v1334_v49, %v911_v4  ;;  %7615 = vmatmul.mubr.f32.vlgmr.msra.gmra.mrb[18].mxu0 %v1341_v59  ;;  %7626 = vmatpush3.msk.msra.mxu1 %vm1001_vm9, %v624_v39  ;;  %v1968_v49 = vld [vmem:[%s9937_s7 + $0x38] sm:$0xff] }
 0x43f   :  { %7621 = vmatprep.mubr.msk.bf16.mxu0 %vm8121_vm0, %v9946_v5  ;;  %7630 = vmatprep.subr.mxu1 %v9946_v5  ;;  %v6985_v39 = vld [vmem:[%s9937_s7 + $0x1a8] ss:$8 sm:$0xf] }
 0x440   :  { %1571 = vmatprep.mubr.f32.mxu1 %v1340_v12  ;;  %v1973_v12 = vld [vmem:[%s9937_s7 + $0x60] sm:$0xff] }
 0x441   :  { %1572 = vmatmul.mubr.f32.gmra.mrb[20].mxu1 %v1339_v7  ;;  %v1983_v7 = vld [vmem:[%s9937_s7 + $0xe0] sm:$0xff] }
 0x442   :  { %7627 = vmatprep.mubr.msk.f32.mxu1 %vm8121_vm0, %v9946_v5 }
 0x510   :  { %v7285_v13 = vpop.f32.mrb[18].mxu1 }
 0x511   :  { %v7286_v15 = vpop.f32.mrb[19].mxu1  ;;  %v7616_v17 = vpop.f32.mrb[18].mxu0 }
 0x512   :  { %v7287_v63 = vadd.f32 %v7286_v15, %v7285_v13  ;;  %v1611_v11 = vpop.f32.mrb[19].mxu0  ;;  %v1988_v13 = vld [vmem:[%s9937_s7 + $0x108] sm:$0xff] }
 0x514   :  { %v1612_v18 = vadd.f32 %v7287_v63, %v1611_v11  ;;  %v7288_v52 = vpop.f32.mrb[20].mxu1  ;;  %v7807_v11 = vpack.c.bf16 %v1988_v13, %v1973_v12  ;;  %v2702_v12 = vld [vmem:[%s9937_s7 + $0x228] sm:$0xff]  ;;  %v2717_v13 = vld [vmem:[%s9937_s7 + $0x2d0] sm:$0xff] }
 0x515   :  { %v7289_v19 = vpop.f32.mrb[21].mxu1 }
 0x516   :  { %v7290_v16 = vadd.f32 %v7289_v19, %v7288_v52  ;;  %v1972_v52 = vld [vmem:[%s9937_s7 + $0x58] sm:$0xff]  ;;  %v1987_v19 = vld [vmem:[%s9937_s7 + $0x100] sm:$0xff] }
 0x517   :  { %v7809_v37 = vpack.c.bf16 %v1987_v19, %v1972_v52  ;;  %v1967_v52 = vld [vmem:[%s9937_s7 + $0x30] sm:$0xff]  ;;  %v1982_v19 = vld [vmem:[%s9937_s7 + $0xd8] sm:$0xff] }
 0x518   :  { %v1617_v43 = vadd.f32 %v7616_v17, %v7290_v16  ;;  %v7801_v17 = vpack.c.bf16 %v1983_v7, %v1968_v49  ;;  %v1977_v16 = vld [vmem:[%s9937_s7 + $0x80] sm:$0xff] }
 0x51a   :  { %v7783_v24 = vpack.c.bf16 %v1617_v43, %v1612_v18  ;;  %v7815_v43 = vpack.c.bf16 %v1992_v42, %v1977_v16  ;;  %v1966_v16 = vld [vmem:[%s9937_s7 + $0x28] sm:$0xff]  ;;  %v1981_v42 = vld [vmem:[%s9937_s7 + $0xd0] sm:$0xff] }
 0x51c   :  { %7784 = vmatpush3.bf16.msra.mxu0 %v7783_v24 }
 0x51d   :  { %7787 = vmatprep.subr.msk.bf16.mxu0 %vm8255_vm13, %v7785_v22 }
 0x51f   :  { %7622 = vmatmul.mubr.msk.bf16.vlgmr.msra.gmra.mrb[20].mxu0 %vm829_vm10, %v8562_v3 }
 0x520   :  { %7640 = vmatprep.mubr.msk.f32.mxu0 %vm705_vm3, %v8359_v53  ;;  %7790 = vmatpush3.bf16.msk.msra.mxu0 %vm8255_vm13, %v7785_v22  ;;  %v1991_v22 = vld [vmem:[%s9937_s7 + $0x120] sm:$0xff] }
 0x521   :  { %7792 = vmatprep.subr.bf16.mxu0 %v7791_v9  ;;  %v7817_v24 = vpack.c.bf16 %v1991_v22, %v1976_v21  ;;  %v7795_v21 = vpack.c.bf16 %v1982_v19, %v1967_v52  ;;  %v2729_v52 = vld [vmem:[%s9937_s7 + $0x360] sm:$0xf] }
 0x522   :  { %v2719_v19 = vld [vmem:[%s9937_s7 + $0x2e0] sm:$0xff] }
 0x527   :  { %7641 = vmatmul.mubr.msk.f32.vlgmr.msra.gmra.mrb[24].mxu0 %vm705_vm3, %v8365_v56 }
 0x528   :  { %2149 = vmatprep.mubr.f32.mxu0 %v9946_v5  ;;  %7794 = vmatpush1.bf16.msra.mxu0 %v7793_v34 }
 0x529   :  { %7800 = vmatprep.subr.bf16.mxu0 %v7799_v38 }
 0x5f2   :  { %v8598_v40 = vpop.f32.mrb[20].mxu0 }
 0x5f3   :  { %v6973_v32 = vmul.f32 -1.442695, %v8598_v40  ;;  %v7623_v33 = vpop.f32.mrb[21].mxu0  ;;  %v1695_v62 = vmul.f32 1.6765325, %v8598_v40 }
 0x5f4   :  { %v1692_v41 = vpop.f32.mrb[22].mxu0 }
 0x5f5   :  { %8092 = vpow2.f32 %v6973_v32  ;;  %v7624_v44 = vpop.f32.mrb[23].mxu0  ;;  %v6986_v32 = vld [vmem:[%s9937_s7 + $0x1a8] ss:$8 sm:$0xf0] }
 0x5f6   :  { %v9949_v44 = vsub.s32 4, %v8530_v20 }
 0x5fa   :  { %v7642_v14 = vpop.f32.mrb[24].mxu0 }
 0x5fb   :  { %v1947_v47 = vadd.f32 %v7642_v14, %v6977_v46  ;;  %v1941_v28 = vpop.f32.mrb[25].mxu0  ;;  %v9948_v14 = vsub.s32 5, %v8530_v20 }
 0x5fc   :  { %v1942_v48 = vadd.f32 %v6977_v46, %v1941_v28  ;;  %v8696_v46 = vor.u32 %v6986_v32, %v6985_v39  ;;  %v1970_v32 = vld [vmem:[%s9937_s7 + $0x48] sm:$0xff] }
 0x5fd   :  { %v6982_v50 = vmul.f32 -1.442695, %v1947_v47 }
 0x5fe   :  { %v6981_v51 = vmul.f32 -1.442695, %v1942_v48 }
 0x5ff   :  { %v8093_v10 = vpop.eup %8092  ;;  %8094 = vpow2.f32 %v6982_v50  ;;  %v2059_v50 = vrot.slane %v8696_v46, %v9948_v14  ;;  %v6983_v14 = vld [vmem:[%s9937_s7 + $0x168] ss:$8 sm:$0xf] }
 0x600   :  { %v1699_v57 = vadd.f32 1.0, %v8093_v10  ;;  %8096 = vpow2.f32 %v6981_v51 }
 0x602   :  { %8098 = vrcp.f32 %v1699_v57 }
 0x609   :  { %v8095_v61 = vpop.eup %8094 }
 0x60a   :  { %v8097_v59 = vpop.eup %8096  ;;  %v1957_v60 = vadd.f32 1.0, %v8095_v61 }
 0x60b   :  { %v1956_v6 = vadd.f32 1.0, %v8097_v59 }
 0x60c   :  { %v8099_v2 = vpop.eup %8098 }
 0x60d   :  { %v8605_v55 = vmul.f32 %v8099_v2, %v1695_v62  ;;  %8100 = vrcp.f32 %v1956_v6  ;;  %v1703_v4 = vmul.f32 1.8462286, %v8099_v2 }
 0x60e   :  { %8102 = vrcp.f32 %v1957_v60 }
 0x60f   :  { %1705 = vrot.lane.b32.xlu1 %v1703_v4, %s8131_s19 }
 0x617   :  { %v8101_v15 = vpop.eup %8100 }
 0x618   :  { %v8620_v63 = vmul.f32 %v8101_v15, %v1942_v48  ;;  %v8103_v1 = vpop.eup %8102  ;;  %v2055_v48 = vrot.slane %v8696_v46, %v9949_v44  ;;  %v7827_v15 = vpack.c.bf16 %v2717_v13, %v2702_v12  ;;  %v2700_v12 = vld [vmem:[%s9937_s7 + $0x218] sm:$0xff]  ;;  %v2715_v13 = vld [vmem:[%s9937_s7 + $0x2c0] sm:$0xff] }
 0x619   :  { %v8625_v18 = vmul.f32 %v8103_v1, %v1947_v47  ;;  %v2732_v1 = vld [vmem:[%s9937_s7 + $0x378] sm:$0xf] }
 0x61a   :  { %6987 = vmatmul.mubr.msk.f32.vlgmr.msra.gmra.mrb[26].mxu0 %vm829_vm10, %v8620_v63  ;;  %v6984_v44 = vld [vmem:[%s9937_s7 + $0x168] ss:$8 sm:$0xf0] }
 0x61b   :  { %2155 = vmatprep.mubr.f32.mxu0 %v9946_v5  ;;  %7802 = vmatpush1.bf16.msra.mxu0 %v7801_v17  ;;  %v2701_v17 = vld [vmem:[%s9937_s7 + $0x220] sm:$0xff] }
 0x61c   :  { %7808 = vmatprep.subr.bf16.mxu0 %v7807_v11 }
 0x61e   :  { %6988 = vmatmul.mubr.msk.f32.gmra.mrb[28].mxu0 %vm829_vm10, %v8625_v18 }
 0x61f   :  { %2303 = vmatprep.mubr.f32.mxu0 %v9946_v5 }
 0x622   :  { %6991 = vmatmul.mubr.msk.f32.vlgmr.msra.gmra.mrb[30].mxu0 %vm829_vm10, %v8620_v63 }
 0x623   :  { %2309 = vmatprep.mubr.f32.mxu0 %v9946_v5  ;;  %7810 = vmatpush1.bf16.msra.mxu0 %v7809_v37  ;;  %v1971_v37 = vld [vmem:[%s9937_s7 + $0x50] sm:$0xff] }
 0x624   :  { %7816 = vmatprep.subr.bf16.mxu0 %v7815_v43  ;;  %v1986_v43 = vld [vmem:[%s9937_s7 + $0xf8] sm:$0xff] }
 0x625   :  { %v7803_v39 = vpack.c.bf16 %v1986_v43, %v1971_v37  ;;  %v2721_v37 = vld [vmem:[%s9937_s7 + $0x2f0] sm:$0xff] }
 0x626   :  { %6992 = vmatmul.mubr.msk.f32.gmra.mrb[32].mxu0 %vm829_vm10, %v8625_v18 }
 0x627   :  { %2457 = vmatprep.mubr.f32.mxu0 %v9946_v5 }
 0x62a   :  { %6995 = vmatmul.mubr.msk.f32.vlgmr.msra.gmra.mrb[34].mxu0 %vm829_vm10, %v8620_v63 }
 0x62b   :  { %2463 = vmatprep.mubr.f32.mxu0 %v9946_v5  ;;  %7818 = vmatpush1.bf16.msra.mxu0 %v7817_v24  ;;  %v7797_v24 = vpack.c.bf16 %v1981_v42, %v1966_v16  ;;  %v2706_v16 = vld [vmem:[%s9937_s7 + $0x248] sm:$0xff] }
 0x62c   :  { %7828 = vmatprep.subr.bf16.mxu0 %v7827_v15  ;;  %v7823_v15 = vpack.c.bf16 %v2715_v13, %v2700_v12  ;;  %v7835_v43 = vpack.c.bf16 %v2721_v37, %v2706_v16  ;;  %v2735_v12 = vld [vmem:[%s9937_s7 + $0x390] sm:$0xf]  ;;  %v2740_v16 = vld [vmem:[%s9937_s7 + $0x3b8] sm:$0xf] }
 0x62d   :  { %v2707_v13 = vld [vmem:[%s9937_s7 + $0x250] sm:$0xff] }
 0x62e   :  { %6996 = vmatmul.mubr.msk.f32.gmra.mrb[36].mxu0 %vm829_vm10, %v8625_v18 }
 0x62f   :  { %2611 = vmatprep.mubr.f32.mxu0 %v9946_v5 }
 0x632   :  { %6999 = vmatmul.mubr.msk.f32.vlgmr.msra.gmra.mrb[38].mxu0 %vm829_vm10, %v8620_v63 }
 0x633   :  { %2617 = vmatprep.mubr.f32.mxu0 %v9946_v5 }
 0x636   :  { %7000 = vmatmul.mubr.msk.f32.gmra.mrb[40].mxu0 %vm829_vm10, %v8625_v18 }
 0x637   :  { %2952 = vmatprep.mubr.f32.mxu0 %v9946_v5 }
 0x681   :  { %v1706_v26 = vpop.permute.xlu1 %1705 }
 0x682   :  { %7628 = vmatmul.mubr.msk.f32.vlgmr.msra.gmra.mrb[22].mxu1 %vm994_vm14, %v1706_v26 }
 0x683   :  { %7632 = vmatprep.mubr.msk.bf16.mxu1 %vm8121_vm0, %v9946_v5 }
 0x6ed   :  { %v8669_v27 = vpop.f32.mrb[26].mxu0 }
 0x6ee   :  { %v8671_v58 = vpop.f32.mrb[27].mxu0 }
 0x6f1   :  { %v8673_v9 = vpop.f32.mrb[28].mxu0 }
 0x6f2   :  { %v8675_v31 = vpop.f32.mrb[29].mxu0 }
 0x6f5   :  { %v8677_v34 = vpop.f32.mrb[30].mxu0 }
 0x6f6   :  { %v8679_v35 = vpop.f32.mrb[31].mxu0 }
 0x6f9   :  { %v8681_v36 = vpop.f32.mrb[32].mxu0 }
 0x6fa   :  { %v8683_v38 = vpop.f32.mrb[33].mxu0 }
 0x6fd   :  { %v8691_v33 = vpop.f32.mrb[34].mxu0 }
 0x6fe   :  { %v8693_v41 = vpop.f32.mrb[35].mxu0 }
 0x701   :  { %v8699_v47 = vpop.f32.mrb[36].mxu0 }
 0x702   :  { %v8701_v28 = vpop.f32.mrb[37].mxu0 }
 0x703   :  { %9975 = vst [vmem:[#allocation10_spill] sm:$0xff] %v8701_v28 }
 0x705   :  { %v2613_v51 = vpop.f32.mrb[38].mxu0 }
 0x706   :  { %v8709_v10 = vadd.f32 %v2613_v51, %v2055_v48  ;;  %v2615_v57 = vpop.f32.mrb[39].mxu0 }
 0x707   :  { %v8711_v61 = vadd.f32 %v2615_v57, %v2059_v50 }
 0x708   :  { %9976 = vst [vmem:[#allocation11_spill] sm:$0xff] %v8709_v10 }
 0x709   :  { %9977 = vst [vmem:[#allocation12_spill] sm:$0xff] %v8711_v61  ;;  %v2619_v59 = vpop.f32.mrb[40].mxu0  ;;  %v9961_v61 = vsub.s32 3, %v8530_v20 }
 0x70a   :  { %v8713_v62 = vadd.f32 %v2619_v59, %v2055_v48  ;;  %v2621_v60 = vpop.f32.mrb[41].mxu0  ;;  %v1985_v48 = vld [vmem:[%s9937_s7 + $0xf0] sm:$0xff]  ;;  %v1974_v59 = vld [vmem:[%s9937_s7 + $0x68] sm:$0xff] }
 0x70b   :  { %v8715_v6 = vadd.f32 %v2621_v60, %v2059_v50  ;;  %v1990_v50 = vld [vmem:[%s9937_s7 + $0x118] sm:$0xff]  ;;  %v7805_v51 = vpack.c.bf16 %v1985_v48, %v1970_v32  ;;  %v1989_v60 = vld [vmem:[%s9937_s7 + $0x110] sm:$0xff] }
 0x70c   :  { %9978 = vst [vmem:[#allocation13_spill] sm:$0xff] %v8713_v62 }
 0x70d   :  { %9979 = vst [vmem:[#allocation14_spill] sm:$0xff] %v8715_v6 }
 0x755   :  { %v1778_v2 = vpop.f32.mrb[22].mxu1 }
 0x756   :  { %1783 = vrot.lane.b32.xlu0 %v1778_v2, %s8132_s8  ;;  %v7629_v4 = vpop.f32.mrb[23].mxu1  ;;  %v1978_v2 = vld [vmem:[%s9937_s7 + $0x88] sm:$0xff] }
 0x757   :  { %v1993_v4 = vld [vmem:[%s9937_s7 + $0x130] sm:$0xff] }
 0x7c8   :  { %v1784_v49 = vpop.permute.xlu0 %1783 }
 0x7c9   :  { %v1786_v7 = vmul.f32 %v1784_v49, %v8598_v40  ;;  %v2716_v40 = vld [vmem:[%s9937_s7 + $0x2c8] sm:$0xff]  ;;  %v7813_v49 = vpack.c.bf16 %v1989_v60, %v1974_v59  ;;  %v2723_v59 = vld [vmem:[%s9937_s7 + $0x300] sm:$0xff] }
 0x7ca   :  { %v7829_v11 = vpack.c.bf16 %v2716_v40, %v2701_v17  ;;  %v2699_v17 = vld [vmem:[%s9937_s7 + $0x210] sm:$0xff]  ;;  %v2714_v40 = vld [vmem:[%s9937_s7 + $0x2b8] sm:$0xff]  ;;  %v2710_v60 = vld [vmem:[%s9937_s7 + $0x268] sm:$0xff] }
 0x7cb   :  { %1788 = vrot.lane.b32.xlu1 %v1786_v7, %s8133_s20  ;;  %v7819_v7 = vpack.c.bf16 %v1993_v4, %v1978_v2  ;;  %v2725_v2 = vld [vmem:[%s9937_s7 + $0x310] sm:$0xff] }
 0x7cc   :  { %7830 = vmatpush1.bf16.msra.mxu0 %v7829_v11  ;;  %v7825_v11 = vpack.c.bf16 %v2714_v40, %v2699_v17  ;;  %v7843_v17 = vpack.c.bf16 %v2725_v2, %v2710_v60  ;;  %v2722_v40 = vld [vmem:[%s9937_s7 + $0x2f8] sm:$0xff] }
 0x7cd   :  { %7007 = vmatprep.subr.msk.mxu0 %vm1001_vm9, %v2732_v1  ;;  %v2730_v1 = vld [vmem:[%s9937_s7 + $0x368] sm:$0xf] }
 0x83d   :  { %v1789_v22 = vpop.permute.xlu1 %1788 }
 0x83e   :  { %v1791_v26 = vsel %vm83_vm6, %v8605_v55, %v1789_v22  ;;  %v1975_v55 = vld [vmem:[%s9937_s7 + $0x70] sm:$0xff]  ;;  %v2718_v22 = vld [vmem:[%s9937_s7 + $0x2d8] sm:$0xff] }
 0x83f   :  { %7631 = vmatpush3.msra.mxu1 %v1791_v26  ;;  %v7811_v57 = vpack.c.bf16 %v1990_v50, %v1975_v55  ;;  %v2720_v26 = vld [vmem:[%s9937_s7 + $0x2e8] sm:$0xff]  ;;  %v2736_v50 = vld [vmem:[%s9937_s7 + $0x398] sm:$0xf] }
 0x840   :  { %7633 = vmatmul.mubr.msk.bf16.vlgmr.msra.gmra.mrb[24].mxu1 %vm83_vm6, %v8237_v23  ;;  %7796 = vmatprep.subr.bf16.mxu1 %v7795_v21  ;;  %v2703_v21 = vld [vmem:[%s9937_s7 + $0x230] sm:$0xff]  ;;  %v2734_v55 = vld [vmem:[%s9937_s7 + $0x388] sm:$0xf]  ;;  %v1997_v23 = vor.u32 %v6984_v44, %v6983_v14 }
 0x841   :  { %7798 = vmatpush1.bf16.msra.mxu1 %v7797_v24  ;;  %2226 = vmatprep.mubr.f32.mxu1 %v9946_v5  ;;  %v2705_v24 = vld [vmem:[%s9937_s7 + $0x240] sm:$0xff] }
 0x842   :  { %7804 = vmatprep.subr.bf16.mxu1 %v7803_v39  ;;  %v7833_v39 = vpack.c.bf16 %v2718_v22, %v2703_v21  ;;  %v7837_v32 = vpack.c.bf16 %v2720_v26, %v2705_v24  ;;  %v2713_v21 = vld [vmem:[%s9937_s7 + $0x280] sm:$0xff]  ;;  %v2728_v22 = vld [vmem:[%s9937_s7 + $0x328] sm:$0xff]  ;;  %v2007_v6 = vrot.slane %v1997_v23, %v8533_v25 }
 0x843   :  { %v2737_v24 = vld [vmem:[%s9937_s7 + $0x3a0] sm:$0xf] }
 0x844   :  { %v2152_v14 = vadd.f32 %v8669_v27, %v2007_v6  ;;  %v2158_v27 = vadd.f32 %v8673_v9, %v2007_v6 }
 0x848   :  { %6989 = vmatmul.mubr.msk.f32.vlgmr.msra.gmra.mrb[28].mxu1 %vm829_vm10, %v8620_v63 }
 0x849   :  { %2232 = vmatprep.mubr.f32.mxu1 %v9946_v5  ;;  %7806 = vmatpush1.bf16.msra.mxu1 %v7805_v51  ;;  %v2708_v51 = vld [vmem:[%s9937_s7 + $0x258] sm:$0xff] }
 0x84a   :  { %7812 = vmatprep.subr.bf16.mxu1 %v7811_v57 }
 0x84c   :  { %6990 = vmatmul.mubr.msk.f32.gmra.mrb[30].mxu1 %vm829_vm10, %v8625_v18 }
 0x84d   :  { %2380 = vmatprep.mubr.f32.mxu1 %v9946_v5 }
 0x850   :  { %6993 = vmatmul.mubr.msk.f32.vlgmr.msra.gmra.mrb[32].mxu1 %vm829_vm10, %v8620_v63 }
 0x851   :  { %2386 = vmatprep.mubr.f32.mxu1 %v9946_v5  ;;  %7814 = vmatpush1.bf16.msra.mxu1 %v7813_v49 }
 0x852   :  { %7820 = vmatprep.subr.bf16.mxu1 %v7819_v7 }
 0x854   :  { %6994 = vmatmul.mubr.msk.f32.gmra.mrb[34].mxu1 %vm829_vm10, %v8625_v18 }
 0x855   :  { %2534 = vmatprep.mubr.f32.mxu1 %v9946_v5 }
 0x858   :  { %6997 = vmatmul.mubr.msk.f32.vlgmr.msra.gmra.mrb[36].mxu1 %vm829_vm10, %v8620_v63 }
 0x859   :  { %2540 = vmatprep.mubr.f32.mxu1 %v9946_v5  ;;  %7822 = vmatpush3.bf16.msra.mxu1 %v7819_v7  ;;  %v2733_v7 = vld [vmem:[%s9937_s7 + $0x380] sm:$0xf] }
 0x85a   :  { %7824 = vmatprep.subr.bf16.mxu1 %v7823_v15  ;;  %v7839_v15 = vpack.c.bf16 %v2723_v59, %v2708_v51  ;;  %v2726_v51 = vld [vmem:[%s9937_s7 + $0x318] sm:$0xff] }
 0x85c   :  { %6998 = vmatmul.mubr.msk.f32.gmra.mrb[38].mxu1 %vm829_vm10, %v8625_v18 }
 0x85d   :  { %7647 = vmatprep.mubr.msk.f32.mxu1 %vm829_vm10, %v8620_v63  ;;  %v2731_v63 = vld [vmem:[%s9937_s7 + $0x370] sm:$0xf] }
 0x85e   :  { %7008 = vmatpush1.msk.msra.mxu0 %vm1001_vm9, %v2731_v63 }
 0x85f   :  { %7836 = vmatprep.subr.bf16.mxu0 %v7835_v43  ;;  %v2727_v43 = vld [vmem:[%s9937_s7 + $0x320] sm:$0xff] }
 0x860   :  { %7648 = vmatmul.mubr.msk.f32.vlgmr.msra.gmra.mrb[40].mxu1 %vm829_vm10, %v8625_v18  ;;  %v2704_v18 = vld [vmem:[%s9937_s7 + $0x238] sm:$0xff] }
 0x861   :  { %7826 = vmatpush1.bf16.msra.mxu1 %v7825_v11  ;;  %2875 = vmatprep.mubr.f32.mxu1 %v9946_v5  ;;  %v7831_v42 = vpack.c.bf16 %v2719_v19, %v2704_v18  ;;  %v2709_v11 = vld [vmem:[%s9937_s7 + $0x260] sm:$0xff]  ;;  %v2738_v19 = vld [vmem:[%s9937_s7 + $0x3a8] sm:$0xf] }
 0x862   :  { %7003 = vmatprep.subr.msk.mxu1 %vm1001_vm9, %v2730_v1  ;;  %v2724_v1 = vld [vmem:[%s9937_s7 + $0x308] sm:$0xff] }
 0x863   :  { %v7845_v63 = vpack.c.bf16 %v2724_v1, %v2709_v11  ;;  %v2744_v11 = vld [vmem:[%s9937_s7 + $0x408] sm:$0xf] }
 0x865   :  { %7004 = vmatpush1.msk.msra.mxu1 %vm1001_vm9, %v2729_v52  ;;  %v7841_v52 = vpack.c.bf16 %v2722_v40, %v2707_v13  ;;  %v2741_v13 = vld [vmem:[%s9937_s7 + $0x3c0] sm:$0xf] }
 0x866   :  { %7832 = vmatprep.subr.bf16.mxu1 %v7831_v42  ;;  %v2712_v42 = vld [vmem:[%s9937_s7 + $0x278] sm:$0xff]  ;;  %v2747_v40 = vld [vmem:[%s9937_s7 + $0x420] sm:$0xf] }
 0x913   :  { %v8853_v48 = vpop.f32.mrb[24].mxu1 }
 0x914   :  { %v7634_v57 = vpop.f32.mrb[25].mxu1  ;;  %7005 = vmatmul.mubr.msk.f32.vlgmr.msra.gmra.mrb[42].mxu1 %vm2759_vm1, %v8853_v48  ;;  %7009 = vmatmul.mubr.msk.f32.vlgmr.msra.gmra.mrb[42].mxu0 %vm2759_vm1, %v8853_v48 }
 0x915   :  { %v8877_v4 = vpop.f32.mrb[26].mxu1  ;;  %2881 = vmatprep.mubr.f32.mxu1 %v9946_v5  ;;  %2958 = vmatprep.mubr.f32.mxu0 %v9946_v5 }
 0x916   :  { %v7635_v49 = vpop.f32.mrb[27].mxu1  ;;  %7834 = vmatpush1.bf16.msra.mxu1 %v7833_v39  ;;  %7838 = vmatpush1.bf16.msra.mxu0 %v7837_v32  ;;  %v2739_v39 = vld [vmem:[%s9937_s7 + $0x3b0] sm:$0xf]  ;;  %v7847_v32 = vpack.c.bf16 %v2727_v43, %v2712_v42  ;;  %v2748_v42 = vld [vmem:[%s9937_s7 + $0x428] sm:$0xf] }
 0x917   :  { %7011 = vmatprep.subr.msk.mxu1 %vm1001_vm9, %v2734_v55  ;;  %7015 = vmatprep.subr.msk.mxu0 %vm1001_vm9, %v2736_v50  ;;  %v7851_v55 = vpack.c.bf16 %v2728_v22, %v2713_v21  ;;  %v2711_v50 = vld [vmem:[%s9937_s7 + $0x270] sm:$0xff]  ;;  %v2742_v49 = vld [vmem:[%s9937_s7 + $0x3c8] sm:$0xf] }
 0x918   :  { %7006 = vmatmul.mubr.msk.f32.gmra.mrb[44].mxu1 %vm2759_vm1, %v8877_v4  ;;  %7010 = vmatmul.mubr.msk.f32.gmra.mrb[44].mxu0 %vm2759_vm1, %v8877_v4  ;;  %v7849_v59 = vpack.c.bf16 %v2726_v51, %v2711_v50  ;;  %v2753_v21 = vld [vmem:[%s9937_s7 + $0x450] sm:$0xf]  ;;  %v2754_v50 = vld [vmem:[%s9937_s7 + $0x458] sm:$0xf] }
 0x919   :  { %3029 = vmatprep.mubr.f32.mxu1 %v9946_v5  ;;  %3106 = vmatprep.mubr.f32.mxu0 %v9946_v5  ;;  %v2758_v51 = vld [vmem:[%s9937_s7 + $0x478] sm:$0xf] }
 0x91a   :  { %7012 = vmatpush1.msk.msra.mxu1 %vm1001_vm9, %v2733_v7  ;;  %7016 = vmatpush1.msk.msra.mxu0 %vm1001_vm9, %v2735_v12  ;;  %v2743_v7 = vld [vmem:[%s9937_s7 + $0x3d0] sm:$0xf] }
 0x91b   :  { %v8909_v18 = vpop.f32.mrb[28].mxu1  ;;  %7840 = vmatprep.subr.bf16.mxu1 %v7839_v15  ;;  %7844 = vmatprep.subr.bf16.mxu0 %v7843_v17  ;;  %v2745_v17 = vld [vmem:[%s9937_s7 + $0x410] sm:$0xf] }
 0x91c   :  { %v8920_v37 = vpop.f32.mrb[29].mxu1  ;;  %7013 = vmatmul.mubr.msk.f32.vlgmr.msra.gmra.mrb[46].mxu1 %vm2759_vm1, %v8853_v48  ;;  %7017 = vmatmul.mubr.msk.f32.vlgmr.msra.gmra.mrb[46].mxu0 %vm2759_vm1, %v8853_v48 }
 0x91d   :  { %3035 = vmatprep.mubr.f32.mxu1 %v9946_v5  ;;  %3112 = vmatprep.mubr.f32.mxu0 %v9946_v5 }
 0x91e   :  { %7842 = vmatpush1.bf16.msra.mxu1 %v7841_v52  ;;  %7846 = vmatpush1.bf16.msra.mxu0 %v7845_v63  ;;  %v2746_v52 = vld [vmem:[%s9937_s7 + $0x418] sm:$0xf] }
 0x91f   :  { %v8940_v26 = vpop.f32.mrb[30].mxu1  ;;  %7019 = vmatprep.subr.msk.mxu1 %vm1001_vm9, %v2738_v19  ;;  %7023 = vmatprep.subr.msk.mxu0 %vm1001_vm9, %v2740_v16  ;;  %v2749_v19 = vld [vmem:[%s9937_s7 + $0x430] sm:$0xf]  ;;  %v2751_v16 = vld [vmem:[%s9937_s7 + $0x440] sm:$0xf] }
 0x920   :  { %v8953_v57 = vpop.f32.mrb[31].mxu1  ;;  %7014 = vmatmul.mubr.msk.f32.gmra.mrb[48].mxu1 %vm2759_vm1, %v8877_v4  ;;  %7018 = vmatmul.mubr.msk.f32.gmra.mrb[48].mxu0 %vm2759_vm1, %v8877_v4 }
 0x921   :  { %3183 = vmatprep.mubr.f32.mxu1 %v9946_v5  ;;  %3260 = vmatprep.mubr.f32.mxu0 %v9946_v5 }
 0x922   :  { %7020 = vmatpush1.msk.msra.mxu1 %vm1001_vm9, %v2737_v24  ;;  %7024 = vmatpush1.msk.msra.mxu0 %vm1001_vm9, %v2739_v39  ;;  %v2750_v24 = vld [vmem:[%s9937_s7 + $0x438] sm:$0xf]  ;;  %v2755_v39 = vld [vmem:[%s9937_s7 + $0x460] sm:$0xf] }
 0x923   :  { %v8963_v60 = vpop.f32.mrb[32].mxu1  ;;  %7848 = vmatprep.subr.bf16.mxu1 %v7847_v32  ;;  %7852 = vmatprep.subr.bf16.mxu0 %v7851_v55  ;;  %v2752_v32 = vld [vmem:[%s9937_s7 + $0x448] sm:$0xf] }
 0x924   :  { %v8965_v2 = vpop.f32.mrb[33].mxu1  ;;  %7021 = vmatmul.mubr.msk.f32.vlgmr.msra.gmra.mrb[50].mxu1 %vm2759_vm1, %v8853_v48  ;;  %7025 = vmatmul.mubr.msk.f32.vlgmr.msra.gmra.mrb[50].mxu0 %vm2759_vm1, %v8853_v48 }
 0x925   :  { %3189 = vmatprep.mubr.f32.mxu1 %v9946_v5  ;;  %3266 = vmatprep.mubr.f32.mxu0 %v9946_v5 }
 0x926   :  { %7850 = vmatpush1.bf16.msra.mxu1 %v7849_v59  ;;  %7854 = vmatpush3.bf16.msra.mxu0 %v7851_v55  ;;  %v2757_v55 = vld [vmem:[%s9937_s7 + $0x470] sm:$0xf]  ;;  %v2756_v59 = vld [vmem:[%s9937_s7 + $0x468] sm:$0xf] }
 0x927   :  { %v8979_v12 = vpop.f32.mrb[34].mxu1  ;;  %7027 = vmatprep.subr.msk.mxu1 %vm1001_vm9, %v2742_v49  ;;  %7654 = vmatprep.subr.msk.mxu0 %vm1001_vm9, %v2743_v7  ;;  %v7932_v49 = vld [vmem:[%s9940_s9 + $0x40] sm:$0xff]  }
 0x928   :  { %v8986_v15 = vpop.f32.mrb[35].mxu1  ;;  %7022 = vmatmul.mubr.msk.f32.gmra.mrb[52].mxu1 %vm2759_vm1, %v8877_v4  ;;  %7026 = vmatmul.mubr.msk.f32.gmra.mrb[52].mxu0 %vm2759_vm1, %v8877_v4 }
 0x929   :  { %7656 = vmatprep.mubr.msk.f32.mxu0 %vm2759_vm1, %v8853_v48  ;;  %3337 = vmatprep.mubr.f32.mxu1 %v9946_v5 }
 0x92a   :  { %7028 = vmatpush1.msk.msra.mxu1 %vm1001_vm9, %v2741_v13  ;;  %7655 = vmatpush3.msk.msra.mxu0 %vm1001_vm9, %v2743_v7  ;;  %v7933_v7 = vld [vmem:[%s9940_s9] sm:$0xff]   ;;  %v7934_v13 = vld [vmem:[%s9940_s9 + $0x48] sm:$0xff]  }
 0x92b   :  { %v9006_v1 = vpop.f32.mrb[36].mxu1  ;;  %7034 = vmatprep.subr.msk.mxu0 %vm1001_vm9, %v2745_v17  ;;  %7038 = vmatprep.subr.msk.mxu1 %vm1001_vm9, %v2747_v40  ;;  %v7935_v17 = vld [vmem:[%s9940_s9 + $0xc0] sm:$0xff]   ;;  %v7936_v40 = vld [vmem:[%s9940_s9 + $0x8] sm:$0xff]  }
 0x92c   :  { %v9013_v63 = vpop.f32.mrb[37].mxu1  ;;  %7029 = vmatmul.mubr.msk.f32.vlgmr.msra.gmra.mrb[54].mxu1 %vm2759_vm1, %v8853_v48  ;;  %7657 = vmatmul.mubr.msk.f32.vlgmr.msra.gmra.mrb[54].mxu0 %vm2759_vm1, %v8877_v4 }
 0x92d   :  { %9980 = vst [vmem:[#allocation15_spill] sm:$0xff] %v9013_v63  ;;  %3343 = vmatprep.mubr.f32.mxu1 %v9946_v5  ;;  %7035 = vmatpush1.msk.msra.mxu0 %vm1001_vm9, %v2744_v11  ;;  %v7937_v11 = vld [vmem:[%s9940_s9 + $0x80] sm:$0xff]  }
 0x92e   :  { %3534 = vmatprep.mubr.f32.mxu0 %v9946_v5  ;;  %7039 = vmatpush1.msk.msra.mxu1 %vm1001_vm9, %v2746_v52  ;;  %v7938_v52 = vld [vmem:[%s9940_s9 + $0x50] sm:$0xff]  }
 0x92f   :  { %v9029_v48 = vpop.f32.mrb[38].mxu1  ;;  %7042 = vmatprep.subr.msk.mxu0 %vm1001_vm9, %v2749_v19  ;;  %7046 = vmatprep.subr.msk.mxu1 %vm1001_vm9, %v2751_v16  ;;  %v7939_v19 = vld [vmem:[%s9940_s9 + $0xc8] sm:$0xff]   ;;  %v7940_v16 = vld [vmem:[%s9940_s9 + $0x10] sm:$0xff]  }
 0x930   :  { %9981 = vst [vmem:[#allocation16_spill] sm:$0xff] %v9029_v48  ;;  %v9036_v43 = vpop.f32.mrb[39].mxu1  ;;  %7030 = vmatmul.mubr.msk.f32.gmra.mrb[56].mxu1 %vm2759_vm1, %v8877_v4  ;;  %7036 = vmatmul.mubr.msk.f32.vlgmr.msra.gmra.mrb[56].mxu0 %vm994_vm14, %v8441_v54  ;;  %v9996_v48 = vsub.s32 4, %v8530_v20 }
 0x931   :  { %9982 = vst [vmem:[#allocation17_spill] sm:$0xff] %v9036_v43  ;;  %3540 = vmatprep.mubr.f32.mxu0 %v9946_v5  ;;  %3611 = vmatprep.mubr.f32.mxu1 %v9946_v5 }
 0x932   :  { %7043 = vmatpush1.msk.msra.mxu0 %vm1001_vm9, %v2748_v42  ;;  %v7941_v42 = vld [vmem:[%s9940_s9 + $0x88] sm:$0xff]  }
 0x933   :  { %v9048_v22 = vpop.f32.mrb[40].mxu1  ;;  %7050 = vmatprep.subr.msk.mxu0 %vm1001_vm9, %v2753_v21  ;;  %v7942_v21 = vld [vmem:[%s9940_s9 + $0x58] sm:$0xff]  }
 0x934   :  { %9983 = vst [vmem:[#allocation18_spill] sm:$0xff] %v9048_v22  ;;  %v9054_v4 = vpop.f32.mrb[41].mxu1  ;;  %7037 = vmatmul.mubr.msk.f32.gmra.mrb[58].mxu0 %vm994_vm14, %v8461_v0  ;;  %7040 = vmatmul.mubr.msk.f32.vlgmr.msra.gmra.mrb[58].mxu1 %vm994_vm14, %v8441_v54  ;;  %v2011_v22 = vrot.slane %v1997_v23, %v8539_v29 }
 0x935   :  { %9984 = vst [vmem:[#allocation19_spill] sm:$0xff] %v9054_v4  ;;  %3617 = vmatprep.mubr.f32.mxu1 %v9946_v5  ;;  %3688 = vmatprep.mubr.f32.mxu0 %v9946_v5 }
 0x936   :  { %7047 = vmatpush1.msk.msra.mxu1 %vm1001_vm9, %v2750_v24  ;;  %v7943_v24 = vld [vmem:[%s9940_s9 + $0xd0] sm:$0xff]  }
 0x937   :  { %7054 = vmatprep.subr.msk.mxu1 %vm1001_vm9, %v2755_v39  ;;  %v7944_v39 = vld [vmem:[%s9940_s9 + $0x18] sm:$0xff]  }
 0x938   :  { %7041 = vmatmul.mubr.msk.f32.gmra.mrb[60].mxu1 %vm994_vm14, %v8461_v0  ;;  %7044 = vmatmul.mubr.msk.f32.vlgmr.msra.gmra.mrb[60].mxu0 %vm994_vm14, %v8441_v54 }
 0x939   :  { %3694 = vmatprep.mubr.f32.mxu0 %v9946_v5  ;;  %3765 = vmatprep.mubr.f32.mxu1 %v9946_v5 }
 0x93a   :  { %7051 = vmatpush1.msk.msra.mxu0 %vm1001_vm9, %v2752_v32  ;;  %v7945_v32 = vld [vmem:[%s9940_s9 + $0x90] sm:$0xff]  }
 0x93b   :  { %7058 = vmatprep.subr.msk.mxu0 %vm1001_vm9, %v2757_v55  ;;  %v7946_v55 = vld [vmem:[%s9940_s9 + $0x60] sm:$0xff]  }
 0x93c   :  { %7045 = vmatmul.mubr.msk.f32.gmra.mrb[62].mxu0 %vm994_vm14, %v8461_v0  ;;  %7048 = vmatmul.mubr.msk.f32.vlgmr.msra.gmra.mrb[62].mxu1 %vm994_vm14, %v8441_v54 }
 0x93d   :  { %3771 = vmatprep.mubr.f32.mxu1 %v9946_v5  ;;  %3842 = vmatprep.mubr.f32.mxu0 %v9946_v5 }
 0x93e   :  { %7055 = vmatpush1.msk.msra.mxu1 %vm1001_vm9, %v2754_v50  ;;  %v7947_v50 = vld [vmem:[%s9940_s9 + $0xd8] sm:$0xff]  }
 0x93f   :  { %7659 = vmatprep.subr.msk.mxu1 %vm1001_vm9, %v2758_v51 }
 0x940   :  { %7049 = vmatmul.mubr.msk.f32.gmra.mrb[64].mxu1 %vm994_vm14, %v8461_v0  ;;  %7052 = vmatmul.mubr.msk.f32.vlgmr.msra.gmra.mrb[64].mxu0 %vm994_vm14, %v8441_v54 }
 0x941   :  { %3848 = vmatprep.mubr.f32.mxu0 %v9946_v5  ;;  %3919 = vmatprep.mubr.f32.mxu1 %v9946_v5 }
 0x942   :  { %7059 = vmatpush1.msk.msra.mxu0 %vm1001_vm9, %v2756_v59  ;;  %v7949_v59 = vld [vmem:[%s9940_s9 + $0x98] sm:$0xff]  }
 0x943   :  { %7324 = vmatprep.subr.bf16.mxu0 %v7932_v49  ;;  %v7950_v49 = vld [vmem:[%s9940_s9 + $0x68] sm:$0xff]  }
 0x944   :  { %7053 = vmatmul.mubr.msk.f32.gmra.mrb[66].mxu0 %vm994_vm14, %v8461_v0  ;;  %7056 = vmatmul.mubr.msk.f32.vlgmr.msra.gmra.mrb[66].mxu1 %vm994_vm14, %v8441_v54 }
 0x945   :  { %3925 = vmatprep.mubr.f32.mxu1 %v9946_v5  ;;  %3996 = vmatprep.mubr.f32.mxu0 %v9946_v5 }
 0x946   :  { %7660 = vmatpush3.msk.msra.mxu1 %vm1001_vm9, %v2758_v51  ;;  %v7948_v51 = vld [vmem:[%s9940_s9 + $0x20] sm:$0xff]  }
 0x947   :  { %7346 = vmatprep.subr.bf16.mxu1 %v7935_v17  ;;  %v7953_v17 = vld [vmem:[%s9940_s9 + $0xa0] sm:$0xff]  }
 0x948   :  { %7057 = vmatmul.mubr.msk.f32.gmra.mrb[68].mxu1 %vm994_vm14, %v8461_v0  ;;  %7060 = vmatmul.mubr.msk.f32.vlgmr.msra.gmra.mrb[68].mxu0 %vm994_vm14, %v8441_v54 }
 0x949   :  { %7661 = vmatprep.mubr.msk.f32.mxu1 %vm994_vm14, %v8441_v54  ;;  %4002 = vmatprep.mubr.f32.mxu0 %v9946_v5 }
 0x94a   :  { %7325 = vmatpush3.bf16.msra.mxu0 %v7933_v7  ;;  %v7951_v7 = vld [vmem:[%s9940_s9 + $0xe0] sm:$0xff]  }
 0x94b   :  { %7326 = vmatprep.subr.bf16.mxu0 %v7934_v13  ;;  %v7952_v13 = vld [vmem:[%s9940_s9 + $0x28] sm:$0xff]  }
 0x94c   :  { %7061 = vmatmul.mubr.msk.f32.gmra.mrb[70].mxu0 %vm994_vm14, %v8461_v0  ;;  %7662 = vmatmul.mubr.msk.f32.vlgmr.msra.gmra.mrb[70].mxu1 %vm994_vm14, %v8461_v0 }
 0x94d   :  { %7347 = vmatpush3.bf16.msra.mxu1 %v7937_v11  ;;  %v7955_v11 = vld [vmem:[%s9940_s9 + $0xe8] sm:$0xff]  }
 0x94e   :  { %7327 = vmatpush3.bf16.msra.mxu0 %v7936_v40  ;;  %7348 = vmatprep.subr.bf16.mxu1 %v7939_v19  ;;  %v7954_v40 = vld [vmem:[%s9940_s9 + $0x70] sm:$0xff]   ;;  %v7957_v19 = vld [vmem:[%s9940_s9 + $0xa8] sm:$0xff]  }
 0x94f   :  { %7328 = vmatprep.subr.bf16.mxu0 %v7938_v52  ;;  %v7956_v52 = vld [vmem:[%s9940_s9 + $0x30] sm:$0xff]  }
 0x951   :  { %7349 = vmatpush3.bf16.msra.mxu1 %v7941_v42  ;;  %v7959_v42 = vld [vmem:[%s9940_s9 + $0xf0] sm:$0xff]  }
 0x952   :  { %7329 = vmatpush3.bf16.msra.mxu0 %v7940_v16  ;;  %7350 = vmatprep.subr.bf16.mxu1 %v7943_v24  ;;  %v7958_v16 = vld [vmem:[%s9940_s9 + $0x78] sm:$0xff]   ;;  %v7961_v24 = vld [vmem:[%s9940_s9 + $0xb0] sm:$0xff]  }
 0x953   :  { %7330 = vmatprep.subr.bf16.mxu0 %v7942_v21  ;;  %v7960_v21 = vld [vmem:[%s9940_s9 + $0x38] sm:$0xff]  }
 0x955   :  { %7351 = vmatpush3.bf16.msra.mxu1 %v7945_v32  ;;  %v7963_v32 = vld [vmem:[%s9940_s9 + $0x140] sm:$0xff]  }
 0x956   :  { %7331 = vmatpush3.bf16.msra.mxu0 %v7944_v39  ;;  %7352 = vmatprep.subr.bf16.mxu1 %v7947_v50  ;;  %v7962_v39 = vld [vmem:[%s9940_s9 + $0xf8] sm:$0xff]   ;;  %v7967_v50 = vld [vmem:[%s9940_s9 + $0x1c0] sm:$0xff]  }
 0x957   :  { %7332 = vmatprep.subr.bf16.mxu0 %v7946_v55  ;;  %v7964_v55 = vld [vmem:[%s9940_s9 + $0xb8] sm:$0xff]  }
 0x959   :  { %7353 = vmatpush3.bf16.msra.mxu1 %v7949_v59 }
 0x95a   :  { %7333 = vmatpush3.bf16.msra.mxu0 %v7948_v51  ;;  %7354 = vmatprep.subr.bf16.mxu1 %v7951_v7 }
 0x95b   :  { %7334 = vmatprep.subr.bf16.mxu0 %v7950_v49 }
 0x95d   :  { %7355 = vmatpush3.bf16.msra.mxu1 %v7953_v17 }
 0x95e   :  { %7335 = vmatpush3.bf16.msra.mxu0 %v7952_v13  ;;  %7356 = vmatprep.subr.bf16.mxu1 %v7955_v11 }
 0x95f   :  { %7336 = vmatprep.subr.bf16.mxu0 %v7954_v40 }
 0x961   :  { %7357 = vmatpush3.bf16.msra.mxu1 %v7957_v19 }
 0x962   :  { %7337 = vmatpush3.bf16.msra.mxu0 %v7956_v52  ;;  %7358 = vmatprep.subr.bf16.mxu1 %v7959_v42 }
 0x963   :  { %7338 = vmatprep.subr.bf16.mxu0 %v7958_v16 }
 0x965   :  { %7359 = vmatpush3.bf16.msra.mxu1 %v7961_v24 }
 0x966   :  { %7339 = vmatpush3.bf16.msra.mxu0 %v7960_v21  ;;  %7360 = vmatprep.subr.bf16.mxu1 %v7962_v39 }
 0x967   :  { %7368 = vmatprep.subr.bf16.mxu0 %v7963_v32 }
 0x969   :  { %7361 = vmatpush3.bf16.msra.mxu1 %v7964_v55 }
 0x96a   :  { %7390 = vmatprep.subr.bf16.mxu1 %v7967_v50 }
 0x9e7   :  { %v2877_v51 = vpop.f32.mrb[42].mxu1  ;;  %v2954_v59 = vpop.f32.mrb[42].mxu0 }
 0x9e8   :  { %v2879_v49 = vpop.f32.mrb[43].mxu1  ;;  %v2956_v7 = vpop.f32.mrb[43].mxu0 }
 0x9eb   :  { %v2883_v13 = vpop.f32.mrb[44].mxu1  ;;  %v9225_v17 = vpop.f32.mrb[44].mxu0 }
 0x9ec   :  { %v2885_v40 = vpop.f32.mrb[45].mxu1  ;;  %v9227_v11 = vpop.f32.mrb[45].mxu0 }
 0x9ef   :  { %v9229_v52 = vpop.f32.mrb[46].mxu1  ;;  %v9231_v19 = vpop.f32.mrb[46].mxu0 }
 0x9f0   :  { %v9233_v16 = vpop.f32.mrb[47].mxu1  ;;  %v9235_v42 = vpop.f32.mrb[47].mxu0 }
 0x9f3   :  { %v9237_v21 = vpop.f32.mrb[48].mxu1  ;;  %v9239_v24 = vpop.f32.mrb[48].mxu0 }
 0x9f4   :  { %v9241_v39 = vpop.f32.mrb[49].mxu1  ;;  %v9243_v32 = vpop.f32.mrb[49].mxu0 }
 0x9f7   :  { %v9245_v55 = vpop.f32.mrb[50].mxu1  ;;  %v9247_v50 = vpop.f32.mrb[50].mxu0 }
 0x9f8   :  { %9985 = vst [vmem:[#allocation20_spill] sm:$0xff] %v9247_v50  ;;  %v9249_v8 = vpop.f32.mrb[51].mxu1  ;;  %v9251_v5 = vpop.f32.mrb[51].mxu0 }
 0x9f9   :  { %9986 = vst [vmem:[#allocation21_spill] sm:$0xff] %v9251_v5  ;;  %v2023_v5 = vrot.slane %v1997_v23, %v9996_v48 }
 0x9fb   :  { %v9259_v0 = vpop.f32.mrb[52].mxu1  ;;  %v9261_v54 = vpop.f32.mrb[52].mxu0 }
 0x9fc   :  { %9987 = vst [vmem:[#allocation22_spill] sm:$0xff] %v9261_v54  ;;  %v9263_v56 = vpop.f32.mrb[53].mxu1  ;;  %v9265_v53 = vpop.f32.mrb[53].mxu0  ;;  %v2154_v54 = vadd.f32 %v8671_v58, %v2011_v22 }
 0x9fd   :  { %9988 = vst [vmem:[#allocation23_spill] sm:$0xff] %v9263_v56  ;;  %9989 = vst [vmem:[#allocation24_spill] sm:$0xff] %v9265_v53  ;;  %v2015_v53 = vrot.slane %v1997_v23, %v8542_v30 }
 0x9ff   :  { %v9267_v3 = vpop.f32.mrb[54].mxu1  ;;  %v9269_v45 = vpop.f32.mrb[54].mxu0  ;;  %v2229_v48 = vadd.f32 %v8909_v18, %v2015_v53  ;;  %v9310_v18 = vrot.slane %v8696_v46, %v8539_v29 }
 0xa00   :  { %9990 = vst [vmem:[#allocation25_spill] sm:$0xff] %v9267_v3  ;;  %9991 = vst [vmem:[#allocation26_spill] sm:$0xff] %v9269_v45  ;;  %v9272_v62 = vpop.f32.mrb[55].mxu1  ;;  %v9274_v4 = vpop.f32.mrb[55].mxu0 }
 0xa01   :  { %9992 = vst [vmem:[#allocation27_spill] sm:$0xff] %v9272_v62  ;;  %9993 = vst [vmem:[#allocation28_spill] sm:$0xff] %v9274_v4  ;;  %v2019_v4 = vrot.slane %v1997_v23, %v9961_v61 }
 0xa03   :  { %v9278_v10 = vpop.f32.mrb[56].mxu1  ;;  %v3536_v44 = vpop.f32.mrb[56].mxu0 }
 0xa04   :  { %9994 = vst [vmem:[#allocation29_spill] sm:$0xff] %v9278_v10  ;;  %v4084_v43 = vmul.f32 %v3536_v44, %v2877_v51  ;;  %v9282_v3 = vpop.f32.mrb[57].mxu1  ;;  %v3538_v45 = vpop.f32.mrb[57].mxu0  ;;  %v9997_v10 = vsub.s32 5, %v8530_v20  ;;  %v9294_v51 = vrot.slane %v8696_v46, %v8533_v25  ;;  %v2306_v25 = vadd.f32 %v8677_v34, %v2023_v5  ;;  %v7968_v34 = vld [vmem:[%s9940_s9 + $0x108] sm:$0xff]  }
 0xa05   :  { %9995 = vst [vmem:[#allocation30_spill] sm:$0xff] %v9282_v3  ;;  %v4085_v62 = vmul.f32 %v3538_v45, %v2879_v49  ;;  %v7965_v45 = vld [vmem:[%s9940_s9 + $0x100] sm:$0xff]  }
 0xa06   :  { %v2027_v56 = vrot.slane %v1997_v23, %v9997_v10  ;;  %v4114_v63 = vmul.f32 %v4084_v43, %v2152_v14  ;;  %v2034_v10 = vsub.s32 7, %v8530_v20  ;;  %v7966_v14 = vld [vmem:[%s9940_s9 + $0x148] sm:$0xff]  }
 0xa07   :  { %v4115_v58 = vmul.f32 %v4085_v62, %v2154_v54  ;;  %v3542_v3 = vpop.f32.mrb[58].mxu0  ;;  %v3613_v28 = vpop.f32.mrb[58].mxu1  ;;  %v2160_v54 = vadd.f32 %v8675_v31, %v2011_v22  ;;  %v2231_v62 = vadd.f32 %v8920_v37, %v2019_v4 }
 0xa08   :  { %v4099_v43 = vmul.f32 %v3542_v3, %v2883_v13  ;;  %v4086_v49 = vmul.f32 %v3613_v28, %v2954_v59  ;;  %v3544_v9 = vpop.f32.mrb[59].mxu0  ;;  %v3615_v6 = vpop.f32.mrb[59].mxu1  ;;  %v2308_v59 = vadd.f32 %v8679_v35, %v2027_v56  ;;  %v9998_v13 = vsub.s32 6, %v8530_v20 }
 0xa09   :  { %v4100_v61 = vmul.f32 %v3544_v9, %v2885_v40  ;;  %v4087_v44 = vmul.f32 %v3615_v6, %v2956_v7  ;;  %5136 = vmatprep.mubr.f32.mxu0 %v4115_v58  ;;  %v7969_v40 = vld [vmem:[%s9940_s9 + $0x180] sm:$0xff]   ;;  %v9324_v35 = vrot.slane %v1997_v23, %v2034_v10  ;;  %v2314_v10 = vadd.f32 %v8683_v38, %v2027_v56  ;;  %v7974_v6 = vld [vmem:[%s9940_s9 + $0x158] sm:$0xff]  }
 0xa0a   :  { %v4129_v3 = vmul.f32 %v4099_v43, %v2158_v27  ;;  %v4116_v28 = vmul.f32 %v4086_v49, %v2229_v48  ;;  %5137 = vmatmul.mubr.f32.vlgmr.msra.gmra.mrb[72].mxu0 %v4114_v63  ;;  %v9315_v50 = vrot.slane %v1997_v23, %v9998_v13  ;;  %v2235_v63 = vadd.f32 %v8940_v26, %v2015_v53  ;;  %v7971_v48 = vld [vmem:[%s9940_s9 + $0x1c8] sm:$0xff]  }
 0xa0b   :  { %v4130_v31 = vmul.f32 %v4100_v61, %v2160_v54  ;;  %v4117_v37 = vmul.f32 %v4087_v44, %v2231_v62  ;;  %7369 = vmatpush3.bf16.msra.mxu0 %v7965_v45  ;;  %v3619_v22 = vpop.f32.mrb[60].mxu1  ;;  %v3690_v7 = vpop.f32.mrb[60].mxu0  ;;  %v7970_v45 = vld [vmem:[%s9940_s9 + $0x150] sm:$0xff]   ;;  %v2237_v43 = vadd.f32 %v8953_v57, %v2019_v4  ;;  %v2312_v26 = vadd.f32 %v8681_v36, %v2023_v5  ;;  %v7973_v5 = vld [vmem:[%s9940_s9 + $0x188] sm:$0xff]  }
 0xa0c   :  { %v4101_v27 = vmul.f32 %v3619_v22, %v9225_v17  ;;  %v4088_v61 = vmul.f32 %v3690_v7, %v9229_v52  ;;  %v3621_v44 = vpop.f32.mrb[61].mxu1  ;;  %v3692_v58 = vpop.f32.mrb[61].mxu0  ;;  %7370 = vmatprep.subr.bf16.mxu0 %v7966_v14  ;;  %v7975_v14 = vld [vmem:[%s9940_s9 + $0x1d0] sm:$0xff]   ;;  %v2385_v54 = vadd.f32 %v8965_v2, %v9324_v35  ;;  %v2462_v62 = vadd.f32 %v8693_v41, %v9310_v18 }
 0xa0d   :  { %v4102_v23 = vmul.f32 %v3621_v44, %v9227_v11  ;;  %v4089_v53 = vmul.f32 %v3692_v58, %v9233_v16  ;;  %5141 = vmatprep.mubr.f32.mxu0 %v4130_v31  ;;  %5179 = vmatprep.mubr.f32.mxu1 %v4117_v37  ;;  %v7972_v11 = vld [vmem:[%s9940_s9 + $0x110] sm:$0xff]   ;;  %v2047_v2 = vrot.slane %v8696_v46, %v8542_v30 }
 0xa0e   :  { %v4131_v17 = vmul.f32 %v4101_v27, %v2235_v63  ;;  %v9338_v52 = vmul.f32 %v4088_v61, %v2306_v25  ;;  %5142 = vmatmul.mubr.f32.gmra.mrb[74].mxu0 %v4129_v3  ;;  %5180 = vmatmul.mubr.f32.vlgmr.msra.gmra.mrb[72].mxu1 %v4116_v28  ;;  %v2383_v25 = vadd.f32 %v8963_v60, %v9315_v50  ;;  %v7977_v41 = vld [vmem:[%s9940_s9 + $0x190] sm:$0xff]   ;;  %v7979_v63 = vld [vmem:[%s9940_s9 + $0x1d8] sm:$0xff]  }
 0xa0f   :  { %v4132_v49 = vmul.f32 %v4102_v23, %v2237_v43  ;;  %v4119_v9 = vmul.f32 %v4089_v53, %v2308_v59  ;;  %7371 = vmatpush3.bf16.msra.mxu0 %v7968_v34  ;;  %7391 = vmatpush3.bf16.msra.mxu1 %v7969_v40  ;;  %v3696_v57 = vpop.f32.mrb[62].mxu0  ;;  %v3767_v4 = vpop.f32.mrb[62].mxu1  ;;  %v2389_v31 = vadd.f32 %v8979_v12, %v9315_v50  ;;  %v7978_v40 = vld [vmem:[%s9940_s9 + $0x160] sm:$0xff]   ;;  %v9999_v12 = vsub.s32 3, %v8530_v20 }
 0xa10   :  { %v4103_v36 = vmul.f32 %v3696_v57, %v9237_v21  ;;  %v4090_v56 = vmul.f32 %v3767_v4, %v9231_v19  ;;  %v3698_v38 = vpop.f32.mrb[63].mxu0  ;;  %v3769_v16 = vpop.f32.mrb[63].mxu1  ;;  %7372 = vmatprep.subr.bf16.mxu0 %v7970_v45  ;;  %7392 = vmatprep.subr.bf16.mxu1 %v7971_v48  ;;  %v2460_v19 = vadd.f32 %v8691_v33, %v9294_v51  ;;  %v7976_v33 = vld [vmem:[%s9940_s9 + $0x118] sm:$0xff]  }
 0xa11   :  { %v4104_v60 = vmul.f32 %v3698_v38, %v9241_v39  ;;  %v4091_v21 = vmul.f32 %v3769_v16, %v9235_v42  ;;  %5184 = vmatprep.mubr.f32.mxu1 %v4132_v49  ;;  %5222 = vmatprep.mubr.f32.mxu0 %v4119_v9  ;;  %v2391_v27 = vadd.f32 %v8986_v15, %v9324_v35  ;;  %v10001_v49 = vld [vmem:[#allocation10_spill] sm:$0xff] }
 0xa12   :  { %v9365_v3 = vmul.f32 %v4103_v36, %v2312_v26  ;;  %v9367_v28 = vmul.f32 %v4090_v56, %v2383_v25  ;;  %5185 = vmatmul.mubr.f32.gmra.mrb[74].mxu1 %v4131_v17  ;;  %v2466_v58 = vadd.f32 %v8699_v47, %v9294_v51  ;;  %v2537_v43 = vadd.f32 %v9006_v1, %v2047_v2  ;;  %v10000_v51 = vld [vmem:[#allocation20_spill] sm:$0xff]  ;;  %v7982_v17 = vld [vmem:[%s9940_s9 + $0x168] sm:$0xff]  }
 0xa13   :  { %v9371_v59 = vmul.f32 %v4104_v60, %v2314_v10  ;;  %v4121_v39 = vmul.f32 %v4091_v21, %v2385_v54  ;;  %7373 = vmatpush3.bf16.msra.mxu0 %v7972_v11  ;;  %7393 = vmatpush3.bf16.msra.mxu1 %v7973_v5  ;;  %v3773_v42 = vpop.f32.mrb[64].mxu1  ;;  %v3844_v13 = vpop.f32.mrb[64].mxu0  ;;  %v7983_v10 = vld [vmem:[%s9940_s9 + $0x1e0] sm:$0xff]   ;;  %v2468_v9 = vadd.f32 %v10001_v49, %v9310_v18  ;;  %v10002_v1 = vld [vmem:[#allocation15_spill] sm:$0xff]  ;;  %v10004_v11 = vld [vmem:[#allocation21_spill] sm:$0xff]  ;;  %v10005_v56 = vsub.s32 6, %v8530_v20 }
 0xa14   :  { %v4105_v37 = vmul.f32 %v3773_v42, %v9239_v24  ;;  %v4092_v22 = vmul.f32 %v3844_v13, %v9245_v55  ;;  %v3775_v7 = vpop.f32.mrb[65].mxu1  ;;  %v3846_v34 = vpop.f32.mrb[65].mxu0  ;;  %7374 = vmatprep.subr.bf16.mxu0 %v7974_v6  ;;  %7394 = vmatprep.subr.bf16.mxu1 %v7975_v14  ;;  %v2051_v24 = vrot.slane %v8696_v46, %v9999_v12  ;;  %v7984_v54 = vld [vmem:[%s9940_s9 + $0x128] sm:$0xff]   ;;  %v7985_v60 = vld [vmem:[%s9940_s9 + $0x1a0] sm:$0xff]   ;;  %v10006_v21 = vld [vmem:[#allocation16_spill] sm:$0xff] }
 0xa15   :  { %v4106_v55 = vmul.f32 %v3775_v7, %v9243_v32  ;;  %v4093_v50 = vmul.f32 %v3846_v34, %v9249_v8  ;;  %5265 = vmatprep.mubr.f32.mxu1 %v4121_v39  ;;  %v7980_v8 = vld [vmem:[%s9940_s9 + $0x120] sm:$0xff]   ;;  %v7981_v32 = vld [vmem:[%s9940_s9 + $0x198] sm:$0xff]   ;;  %v2063_v38 = vrot.slane %v8696_v46, %v10005_v56  ;;  %v10010_v7 = vld [vmem:[#allocation24_spill] sm:$0xff] }
 0xa16   :  { %v9396_v61 = vmul.f32 %v4105_v37, %v2389_v31  ;;  %v9398_v44 = vmul.f32 %v4092_v22, %v2460_v19  ;;  %v2539_v57 = vadd.f32 %v10002_v1, %v2051_v24  ;;  %v2543_v19 = vadd.f32 %v10006_v21, %v2047_v2  ;;  %v10008_v39 = vld [vmem:[#allocation25_spill] sm:$0xff]  ;;  %v7987_v31 = vld [vmem:[%s9940_s9 + $0x1e8] sm:$0xff]   ;;  %v7991_v49 = vld [vmem:[%s9940_s9 + $0x1f0] sm:$0xff]  }
 0xa17   :  { %v9402_v45 = vmul.f32 %v4106_v55, %v2391_v27  ;;  %v9404_v48 = vmul.f32 %v4093_v50, %v2462_v62  ;;  %7375 = vmatpush3.bf16.msra.mxu0 %v7976_v33  ;;  %7395 = vmatpush3.bf16.msra.mxu1 %v7977_v41  ;;  %v3850_v15 = vpop.f32.mrb[66].mxu0  ;;  %v3921_v35 = vpop.f32.mrb[66].mxu1  ;;  %v10007_v62 = vld [vmem:[#allocation22_spill] sm:$0xff]  ;;  %v7986_v41 = vld [vmem:[%s9940_s9 + $0x170] sm:$0xff]   ;;  %v10009_v37 = vld [vmem:[#allocation17_spill] sm:$0xff] }
 0xa18   :  { %v4107_v47 = vmul.f32 %v3850_v15, %v9259_v0  ;;  %v4094_v23 = vmul.f32 %v3921_v35, %v10000_v51  ;;  %v3852_v53 = vpop.f32.mrb[67].mxu0  ;;  %v3923_v26 = vpop.f32.mrb[67].mxu1  ;;  %7376 = vmatprep.subr.bf16.mxu0 %v7978_v40  ;;  %7396 = vmatprep.subr.bf16.mxu1 %v7979_v63  ;;  %v10003_v0 = vld [vmem:[#allocation23_spill] sm:$0xff]  ;;  %v2545_v22 = vadd.f32 %v10009_v37, %v2051_v24  ;;  %v10013_v50 = vld [vmem:[#allocation12_spill] sm:$0xff] }
 0xa19   :  { %v4108_v4 = vmul.f32 %v3852_v53, %v10003_v0  ;;  %v4095_v5 = vmul.f32 %v3923_v26, %v10004_v11  ;;  %v10011_v34 = vld [vmem:[#allocation27_spill] sm:$0xff]  ;;  %v7988_v24 = vld [vmem:[%s9940_s9 + $0x130] sm:$0xff]  }
 0xa1a   :  { %v9426_v25 = vmul.f32 %v4107_v47, %v2466_v58  ;;  %v9428_v36 = vmul.f32 %v4094_v23, %v2537_v43  ;;  %v10012_v27 = vld [vmem:[#allocation11_spill] sm:$0xff]  ;;  %v10015_v47 = vld [vmem:[#allocation29_spill] sm:$0xff]  ;;  %v10016_v23 = vld [vmem:[#allocation26_spill] sm:$0xff] }
 0xa1b   :  { %v9433_v16 = vmul.f32 %v4108_v4, %v2468_v9  ;;  %v9435_v6 = vmul.f32 %v4095_v5, %v2539_v57  ;;  %7377 = vmatpush3.bf16.msra.mxu0 %v7980_v8  ;;  %7397 = vmatpush3.bf16.msra.mxu1 %v7981_v32  ;;  %v3927_v18 = vpop.f32.mrb[68].mxu1  ;;  %v3998_v14 = vpop.f32.mrb[68].mxu0  ;;  %v7989_v8 = vld [vmem:[%s9940_s9 + $0x1a8] sm:$0xff]   ;;  %v10014_v32 = vld [vmem:[#allocation18_spill] sm:$0xff]  ;;  %v10019_v4 = vld [vmem:[#allocation28_spill] sm:$0xff] }
 0xa1c   :  { %v4109_v46 = vmul.f32 %v3927_v18, %v10007_v62  ;;  %v4096_v42 = vmul.f32 %v3998_v14, %v10008_v39  ;;  %v3929_v13 = vpop.f32.mrb[69].mxu1  ;;  %v4000_v33 = vpop.f32.mrb[69].mxu0  ;;  %7378 = vmatprep.subr.bf16.mxu0 %v7982_v17  ;;  %7398 = vmatprep.subr.bf16.mxu1 %v7983_v10  ;;  %v2696_v43 = vadd.f32 %v10014_v32, %v2063_v38  ;;  %v7990_v10 = vld [vmem:[%s9940_s9 + $0x178] sm:$0xff]   ;;  %v10017_v9 = vld [vmem:[#allocation19_spill] sm:$0xff]  ;;  %v10018_v57 = vld [vmem:[#allocation30_spill] sm:$0xff] }
 0xa1d   :  { %v4110_v2 = vmul.f32 %v3929_v13, %v10010_v7  ;;  %v4097_v40 = vmul.f32 %v4000_v33, %v10011_v34  ;;  %v2691_v1 = vadd.f32 %v10017_v9, %v2063_v38  ;;  %v10020_v5 = vld [vmem:[#allocation13_spill] sm:$0xff]  ;;  %v10021_v14 = vld [vmem:[#allocation14_spill] sm:$0xff]  ;;  %v7993_v21 = vld [vmem:[%s9940_s9 + $0x1b0] sm:$0xff]  }
 0xa1e   :  { %v9455_v63 = vmul.f32 %v4109_v46, %v2543_v19  ;;  %v9458_v12 = vmul.f32 %v4096_v42, %v10012_v27  ;;  %v7992_v38 = vld [vmem:[%s9940_s9 + $0x138] sm:$0xff]   ;;  %v7995_v62 = vld [vmem:[%s9940_s9 + $0x240] sm:$0xff]   ;;  %v7998_v13 = vld [vmem:[%s9940_s9 + $0x248] sm:$0xff]  }
 0xa1f   :  { %v9460_v55 = vmul.f32 %v4110_v2, %v2545_v22  ;;  %v9463_v58 = vmul.f32 %v4097_v40, %v10013_v50  ;;  %7379 = vmatpush3.bf16.msra.mxu0 %v7984_v54  ;;  %7399 = vmatpush3.bf16.msra.mxu1 %v7985_v60  ;;  %v4004_v15 = vpop.f32.mrb[70].mxu0  ;;  %v7663_v35 = vpop.f32.mrb[70].mxu1  ;;  %v7994_v19 = vld [vmem:[%s9940_s9 + $0x1f8] sm:$0xff]   ;;  %v7997_v39 = vld [vmem:[%s9940_s9 + $0x200] sm:$0xff]   ;;  %v8000_v33 = vld [vmem:[%s9940_s9 + $0x208] sm:$0xff]  }
 0xa20   :  { %v4111_v51 = vmul.f32 %v4004_v15, %v10015_v47  ;;  %v4113_v53 = vmul.f32 %v7663_v35, %v10016_v23  ;;  %v4006_v26 = vpop.f32.mrb[71].mxu0  ;;  %v4075_v17 = vpop.f32.mrb[71].mxu1  ;;  %7380 = vmatprep.subr.bf16.mxu0 %v7986_v41  ;;  %7400 = vmatprep.subr.bf16.mxu1 %v7987_v31  ;;  %v7996_v46 = vld [vmem:[%s9940_s9 + $0x1b8] sm:$0xff]   ;;  %v7999_v42 = vld [vmem:[%s9940_s9 + $0x2c0] sm:$0xff]   ;;  %v8002_v31 = vld [vmem:[%s9940_s9 + $0x250] sm:$0xff]  }
 0xa21   :  { %v4112_v0 = vmul.f32 %v4006_v26, %v10018_v57  ;;  %v4098_v11 = vmul.f32 %v4075_v17, %v10019_v4  ;;  %v8001_v41 = vld [vmem:[%s9940_s9 + $0x280] sm:$0xff]   ;;  %v8005_v37 = vld [vmem:[%s9940_s9 + $0x288] sm:$0xff]   ;;  %v8013_v7 = vld [vmem:[%s9940_s9 + $0x298] sm:$0xff]  }
 0xa22   :  { %v9484_v56 = vmul.f32 %v4111_v51, %v10020_v5  ;;  %v9486_v18 = vmul.f32 %v4113_v53, %v2696_v43  ;;  %v8010_v22 = vld [vmem:[%s9940_s9 + $0x260] sm:$0xff]   ;;  %v8014_v2 = vld [vmem:[%s9940_s9 + $0x268] sm:$0xff]   ;;  %v8018_v50 = vld [vmem:[%s9940_s9 + $0x270] sm:$0xff]  }
 0xa23   :  { %v9489_v54 = vmul.f32 %v4112_v0, %v10021_v14  ;;  %v9491_v60 = vmul.f32 %v4098_v11, %v2691_v1  ;;  %7381 = vmatpush3.bf16.msra.mxu0 %v7988_v24  ;;  %7401 = vmatpush3.bf16.msra.mxu1 %v7989_v8  ;;  %v8015_v34 = vld [vmem:[%s9940_s9 + $0x2e0] sm:$0xff]   ;;  %v8016_v40 = vld [vmem:[%s9940_s9 + $0x228] sm:$0xff]   ;;  %v8020_v35 = vld [vmem:[%s9940_s9 + $0x230] sm:$0xff]  }
 0xa24   :  { %7382 = vmatprep.subr.bf16.mxu0 %v7990_v10  ;;  %7402 = vmatprep.subr.bf16.mxu1 %v7991_v49  ;;  %v8017_v27 = vld [vmem:[%s9940_s9 + $0x2a0] sm:$0xff]   ;;  %v8019_v15 = vld [vmem:[%s9940_s9 + $0x2e8] sm:$0xff]   ;;  %v8022_v8 = vld [vmem:[%s9940_s9 + $0x278] sm:$0xff]  }
 0xa25   :  { %v8021_v24 = vld [vmem:[%s9940_s9 + $0x2a8] sm:$0xff]   ;;  %v8023_v32 = vld [vmem:[%s9940_s9 + $0x2f0] sm:$0xff]   ;;  %v8024_v43 = vld [vmem:[%s9940_s9 + $0x238] sm:$0xff]  }
 0xa26   :  { %v8025_v47 = vld [vmem:[%s9940_s9 + $0x2b0] sm:$0xff]   ;;  %v8026_v51 = vld [vmem:[%s9940_s9 + $0x2f8] sm:$0xff]   ;;  %v8027_v23 = vld [vmem:[%s9940_s9 + $0x340] sm:$0xff]  }
 0xa27   :  { %7383 = vmatpush3.bf16.msra.mxu0 %v7992_v38  ;;  %7403 = vmatpush3.bf16.msra.mxu1 %v7993_v21  ;;  %v8028_v53 = vld [vmem:[%s9940_s9 + $0x2b8] sm:$0xff]   ;;  %v8029_v26 = vld [vmem:[%s9940_s9 + $0x300] sm:$0xff]   ;;  %v8030_v10 = vld [vmem:[%s9940_s9 + $0x348] sm:$0xff]  }
 0xa28   :  { %7404 = vmatprep.subr.bf16.mxu1 %v7994_v19  ;;  %7412 = vmatprep.subr.bf16.mxu0 %v7995_v62  ;;  %v8031_v17 = vld [vmem:[%s9940_s9 + $0x380] sm:$0xff]   ;;  %v8032_v49 = vld [vmem:[%s9940_s9 + $0x308] sm:$0xff]   ;;  %v8033_v9 = vld [vmem:[%s9940_s9 + $0x350] sm:$0xff]   ;;  %v10022_v62 = vmov 0.0  }
 0xa29   :  { %v8034_v1 = vld [vmem:[%s9940_s9 + $0x388] sm:$0xff]   ;;  %v8043_v0 = vld [vmem:[%s9940_s9 + $0x3a0] sm:$0xff]   ;;  %v8045_v11 = vld [vmem:[%s9940_s9 + $0x370] sm:$0xff]  }
 0xa2a   :  { %5223 = vmatmul.mubr.f32.vlgmr.msra.gmra.mrb[76].mxu0 %v9338_v52  ;;  %v8003_v52 = vld [vmem:[%s9940_s9 + $0x2c8] sm:$0xff]   ;;  %v8047_v14 = vld [vmem:[%s9940_s9 + $0x330] sm:$0xff]   ;;  %v8050_v21 = vld [vmem:[%s9940_s9 + $0x338] sm:$0xff]  }
 0xa2b   :  { %5227 = vmatprep.mubr.f32.mxu0 %v9371_v59  ;;  %7405 = vmatpush3.bf16.msra.mxu1 %v7996_v46  ;;  %v8004_v59 = vld [vmem:[%s9940_s9 + $0x210] sm:$0xff]   ;;  %v8042_v57 = vld [vmem:[%s9940_s9 + $0x368] sm:$0xff]   ;;  %v8051_v19 = vld [vmem:[%s9940_s9 + $0x3b8] sm:$0xff]   ;;  %v10023_v46 = vmov 0.0|0.0  }
 0xa2c   :  { %7413 = vmatpush3.bf16.msra.mxu0 %v7997_v39  ;;  %7434 = vmatprep.subr.bf16.mxu1 %v7999_v42  ;;  %v8044_v4 = vld [vmem:[%s9940_s9 + $0x328] sm:$0xff]   ;;  %v8049_v38 = vld [vmem:[%s9940_s9 + $0x3b0] sm:$0xff]  }
 0xa2d   :  { %7414 = vmatprep.subr.bf16.mxu0 %v7998_v13  ;;  %v8046_v5 = vld [vmem:[%s9940_s9 + $0x3a8] sm:$0xff]   ;;  %v8118_v39 = vld [vmem:[%s9936_s6 + $0x10] sm:$0xf] }
 0xa2e   :  { %5228 = vmatmul.mubr.f32.gmra.mrb[78].mxu0 %v9365_v3  ;;  %5266 = vmatmul.mubr.f32.vlgmr.msra.gmra.mrb[76].mxu1 %v9367_v28  ;;  %v8006_v3 = vld [vmem:[%s9940_s9 + $0x258] sm:$0xff]   ;;  %v8007_v28 = vld [vmem:[%s9940_s9 + $0x2d0] sm:$0xff]  }
 0xa2f   :  { %5270 = vmatprep.mubr.f32.mxu1 %v9402_v45  ;;  %5308 = vmatprep.mubr.f32.mxu0 %v9404_v48  ;;  %v8008_v45 = vld [vmem:[%s9940_s9 + $0x218] sm:$0xff]   ;;  %v8009_v48 = vld [vmem:[%s9940_s9 + $0x290] sm:$0xff]  }
 0xa30   :  { %7415 = vmatpush3.bf16.msra.mxu0 %v8000_v33  ;;  %7435 = vmatpush3.bf16.msra.mxu1 %v8001_v41 }
 0xa31   :  { %7416 = vmatprep.subr.bf16.mxu0 %v8002_v31  ;;  %7436 = vmatprep.subr.bf16.mxu1 %v8003_v52 }
 0xa32   :  { %5271 = vmatmul.mubr.f32.gmra.mrb[78].mxu1 %v9396_v61  ;;  %v8011_v61 = vld [vmem:[%s9940_s9 + $0x2d8] sm:$0xff]  }
 0xa33   :  { %5351 = vmatprep.mubr.f32.mxu1 %v9435_v6  ;;  %v8012_v6 = vld [vmem:[%s9940_s9 + $0x220] sm:$0xff]  }
 0xa34   :  { %7417 = vmatpush3.bf16.msra.mxu0 %v8004_v59  ;;  %7437 = vmatpush3.bf16.msra.mxu1 %v8005_v37 }
 0xa35   :  { %7418 = vmatprep.subr.bf16.mxu0 %v8006_v3  ;;  %7438 = vmatprep.subr.bf16.mxu1 %v8007_v28 }
 0xa38   :  { %7419 = vmatpush3.bf16.msra.mxu0 %v8008_v45  ;;  %7439 = vmatpush3.bf16.msra.mxu1 %v8009_v48 }
 0xa39   :  { %7420 = vmatprep.subr.bf16.mxu0 %v8010_v22  ;;  %7440 = vmatprep.subr.bf16.mxu1 %v8011_v61 }
 0xa3c   :  { %7421 = vmatpush3.bf16.msra.mxu0 %v8012_v6  ;;  %7441 = vmatpush3.bf16.msra.mxu1 %v8013_v7 }
 0xa3d   :  { %7422 = vmatprep.subr.bf16.mxu0 %v8014_v2  ;;  %7442 = vmatprep.subr.bf16.mxu1 %v8015_v34 }
 0xa40   :  { %7423 = vmatpush3.bf16.msra.mxu0 %v8016_v40  ;;  %7443 = vmatpush3.bf16.msra.mxu1 %v8017_v27 }
 0xa41   :  { %7424 = vmatprep.subr.bf16.mxu0 %v8018_v50  ;;  %7444 = vmatprep.subr.bf16.mxu1 %v8019_v15 }
 0xa44   :  { %7425 = vmatpush3.bf16.msra.mxu0 %v8020_v35  ;;  %7445 = vmatpush3.bf16.msra.mxu1 %v8021_v24 }
 0xa45   :  { %7426 = vmatprep.subr.bf16.mxu0 %v8022_v8  ;;  %7446 = vmatprep.subr.bf16.mxu1 %v8023_v32 }
 0xa48   :  { %7427 = vmatpush3.bf16.msra.mxu0 %v8024_v43  ;;  %7447 = vmatpush3.bf16.msra.mxu1 %v8025_v47 }
 0xa49   :  { %7448 = vmatprep.subr.bf16.mxu1 %v8026_v51  ;;  %7456 = vmatprep.subr.bf16.mxu0 %v8027_v23 }
 0xa4b   :  { %5309 = vmatmul.mubr.f32.vlgmr.msra.gmra.mrb[80].mxu0 %v9398_v44  ;;  %v8035_v44 = vld [vmem:[%s9940_s9 + $0x310] sm:$0xff]  }
 0xa4c   :  { %5313 = vmatprep.mubr.f32.mxu0 %v9433_v16  ;;  %7449 = vmatpush3.bf16.msra.mxu1 %v8028_v53  ;;  %v8036_v16 = vld [vmem:[%s9940_s9 + $0x358] sm:$0xff]  }
 0xa4d   :  { %7457 = vmatpush3.bf16.msra.mxu0 %v8029_v26  ;;  %7664 = vmatprep.subr.bf16.mxu1 %v8031_v17 }
 0xa4e   :  { %7458 = vmatprep.subr.bf16.mxu0 %v8030_v10 }
 0xa4f   :  { %5314 = vmatmul.mubr.f32.gmra.mrb[82].mxu0 %v9426_v25  ;;  %5352 = vmatmul.mubr.f32.vlgmr.msra.gmra.mrb[80].mxu1 %v9428_v36  ;;  %v8037_v25 = vld [vmem:[%s9940_s9 + $0x390] sm:$0xff]   ;;  %v8038_v36 = vld [vmem:[%s9940_s9 + $0x318] sm:$0xff]  }
 0xa50   :  { %5356 = vmatprep.mubr.f32.mxu1 %v9460_v55  ;;  %5394 = vmatprep.mubr.f32.mxu0 %v9463_v58  ;;  %v8039_v55 = vld [vmem:[%s9940_s9 + $0x360] sm:$0xff]   ;;  %v8040_v58 = vld [vmem:[%s9940_s9 + $0x398] sm:$0xff]  }
 0xa51   :  { %7459 = vmatpush3.bf16.msra.mxu0 %v8032_v49  ;;  %7665 = vmatpush3.bf16.msra.mxu1 %v8031_v17 }
 0xa52   :  { %7460 = vmatprep.subr.bf16.mxu0 %v8033_v9  ;;  %7666 = vmatprep.subr.bf16.mxu1 %v8034_v1 }
 0xa53   :  { %5357 = vmatmul.mubr.f32.gmra.mrb[82].mxu1 %v9455_v63  ;;  %v8041_v63 = vld [vmem:[%s9940_s9 + $0x320] sm:$0xff]  }
 0xa54   :  { %7680 = vmatprep.mubr.f32.mxu1 %v9491_v60  ;;  %v8048_v60 = vld [vmem:[%s9940_s9 + $0x378] sm:$0xff]  }
 0xa55   :  { %7461 = vmatpush3.bf16.msra.mxu0 %v8035_v44  ;;  %7667 = vmatpush3.bf16.msra.mxu1 %v8034_v1 }
 0xa56   :  { %7462 = vmatprep.subr.bf16.mxu0 %v8036_v16  ;;  %7668 = vmatprep.subr.bf16.mxu1 %v8037_v25 }
 0xa59   :  { %7463 = vmatpush3.bf16.msra.mxu0 %v8038_v36  ;;  %7669 = vmatpush3.bf16.msra.mxu1 %v8037_v25 }
 0xa5a   :  { %7464 = vmatprep.subr.bf16.mxu0 %v8039_v55  ;;  %7670 = vmatprep.subr.bf16.mxu1 %v8040_v58 }
 0xa5d   :  { %7465 = vmatpush3.bf16.msra.mxu0 %v8041_v63  ;;  %7671 = vmatpush3.bf16.msra.mxu1 %v8040_v58 }
 0xa5e   :  { %7466 = vmatprep.subr.bf16.mxu0 %v8042_v57  ;;  %7672 = vmatprep.subr.bf16.mxu1 %v8043_v0 }
 0xa61   :  { %7467 = vmatpush3.bf16.msra.mxu0 %v8044_v4  ;;  %7673 = vmatpush3.bf16.msra.mxu1 %v8043_v0 }
 0xa62   :  { %7468 = vmatprep.subr.bf16.mxu0 %v8045_v11  ;;  %7674 = vmatprep.subr.bf16.mxu1 %v8046_v5 }
 0xa65   :  { %7469 = vmatpush3.bf16.msra.mxu0 %v8047_v14  ;;  %7675 = vmatpush3.bf16.msra.mxu1 %v8046_v5 }
 0xa66   :  { %7470 = vmatprep.subr.bf16.mxu0 %v8048_v60  ;;  %7676 = vmatprep.subr.bf16.mxu1 %v8049_v38 }
 0xa69   :  { %7471 = vmatpush3.bf16.msra.mxu0 %v8050_v21  ;;  %7677 = vmatpush3.bf16.msra.mxu1 %v8049_v38 }
 0xa6a   :  { %7678 = vmatprep.subr.bf16.mxu1 %v8051_v19  ;;  %7691 = vmatprep.subr.mxu0 %v10022_v62 }
 0xa6c   :  { %5395 = vmatmul.mubr.f32.vlgmr.msra.gmra.mrb[84].mxu0 %v9458_v12 }
 0xa6d   :  { %5399 = vmatprep.mubr.f32.mxu0 %v9489_v54  ;;  %7679 = vmatpush3.bf16.msra.mxu1 %v8051_v19  ;;  %v5687_v19 = vld [vmem:[%s9936_s6 + $0x48] sm:$0xff] }
 0xa6e   :  { %7855 = vmatprep.subr.bf16.mxu1 %v10023_v46  ;;  %7692 = vmatpush3.msk.msra.mxu0 %vm1001_vm9, %v8118_v39  ;;  %v5688_v39 = vld [vmem:[%s9936_s6 + $0x50] sm:$0x3] }
 0xa6f   :  { %7696 = vmatprep.subr.mxu0 %v10022_v62 }
 0xa70   :  { %5400 = vmatmul.mubr.f32.gmra.mrb[86].mxu0 %v9484_v56  ;;  %7681 = vmatmul.mubr.f32.vlgmr.msra.gmra.mrb[84].mxu1 %v9486_v18 }
 0xa71   :  { %7687 = vmatprep.mubr.msk.bf16.mxu1 %vm8121_vm0, %v10022_v62  ;;  %7693 = vmatprep.mubr.msk.f32.mxu0 %vm8121_vm0, %v10022_v62 }
 0xadd   :  { %v7340_v12 = vpop.f32.mrb[72].mxu0 }
 0xade   :  { %v7341_v54 = vpop.f32.mrb[73].mxu0 }
 0xadf   :  { %v7342_v42 = vadd.f32 %v7341_v54, %v7340_v12  ;;  %v7858_v54 = vpack.c.bf16 %v5688_v39, %v5687_v19 }
 0xae1   :  { %v7343_v13 = vpop.f32.mrb[74].mxu0  ;;  %v7362_v33 = vpop.f32.mrb[72].mxu1 }
 0xae2   :  { %v7344_v41 = vpop.f32.mrb[75].mxu0  ;;  %v7363_v31 = vpop.f32.mrb[73].mxu1 }
 0xae3   :  { %v7345_v52 = vadd.f32 %v7344_v41, %v7343_v13  ;;  %v7364_v59 = vadd.f32 %v7363_v31, %v7362_v33  ;;  %v10025_v33 = vld [vmem:[#allocation9_spill] sm:$0xff]  ;;  %v10026_v41 = vld [vmem:[#allocation4_spill] sm:$0xff] }
 0xae4   :  { %v10027_v31 = vld [vmem:[#allocation5_spill] sm:$0xff] }
 0xae5   :  { %v5182_v37 = vadd.f32 %v7364_v59, %v7342_v42  ;;  %v7365_v3 = vpop.f32.mrb[74].mxu1  ;;  %v5790_v59 = vld [vmem:[%s9937_s7 + $0x140] sm:$0xff] }
 0xae6   :  { %v7366_v56 = vpop.f32.mrb[75].mxu1 }
 0xae7   :  { %v7367_v28 = vadd.f32 %v7366_v56, %v7365_v3  ;;  %v5789_v56 = vld [vmem:[%s9937_s7 + $0x138] sm:$0xff] }
 0xae9   :  { %v5187_v18 = vadd.f32 %v7367_v28, %v7345_v52  ;;  %v5787_v52 = vld [vmem:[%s9937_s7 + $0x98] sm:$0xff] }
 0xaea   :  { %v7864_v3 = vpack.c.bf16 %v5790_v59, %v5787_v52  ;;  %v5976_v52 = vld [vmem:[%s9937_s7 + $0x3e8] sm:$0xf] }
 0xaeb   :  { %v5978_v59 = vld [vmem:[%s9937_s7 + $0x488] sm:$0xf] }
 0xafd   :  { %v7384_v45 = vpop.f32.mrb[76].mxu0 }
 0xafe   :  { %v7385_v48 = vpop.f32.mrb[77].mxu0 }
 0xaff   :  { %v7386_v22 = vadd.f32 %v7385_v48, %v7384_v45 }
 0xb01   :  { %v5225_v61 = vadd.f32 %v7386_v22, %v5182_v37  ;;  %v7387_v6 = vpop.f32.mrb[78].mxu0  ;;  %v7406_v7 = vpop.f32.mrb[76].mxu1  ;;  %v5786_v37 = vld [vmem:[%s9937_s7 + $0x90] sm:$0xff] }
 0xb02   :  { %v7388_v2 = vpop.f32.mrb[79].mxu0  ;;  %v7407_v34 = vpop.f32.mrb[77].mxu1  ;;  %v7866_v28 = vpack.c.bf16 %v5789_v56, %v5786_v37  ;;  %v5979_v37 = vld [vmem:[%s9937_s7 + $0x490] sm:$0xf] }
 0xb03   :  { %v7389_v40 = vadd.f32 %v7388_v2, %v7387_v6  ;;  %v7408_v27 = vadd.f32 %v7407_v34, %v7406_v7  ;;  %v7190_v6 = vld [vmem:[%s9936_s6 + $0x58] ss:$0 sm:$0xff] }
 0xb05   :  { %v5230_v50 = vadd.f32 %v7389_v40, %v5187_v18  ;;  %v5268_v15 = vadd.f32 %v7408_v27, %v5225_v61  ;;  %v7409_v35 = vpop.f32.mrb[78].mxu1 }
 0xb06   :  { %v7410_v24 = vpop.f32.mrb[79].mxu1 }
 0xb07   :  { %v7411_v8 = vadd.f32 %v7410_v24, %v7409_v35 }
 0xb09   :  { %v5273_v32 = vadd.f32 %v7411_v8, %v5230_v50 }
 0xb1e   :  { %v7428_v43 = vpop.f32.mrb[80].mxu0 }
 0xb1f   :  { %v7429_v47 = vpop.f32.mrb[81].mxu0 }
 0xb20   :  { %v7430_v51 = vadd.f32 %v7429_v47, %v7428_v43 }
 0xb22   :  { %v5311_v23 = vadd.f32 %v7430_v51, %v5268_v15  ;;  %v7431_v53 = vpop.f32.mrb[82].mxu0  ;;  %v7450_v26 = vpop.f32.mrb[80].mxu1 }
 0xb23   :  { %v7432_v17 = vpop.f32.mrb[83].mxu0  ;;  %v7451_v10 = vpop.f32.mrb[81].mxu1 }
 0xb24   :  { %v7433_v49 = vadd.f32 %v7432_v17, %v7431_v53  ;;  %v7452_v9 = vadd.f32 %v7451_v10, %v7450_v26 }
 0xb26   :  { %v5316_v1 = vadd.f32 %v7433_v49, %v5273_v32  ;;  %v5354_v44 = vadd.f32 %v7452_v9, %v5311_v23  ;;  %v7453_v16 = vpop.f32.mrb[82].mxu1 }
 0xb27   :  { %v7454_v25 = vpop.f32.mrb[83].mxu1 }
 0xb28   :  { %v7455_v36 = vadd.f32 %v7454_v25, %v7453_v16 }
 0xb2a   :  { %v5359_v55 = vadd.f32 %v7455_v36, %v5316_v1 }
 0xb3f   :  { %v7472_v58 = vpop.f32.mrb[84].mxu0 }
 0xb40   :  { %v7473_v63 = vpop.f32.mrb[85].mxu0 }
 0xb41   :  { %v7474_v57 = vadd.f32 %v7473_v63, %v7472_v58 }
 0xb43   :  { %v7475_v0 = vpop.f32.mrb[86].mxu0  ;;  %v7682_v4 = vpop.f32.mrb[84].mxu1  ;;  %v5397_v11 = vadd.f32 %v7474_v57, %v5354_v44  ;;  %v5970_v57 = vld [vmem:[%s9937_s7 + $0x298] sm:$0xff] }
 0xb44   :  { %v7476_v5 = vpop.f32.mrb[87].mxu0  ;;  %v5439_v14 = vpop.f32.mrb[85].mxu1 }
 0xb45   :  { %v7477_v60 = vadd.f32 %v7476_v5, %v7475_v0  ;;  %v5440_v38 = vadd.f32 %v5439_v14, %v5397_v11  ;;  %v5973_v0 = vld [vmem:[%s9937_s7 + $0x340] sm:$0xff]  ;;  %v5791_v5 = vld [vmem:[%s9937_s7 + $0x148] sm:$0xff]  ;;  %v5969_v14 = vld [vmem:[%s9937_s7 + $0x290] sm:$0xff] }
 0xb46   :  { %v5788_v11 = vld [vmem:[%s9937_s7 + $0xa0] sm:$0xff] }
 0xb47   :  { %v5402_v21 = vadd.f32 %v7477_v60, %v5359_v55  ;;  %v5972_v60 = vld [vmem:[%s9937_s7 + $0x338] sm:$0xff] }
 0xb48   :  { %v7872_v39 = vpack.c.bf16 %v5972_v60, %v5969_v14 }
 0xb49   :  { %v5445_v12 = vadd.f32 %v7682_v4, %v5402_v21  ;;  %v7876_v4 = vpack.c.bf16 %v5973_v0, %v5970_v57 }
 0xb4b   :  { %v7856_v42 = vpack.c.bf16 %v5445_v12, %v5440_v38  ;;  %v7868_v38 = vpack.c.bf16 %v5791_v5, %v5788_v11  ;;  %v10028_v12 = vld [vmem:[#allocation2_spill] sm:$0xff] }
 0xb4d   :  { %7857 = vmatpush3.bf16.msra.mxu1 %v7856_v42  ;;  %v5971_v42 = vld [vmem:[%s9937_s7 + $0x330] sm:$0xff] }
 0xb4e   :  { %7860 = vmatprep.subr.msk.bf16.mxu1 %vm8255_vm13, %v7858_v54 }
 0xb50   :  { %7688 = vmatmul.mubr.msk.bf16.vlgmr.msra.gmra.mrb[88].mxu1 %vm829_vm10, %v10025_v33 }
 0xb51   :  { %7706 = vmatprep.mubr.msk.f32.mxu1 %vm705_vm3, %v10026_v41  ;;  %7863 = vmatpush3.bf16.msk.msra.mxu1 %vm8255_vm13, %v7858_v54  ;;  %v5968_v54 = vld [vmem:[%s9937_s7 + $0x288] sm:$0xff]  ;;  %v5975_v41 = vld [vmem:[%s9937_s7 + $0x3e0] sm:$0xf]  ;;  %vm6480_vm13 = vcmask 523264  }
 0xb52   :  { %7865 = vmatprep.subr.bf16.mxu1 %v7864_v3  ;;  %v7874_v13 = vpack.c.bf16 %v5971_v42, %v5968_v54  ;;  %v8062_v3 = vld [vmem:[%s9941_s10 + $0x80] sm:$0xff]  }
 0xb58   :  { %7707 = vmatmul.mubr.msk.f32.vlgmr.msra.gmra.mrb[86].mxu1 %vm705_vm3, %v10027_v31  ;;  %v5974_v31 = vld [vmem:[%s9937_s7 + $0x3d8] sm:$0xf] }
 0xb59   :  { %5880 = vmatprep.mubr.f32.mxu1 %v10022_v62  ;;  %7867 = vmatpush1.bf16.msra.mxu1 %v7866_v28 }
 0xb5a   :  { %7877 = vmatprep.subr.bf16.mxu1 %v7876_v4 }
 0xc23   :  { %v5514_v18 = vpop.f32.mrb[88].mxu1 }
 0xc24   :  { %v7186_v45 = vmul.f32 -1.442695, %v5514_v18  ;;  %v7689_v48 = vpop.f32.mrb[89].mxu1  ;;  %v5520_v32 = vmul.f32 1.6765325, %v5514_v18 }
 0xc25   :  { %v5517_v22 = vpop.f32.mrb[90].mxu1 }
 0xc26   :  { %8104 = vpow2.f32 %v7186_v45  ;;  %v7690_v61 = vpop.f32.mrb[91].mxu1  ;;  %v8052_v45 = vld [vmem:[%s9941_s10 + $0x40] sm:$0xff]  }
 0xc27   :  { %v8053_v61 = vld [vmem:[%s9941_s10] sm:$0xff]  }
 0xc2b   :  { %v7708_v7 = vpop.f32.mrb[86].mxu1 }
 0xc2c   :  { %v5769_v2 = vadd.f32 %v7708_v7, %v7190_v6  ;;  %v5763_v34 = vpop.f32.mrb[87].mxu1  ;;  %v10029_v7 = vld [vmem:[#allocation6_spill] sm:$0xff] }
 0xc2d   :  { %v5764_v40 = vadd.f32 %v7190_v6, %v5763_v34  ;;  %v8054_v6 = vld [vmem:[%s9941_s10 + $0x48] sm:$0xff]  }
 0xc2e   :  { %v7195_v27 = vmul.f32 -1.442695, %v5769_v2  ;;  %v8055_v34 = vld [vmem:[%s9941_s10 + $0x8] sm:$0xff]  }
 0xc2f   :  { %v7194_v50 = vmul.f32 -1.442695, %v5764_v40 }
 0xc30   :  { %v8105_v15 = vpop.eup %8104  ;;  %8106 = vpow2.f32 %v7195_v27  ;;  %v10030_v27 = vld [vmem:[#allocation7_spill] sm:$0xff] }
 0xc31   :  { %v5524_v35 = vadd.f32 1.0, %v8105_v15  ;;  %8108 = vpow2.f32 %v7194_v50  ;;  %v8056_v50 = vld [vmem:[%s9941_s10 + $0x50] sm:$0xff]  }
 0xc32   :  { %v8057_v15 = vld [vmem:[%s9941_s10 + $0x10] sm:$0xff]  }
 0xc33   :  { %8110 = vrcp.f32 %v5524_v35  ;;  %v8058_v35 = vld [vmem:[%s9941_s10 + $0x58] sm:$0xff]  }
 0xc3a   :  { %v8107_v24 = vpop.eup %8106 }
 0xc3b   :  { %v8109_v8 = vpop.eup %8108  ;;  %v5779_v43 = vadd.f32 1.0, %v8107_v24  ;;  %v8059_v24 = vld [vmem:[%s9941_s10 + $0x18] sm:$0xff]  }
 0xc3c   :  { %v5778_v47 = vadd.f32 1.0, %v8109_v8  ;;  %v8060_v8 = vld [vmem:[%s9941_s10 + $0x60] sm:$0xff]  }
 0xc3d   :  { %v8111_v51 = vpop.eup %8110 }
 0xc3e   :  { %v5527_v23 = vmul.f32 %v8111_v51, %v5520_v32  ;;  %8112 = vrcp.f32 %v5778_v47  ;;  %v5528_v53 = vmul.f32 1.8462286, %v8111_v51  ;;  %v8061_v32 = vld [vmem:[%s9941_s10 + $0x20] sm:$0xff]   ;;  %v8064_v47 = vld [vmem:[%s9941_s10 + $0x28] sm:$0xff]  }
 0xc3f   :  { %8114 = vrcp.f32 %v5779_v43  ;;  %v8063_v43 = vld [vmem:[%s9941_s10 + $0x68] sm:$0xff]  }
 0xc40   :  { %5530 = vrot.lane.b32.xlu0 %v5528_v53, %s8131_s19  ;;  %v8065_v51 = vld [vmem:[%s9941_s10 + $0x88] sm:$0xff]   ;;  %v8067_v53 = vld [vmem:[%s9941_s10 + $0x30] sm:$0xff]  }
 0xc48   :  { %v8113_v26 = vpop.eup %8112 }
 0xc49   :  { %v5784_v17 = vmul.f32 %v8113_v26, %v5764_v40  ;;  %v8115_v10 = vpop.eup %8114  ;;  %v8068_v26 = vld [vmem:[%s9941_s10 + $0x90] sm:$0xff]  }
 0xc4a   :  { %v5785_v49 = vmul.f32 %v8115_v10, %v5769_v2  ;;  %v8070_v10 = vld [vmem:[%s9941_s10 + $0x38] sm:$0xff]  }
 0xc4b   :  { %7197 = vmatmul.mubr.msk.f32.vlgmr.msra.gmra.mrb[92].mxu1 %vm829_vm10, %v5784_v17 }
 0xc4c   :  { %5886 = vmatprep.mubr.f32.mxu1 %v10022_v62  ;;  %7879 = vmatpush3.bf16.msra.mxu1 %v7876_v4 }
 0xc4d   :  { %7720 = vmatprep.subr.msk.mxu1 %vm1001_vm9, %v5976_v52 }
 0xc4f   :  { %7198 = vmatmul.mubr.msk.f32.gmra.mrb[94].mxu1 %vm829_vm10, %v5785_v49 }
 0xc50   :  { %7721 = vmatpush3.msk.msra.mxu1 %vm1001_vm9, %v5976_v52 }
 0xc51   :  { %7208 = vmatprep.subr.msk.mxu1 %vm1001_vm9, %v5978_v59 }
 0xcb2   :  { %v5531_v9 = vpop.permute.xlu0 %5530 }
 0xcb3   :  { %7694 = vmatmul.mubr.msk.f32.vlgmr.msra.gmra.mrb[88].mxu0 %vm994_vm14, %v5531_v9  ;;  %v7196_v9 = vld [vmem:[%s9937_s7 + $0x1e0] ss:$8 sm:$0x7] }
 0xcb4   :  { %7698 = vmatprep.mubr.msk.bf16.mxu0 %vm8121_vm0, %v10022_v62  ;;  %v5802_v4 = vrot.slane %v7196_v9, %v8539_v29  ;;  %v5806_v5 = vrot.slane %v7196_v9, %v8542_v30 }
 0xd1e   :  { %v9743_v1 = vpop.f32.mrb[92].mxu1 }
 0xd1f   :  { %v9745_v44 = vpop.f32.mrb[93].mxu1 }
 0xd22   :  { %v9747_v16 = vpop.f32.mrb[94].mxu1 }
 0xd23   :  { %v9749_v25 = vpop.f32.mrb[95].mxu1 }
 0xd86   :  { %v5600_v36 = vpop.f32.mrb[88].mxu0 }
 0xd87   :  { %5605 = vrot.lane.b32.xlu1 %v5600_v36, %s8132_s8  ;;  %v7695_v55 = vpop.f32.mrb[89].mxu0 }
 0xdf9   :  { %v5606_v58 = vpop.permute.xlu1 %5605 }
 0xdfa   :  { %v5608_v63 = vmul.f32 %v5606_v58, %v5514_v18  ;;  %v5977_v18 = vld [vmem:[%s9937_s7 + $0x480] sm:$0xf] }
 0xdfc   :  { %5610 = vrot.lane.b32.xlu0 %v5608_v63, %s8133_s20  ;;  %v10031_v63 = vld [vmem:[#allocation8_spill] sm:$0xff] }
 0xdfd   :  { %v5798_v57 = vrot.slane %v7196_v9, %v10031_v63 }
 0xdff   :  { %v5889_v30 = vadd.f32 %v9747_v16, %v5798_v57 }
 0xe6e   :  { %v5611_v21 = vpop.permute.xlu0 %5610 }
 0xe6f   :  { %v5613_v19 = vsel %vm83_vm6, %v5527_v23, %v5611_v21  ;;  %v8066_v23 = vld [vmem:[%s9941_s10 + $0x70] sm:$0xff]  }
 0xe70   :  { %7697 = vmatpush3.msra.mxu0 %v5613_v19  ;;  %v5885_v19 = vadd.f32 %v9745_v44, %v5802_v4 }
 0xe71   :  { %7699 = vmatmul.mubr.msk.bf16.vlgmr.msra.gmra.mrb[92].mxu0 %vm83_vm6, %v10028_v12  ;;  %7869 = vmatprep.subr.bf16.mxu0 %v7868_v38 }
 0xe72   :  { %7713 = vmatprep.mubr.msk.f32.mxu0 %vm829_vm10, %v5784_v17  ;;  %7871 = vmatpush3.bf16.msra.mxu0 %v7868_v38  ;;  %v8069_v17 = vld [vmem:[%s9941_s10 + $0x78] sm:$0xff]   ;;  %v5883_v38 = vadd.f32 %v9743_v1, %v5798_v57  ;;  %v5891_v1 = vadd.f32 %v9749_v25, %v5802_v4 }
 0xe73   :  { %7873 = vmatprep.subr.bf16.mxu0 %v7872_v39 }
 0xe79   :  { %7714 = vmatmul.mubr.msk.f32.vlgmr.msra.gmra.mrb[90].mxu0 %vm829_vm10, %v5785_v49  ;;  %v8071_v49 = vld [vmem:[%s9941_s10 + $0x98] sm:$0xff]  }
 0xe7a   :  { %7875 = vmatpush1.bf16.msra.mxu0 %v7874_v13  ;;  %6059 = vmatprep.mubr.f32.mxu0 %v10022_v62 }
 0xe7b   :  { %7201 = vmatprep.subr.msk.mxu0 %vm1001_vm9, %v5975_v41 }
 0xe7e   :  { %7202 = vmatpush1.msk.msra.mxu0 %vm1001_vm9, %v5974_v31 }
 0xe7f   :  { %7725 = vmatprep.subr.msk.mxu0 %vm1001_vm9, %v5979_v37 }
 0xf44   :  { %v5680_v56 = vpop.f32.mrb[92].mxu0 }
 0xf45   :  { %v7700_v28 = vpop.f32.mrb[93].mxu0  ;;  %7203 = vmatmul.mubr.msk.f32.vlgmr.msra.gmra.mrb[96].mxu0 %vm2759_vm1, %v5680_v56  ;;  %7722 = vmatprep.mubr.msk.f32.mxu1 %vm2759_vm1, %v5680_v56 }
 0xf46   :  { %v5683_v48 = vpop.f32.mrb[94].mxu0  ;;  %6065 = vmatprep.mubr.f32.mxu0 %v10022_v62  ;;  %7726 = vmatpush3.msk.msra.mxu0 %vm1001_vm9, %v5979_v37 }
 0xf47   :  { %v7701_v22 = vpop.f32.mrb[95].mxu0  ;;  %7723 = vmatmul.mubr.msk.f32.vlgmr.msra.gmra.mrb[96].mxu1 %vm2759_vm1, %v5683_v48  ;;  %7730 = vmatprep.subr.bf16.mxu0 %v8062_v3 }
 0xf48   :  { %7209 = vmatpush1.msk.msra.mxu1 %vm1001_vm9, %v5977_v18  ;;  %6220 = vmatprep.mubr.f32.mxu1 %v10022_v62 }
 0xf49   :  { %7204 = vmatmul.mubr.msk.f32.gmra.mrb[98].mxu0 %vm2759_vm1, %v5683_v48  ;;  %7511 = vmatprep.subr.bf16.mxu1 %v8052_v45 }
 0xf4a   :  { %7727 = vmatprep.mubr.msk.f32.mxu0 %vm994_vm14, %v10029_v7 }
 0xf4b   :  { %7210 = vmatmul.mubr.msk.f32.vlgmr.msra.gmra.mrb[98].mxu1 %vm994_vm14, %v10029_v7 }
 0xf4c   :  { %v7715_v2 = vpop.f32.mrb[90].mxu0  ;;  %6226 = vmatprep.mubr.f32.mxu1 %v10022_v62  ;;  %7512 = vmatpush3.bf16.msra.mxu1 %v8053_v61 }
 0xf4d   :  { %v5959_v40 = vpop.f32.mrb[91].mxu0  ;;  %7728 = vmatmul.mubr.msk.f32.vlgmr.msra.gmra.mrb[100].mxu0 %vm994_vm14, %v10030_v27  ;;  %7513 = vmatprep.subr.bf16.mxu1 %v8054_v6  ;;  %v5965_v54 = vadd.f32 %v7715_v2, %v5806_v5 }
 0xf4e   :  { %7731 = vmatpush3.bf16.msra.mxu0 %v8062_v3  ;;  %v5960_v31 = vadd.f32 %v5959_v40, %v5806_v5 }
 0xf4f   :  { %7211 = vmatmul.mubr.msk.f32.gmra.mrb[100].mxu1 %vm994_vm14, %v10030_v27  ;;  %7732 = vmatprep.subr.bf16.mxu0 %v8065_v51 }
 0xf50   :  { %7514 = vmatpush3.bf16.msra.mxu1 %v8055_v34 }
 0xf51   :  { %7515 = vmatprep.subr.bf16.mxu1 %v8056_v50  ;;  %v6645_v50 = vld [vmem:[%s9936_s6 + $0x60] sm:$0xf] }
 0xf52   :  { %7733 = vmatpush3.bf16.msra.mxu0 %v8065_v51 }
 0xf53   :  { %7734 = vmatprep.subr.bf16.mxu0 %v8068_v26 }
 0xf54   :  { %7516 = vmatpush3.bf16.msra.mxu1 %v8057_v15 }
 0xf55   :  { %7517 = vmatprep.subr.bf16.mxu1 %v8058_v35 }
 0xf56   :  { %7735 = vmatpush3.bf16.msra.mxu0 %v8068_v26 }
 0xf57   :  { %7736 = vmatprep.subr.bf16.mxu0 %v8071_v49 }
 0xf58   :  { %7518 = vmatpush3.bf16.msra.mxu1 %v8059_v24 }
 0xf59   :  { %7519 = vmatprep.subr.bf16.mxu1 %v8060_v8 }
 0xf5a   :  { %7737 = vmatpush3.bf16.msra.mxu0 %v8071_v49 }
 0xf5b   :  { %7880 = vmatprep.subr.bf16.mxu0 %v10023_v46 }
 0xf5c   :  { %7520 = vmatpush3.bf16.msra.mxu1 %v8061_v32 }
 0xf5d   :  { %7521 = vmatprep.subr.bf16.mxu1 %v8063_v43 }
 0xf60   :  { %7522 = vmatpush3.bf16.msra.mxu1 %v8064_v47  ;;  %v7238_v47 = vld [vmem:[%s9936_s6 + $0x68] ss:$0 sm:$0xff] }
 0xf61   :  { %7523 = vmatprep.subr.bf16.mxu1 %v8066_v23 }
 0xf64   :  { %7524 = vmatpush3.bf16.msra.mxu1 %v8067_v53 }
 0xf65   :  { %7525 = vmatprep.subr.bf16.mxu1 %v8069_v17 }
 0xf68   :  { %7526 = vmatpush3.bf16.msra.mxu1 %v8070_v10 }
0x1018   :  { %v6061_v36 = vpop.f32.mrb[96].mxu0 }
0x1019   :  { %v6063_v55 = vpop.f32.mrb[97].mxu0 }
0x101a   :  { %v7724_v58 = vpop.f32.mrb[96].mxu1 }
0x101b   :  { %v6138_v0 = vpop.f32.mrb[97].mxu1 }
0x101c   :  { %v6067_v11 = vpop.f32.mrb[98].mxu0 }
0x101d   :  { %v6069_v14 = vpop.f32.mrb[99].mxu0 }
0x101e   :  { %v6222_v60 = vpop.f32.mrb[98].mxu1 }
0x101f   :  { %v6308_v46 = vmul.f32 %v6222_v60, %v6061_v36  ;;  %v6224_v21 = vpop.f32.mrb[99].mxu1 }
0x1020   :  { %v6309_v39 = vmul.f32 %v6224_v21, %v6063_v55  ;;  %v7729_v12 = vpop.f32.mrb[100].mxu0 }
0x1021   :  { %v6314_v42 = vmul.f32 %v6308_v46, %v5883_v38  ;;  %v6313_v13 = vmul.f32 %v7729_v12, %v7724_v58  ;;  %v6299_v41 = vpop.f32.mrb[101].mxu0  ;;  %v7244_v58 = vld [vmem:[%s9936_s6 + $0x78] ss:$0 sm:$0xff] }
0x1022   :  { %v6315_v52 = vmul.f32 %v6309_v39, %v5885_v19  ;;  %v6310_v29 = vmul.f32 %v6299_v41, %v6138_v0  ;;  %v6228_v59 = vpop.f32.mrb[100].mxu1 }
0x1023   :  { %v6319_v37 = vmul.f32 %v6313_v13, %v5965_v54  ;;  %v6311_v3 = vmul.f32 %v6228_v59, %v6067_v11  ;;  %v6230_v56 = vpop.f32.mrb[101].mxu1 }
0x1024   :  { %v6316_v28 = vmul.f32 %v6310_v29, %v5960_v31  ;;  %v6312_v44 = vmul.f32 %v6230_v56, %v6069_v14  ;;  %6519 = vmatprep.mubr.f32.mxu1 %v6315_v52 }
0x1025   :  { %v6317_v18 = vmul.f32 %v6311_v3, %v5889_v30  ;;  %6520 = vmatmul.mubr.f32.vlgmr.msra.gmra.mrb[102].mxu1 %v6314_v42 }
0x1026   :  { %v6318_v45 = vmul.f32 %v6312_v44, %v5891_v1  ;;  %7738 = vmatprep.mubr.msk.f32.mxu0 %vm6480_vm13, %v6316_v28 }
0x1027   :  { %7739 = vmatmul.mubr.msk.f32.vlgmr.msra.gmra.mrb[102].mxu0 %vm6480_vm13, %v6319_v37 }
0x1028   :  { %6524 = vmatprep.mubr.f32.mxu1 %v6318_v45  ;;  %7745 = vmatprep.mubr.msk.bf16.mxu0 %vm8121_vm0, %v10022_v62 }
0x1029   :  { %6525 = vmatmul.mubr.f32.gmra.mrb[104].mxu1 %v6317_v18 }
0x10f8   :  { %v7527_v16 = vpop.f32.mrb[102].mxu1 }
0x10f9   :  { %v7528_v48 = vpop.f32.mrb[103].mxu1 }
0x10fa   :  { %v7529_v22 = vadd.f32 %v7528_v48, %v7527_v16  ;;  %v7740_v61 = vpop.f32.mrb[102].mxu0 }
0x10fb   :  { %v6564_v6 = vpop.f32.mrb[103].mxu0 }
0x10fc   :  { %v6565_v7 = vadd.f32 %v7529_v22, %v6564_v6  ;;  %v7530_v25 = vpop.f32.mrb[104].mxu1 }
0x10fd   :  { %v7531_v2 = vpop.f32.mrb[105].mxu1 }
0x10fe   :  { %v7532_v34 = vadd.f32 %v7531_v2, %v7530_v25 }
0x1100   :  { %v6570_v40 = vadd.f32 %v7740_v61, %v7532_v34 }
0x1102   :  { %v7881_v27 = vpack.c.bf16 %v6570_v40, %v6565_v7 }
0x1104   :  { %7882 = vmatpush3.bf16.msra.mxu0 %v7881_v27 }
0x1105   :  { %7749 = vmatprep.subr.mxu0 %v10022_v62 }
0x1107   :  { %7746 = vmatmul.mubr.msk.bf16.vlgmr.msra.gmra.mrb[104].mxu0 %vm829_vm10, %v10025_v33  ;;  %v7241_v33 = vld [vmem:[%s9942_s5] ss:$0 sm:$0xff] }
0x1108   :  { %7750 = vmatpush3.msk.msra.mxu0 %vm1001_vm9, %v6645_v50  ;;  %7751 = vmatprep.mubr.msk.f32.mxu0 %vm8121_vm0, %v10022_v62  ;;  %vm6735_vm3 = vcmp.eq.s32.totalorder %v8530_v20, %v7241_v33  ;;  %v6647_v20 = vld [vmem:[%s9936_s6 + $0x70] sm:$0xff] }
0x1109   :  { %7754 = vmatprep.subr.mxu0 %v10022_v62  ;;  %v7242_v32 = vsel %vm6735_vm3, 1.0, %v10022_v62 }
0x110a   :  { %v6739_v43 = vsel %vm6738_vm2, %v7242_v32, 0.0 }
0x110b   :  { %6740 = vadd.xlane.f32.xlu1 %v6739_v43 }
0x1198   :  { %v6741_v17 = vpop.xlane.xlu1 %6740 }
0x1199   :  { %v6742_v10 = vmax.f32 %v6741_v17, 1.0 }
0x119b   :  { %8116 = vrcp.f32 %v6742_v10 }
0x11a5   :  { %v8117_v49 = vpop.eup %8116 }
0x11da   :  { %v6639_v15 = vpop.f32.mrb[104].mxu0 }
0x11db   :  { %v7747_v35 = vpop.f32.mrb[105].mxu0  ;;  %7752 = vmatmul.mubr.msk.f32.vlgmr.msra.gmra.mrb[108].mxu0 %vm994_vm14, %v6639_v15 }
0x11dc   :  { %v6642_v24 = vpop.f32.mrb[106].mxu0  ;;  %7756 = vmatprep.mubr.msk.f32.mxu0 %vm8121_vm0, %v10022_v62 }
0x11dd   :  { %v7748_v8 = vpop.f32.mrb[107].mxu0 }
0x12ae   :  { %v6725_v51 = vpop.f32.mrb[108].mxu0 }
0x12af   :  { %v6726_v23 = vadd.f32 %v7238_v47, %v6725_v51  ;;  %v7753_v53 = vpop.f32.mrb[109].mxu0 }
0x12b1   :  { %v6729_v26 = vmax.f32 %v6726_v23, 0.0 }
0x12b3   :  { %7755 = vmatpush3.msra.mxu0 %v6729_v26 }
0x12b4   :  { %7757 = vmatmul.mubr.msk.f32.vlgmr.msra.gmra.mrb[110].mxu0 %vm83_vm6, %v7242_v32  ;;  %7759 = vmatprep.subr.mxu0 %v10022_v62 }
0x12b5   :  { %7761 = vmatprep.mubr.msk.f32.mxu0 %vm8121_vm0, %v10022_v62  ;;  %7760 = vmatpush3.msra.mxu0 %v6647_v20  ;;  %vm6895_vm0 = vcmask 1024  }
0x1387   :  { %v6812_v9 = vpop.f32.mrb[110].mxu0 }
0x1388   :  { %v6817_v36 = vmul.f32 %v8117_v49, %v6812_v9  ;;  %v7758_v55 = vpop.f32.mrb[111].mxu0 }
0x138a   :  { %7762 = vmatmul.mubr.msk.f32.vlgmr.msra.gmra.mrb[112].mxu0 %vm83_vm6, %v6817_v36 }
0x145d   :  { %v6891_v63 = vpop.f32.mrb[112].mxu0 }
0x145e   :  { %v6892_v62 = vadd.f32 %v7244_v58, %v6891_v63  ;;  %v7763_v57 = vpop.f32.mrb[113].mxu0 }
0x1460   :  { %6896 = vst.msk [vmem:[%s9943_s11] sm:$0x3] %vm6895_vm0, %v6892_v62 }

</bundles_post_ra>
